<compile_context>
chip_gen: v7x
topology: tpu7x:2x2x1
jax: 0.10.0
libtpu: 0.0.40
codegen_flags: <defaults>
</compile_context>

<pallas_src>
import functools

import numpy as np
import jax
import jax.numpy as jnp
from jax.experimental import pallas as pl
from jax.experimental.pallas import tpu as pltpu


# ----------------------------------------------------------------------------
# Sinusoid positional table (identical to the PyTorch helper)
# ----------------------------------------------------------------------------
def get_sinusoid_encoding_table(n_seq, d_hidden):
    def cal_angle(position, i_hidden):
        return position / np.power(10000, 2 * (i_hidden // 2) / d_hidden)

    def get_posi_angle_vec(position):
        return [cal_angle(position, i_hidden) for i_hidden in range(d_hidden)]

    table = np.array([get_posi_angle_vec(i) for i in range(n_seq)], dtype=np.float64)
    table[:, 0::2] = np.sin(table[:, 0::2])
    table[:, 1::2] = np.cos(table[:, 1::2])
    return table


# ----------------------------------------------------------------------------
# Fused whole-decoder kernel (one batch element per grid step)
# ----------------------------------------------------------------------------
def _decoder_kernel(n_layers, n_head, eps,
                    x_ref, enc_ref, sbias_ref, ebias_ref,
                    wq_ref, bq_ref, wk_ref, bk_ref, wv_ref, bv_ref,
                    wo_ref, bo_ref, lng_ref, lnb_ref,
                    w1_ref, b1_ref, w2_ref, b2_ref, wout_ref, bout_ref,
                    logits_ref, sprob_ref, eprob_ref):
    """All decoder layers + final vocab projection for one batch element.

    x_ref:     (1, S, D) f32     embedded decoder input (also the residual)
    enc_ref:   (1, Se, D) f32    encoder outputs (K/V side of cross attention)
    sbias_ref: (1, S, S) f32     self-attention additive mask bias (0 / -1e9)
    ebias_ref: (1, S, Se) f32    cross-attention additive mask bias
    wq/wk/wv:  (L, 2, H, D, Dh)  bf16 per-head projection weights (q pre-scaled)
    bq/bk/bv:  (L, 2, H, 1, Dh)  f32 per-head biases (bq pre-scaled)
    wo:        (L, 2, HD, D)     bf16, bo: (L, 2, 1, D) f32
    lng/lnb:   (L, 3, 1, D)      f32 LayerNorm gamma/beta (ln1, ln2, ln3)
    w1:(L,D,F) b1:(L,1,F) w2:(L,F,D) b2:(L,1,D)   FFN weights (w* bf16)
    wout:(D,V) bf16, bout:(1,V) f32               output projection
    """
    f32, bf16 = jnp.float32, jnp.bfloat16

    x = x_ref[0]                               # (S, D) f32
    enc_bf = enc_ref[0].astype(bf16)           # (Se, D) bf16, hoisted once
    sbias = sbias_ref[0]                       # (S, S)
    ebias = ebias_ref[0]                       # (S, Se)

    def layer_norm(y, l, which):
        mu = jnp.mean(y, axis=-1, keepdims=True)
        d = y - mu
        var = jnp.mean(d * d, axis=-1, keepdims=True)
        return d * jax.lax.rsqrt(var + eps) * lng_ref[l, which] + lnb_ref[l, which]

    def attention(xq_bf, kv_bf, bias, l, a, prob_ref):
        # TODO(synk): at real sequence lengths add a KV grid axis with online
        # (flash-style) softmax and build the mask bias in-kernel from a
        # scalar-prefetched pad vector instead of DMAing an O(S*Sk) bias.
        ctx_heads, prob_heads = [], []
        for h in range(n_head):
            # Per-head projections: leading-axis weight indexing, K = D matmuls.
            qh = jnp.dot(xq_bf, wq_ref[l, a, h],
                         preferred_element_type=f32) + bq_ref[l, a, h]
            kh = jnp.dot(kv_bf, wk_ref[l, a, h],
                         preferred_element_type=f32) + bk_ref[l, a, h]
            vh = jnp.dot(kv_bf, wv_ref[l, a, h],
                         preferred_element_type=f32) + bv_ref[l, a, h]
            # q @ k^T expressed as a contraction on d_head (no XLU transpose).
            s = jax.lax.dot_general(
                qh.astype(bf16), kh.astype(bf16),
                dimension_numbers=(((1,), (1,)), ((), ())),
                preferred_element_type=f32) + bias
            s = s - jnp.max(s, axis=-1, keepdims=True)
            e = jnp.exp(s)
            p = e * pl.reciprocal(jnp.sum(e, axis=-1, keepdims=True))
            prob_heads.append(p)
            ctx_heads.append(jnp.dot(p.astype(bf16), vh.astype(bf16),
                                     preferred_element_type=f32))
        # Single store of all heads' probabilities for this layer/attention.
        prob_ref[0, l] = jnp.stack(prob_heads, axis=0)        # (H, S, Sk)
        # Single output-projection matmul with K = H*Dh.
        ctx = jnp.concatenate(ctx_heads, axis=-1)             # (S, HD)
        return jnp.dot(ctx.astype(bf16), wo_ref[l, a],
                       preferred_element_type=f32) + bo_ref[l, a]

    for l in range(n_layers):
        x_bf = x.astype(bf16)
        attn = attention(x_bf, x_bf, sbias, l, 0, sprob_ref)      # self-attn
        x = layer_norm(x + attn, l, 0)
        attn = attention(x.astype(bf16), enc_bf, ebias, l, 1, eprob_ref)
        x = layer_norm(x + attn, l, 1)
        # Position-wise FFN (Conv1d k=1 == Linear), residual, LayerNorm.
        h = jnp.dot(x.astype(bf16), w1_ref[l],
                    preferred_element_type=f32) + b1_ref[l]
        h = jnp.maximum(h, 0.0)
        f = jnp.dot(h.astype(bf16), w2_ref[l],
                    preferred_element_type=f32) + b2_ref[l]
        x = layer_norm(x + f, l, 2)

    # Final vocab projection fused into the same kernel.
    # TODO(synk): at real vocab sizes tile V (multiple of 128) with a grid axis.
    logits_ref[0] = (jnp.dot(x.astype(bf16), wout_ref[...],
                             preferred_element_type=f32) + bout_ref[...])


# ----------------------------------------------------------------------------
# Trace-time weight preparation (layer-stacked, per-head, bf16 for MXU)
# ----------------------------------------------------------------------------
def _prep_weights(params, *, n_head, d_head):
    scale = 1.0 / float(d_head) ** 0.5
    bf16 = jnp.bfloat16

    def head_w(w):   # (H*Dh, D) -> (H, D, Dh)  (== per-head W^T columns)
        return jnp.transpose(w.reshape(n_head, d_head, -1), (0, 2, 1))

    def head_b(b):   # (H*Dh,) -> (H, 1, Dh)
        return b.reshape(n_head, 1, d_head)

    wq, bq, wk, bk, wv, bv, wo, bo = ([] for _ in range(8))
    lng, lnb, w1, b1, w2, b2 = ([] for _ in range(6))
    for lp in params["layers"]:
        sa, ea = lp["self_attn"], lp["enc_attn"]
        wq.append(jnp.stack([head_w(sa["W_Q"]) * scale, head_w(ea["W_Q"]) * scale]))
        bq.append(jnp.stack([head_b(sa["b_Q"]) * scale, head_b(ea["b_Q"]) * scale]))
        wk.append(jnp.stack([head_w(sa["W_K"]), head_w(ea["W_K"])]))
        bk.append(jnp.stack([head_b(sa["b_K"]), head_b(ea["b_K"])]))
        wv.append(jnp.stack([head_w(sa["W_V"]), head_w(ea["W_V"])]))
        bv.append(jnp.stack([head_b(sa["b_V"]), head_b(ea["b_V"])]))
        wo.append(jnp.stack([sa["W_O"].T, ea["W_O"].T]))
        bo.append(jnp.stack([sa["b_O"].reshape(1, -1), ea["b_O"].reshape(1, -1)]))
        lng.append(jnp.stack([lp["ln1"]["gamma"].reshape(1, -1),
                              lp["ln2"]["gamma"].reshape(1, -1),
                              lp["ln3"]["gamma"].reshape(1, -1)]))
        lnb.append(jnp.stack([lp["ln1"]["beta"].reshape(1, -1),
                              lp["ln2"]["beta"].reshape(1, -1),
                              lp["ln3"]["beta"].reshape(1, -1)]))
        fp = lp["ffn"]
        w1.append(fp["W1"].T)
        b1.append(fp["b1"].reshape(1, -1))
        w2.append(fp["W2"].T)
        b2.append(fp["b2"].reshape(1, -1))

    stk = jnp.stack
    return (
        stk(wq).astype(bf16), stk(bq),          # (L,2,H,D,Dh), (L,2,H,1,Dh)
        stk(wk).astype(bf16), stk(bk),
        stk(wv).astype(bf16), stk(bv),
        stk(wo).astype(bf16), stk(bo),          # (L,2,HD,D),   (L,2,1,D)
        stk(lng), stk(lnb),                     # (L,3,1,D)
        stk(w1).astype(bf16), stk(b1),          # (L,D,F), (L,1,F)
        stk(w2).astype(bf16), stk(b2),          # (L,F,D), (L,1,D)
        params["out_w"].T.astype(bf16),         # (D, V)
        params["out_b"].reshape(1, -1),         # (1, V)
    )


def _const_spec(arr):
    nd = arr.ndim
    return pl.BlockSpec(arr.shape, lambda b, _nd=nd: (0,) * _nd)


# ----------------------------------------------------------------------------
# Decoder forward
# ----------------------------------------------------------------------------
def decoder_forward(params, dec_inputs, enc_inputs, enc_outputs,
                    *, n_head, d_head, i_padding, eps):
    B, S = dec_inputs.shape
    S_enc = enc_inputs.shape[1]
    D = params["emb"].shape[1]
    V = params["out_w"].shape[0]
    L = len(params["layers"])

    # --- embeddings ---------------------------------------------------------
    # TODO(synk): token/positional embedding gather kept in plain JAX
    # (data-dependent gather; no clean BlockSpec equivalent at this size).
    positions = jnp.where(dec_inputs == i_padding, 0,
                          jnp.arange(1, S + 1, dtype=dec_inputs.dtype)[None, :])
    x = (params["emb"][dec_inputs] + params["pos_emb"][positions]).astype(jnp.float32)

    # --- masks -> additive f32 bias (0 / -1e9) ------------------------------
    dec_pad = dec_inputs == i_padding                                   # (B, S)
    pad_mask = jnp.broadcast_to(dec_pad[:, None, :], (B, S, S))
    sub_mask = jnp.triu(jnp.ones((S, S), dtype=bool), k=1)[None, :, :]
    self_bias = jnp.where(pad_mask | sub_mask, -1e9, 0.0).astype(jnp.float32)

    enc_pad = enc_inputs == i_padding                                   # (B, S_enc)
    enc_mask = jnp.broadcast_to(enc_pad[:, None, :], (B, S, S_enc))
    enc_bias = jnp.where(enc_mask, -1e9, 0.0).astype(jnp.float32)

    # --- stacked / per-head / bf16 weights (trace-time prep) ----------------
    weights = _prep_weights(params, n_head=n_head, d_head=d_head)

    kernel = functools.partial(_decoder_kernel, L, n_head, eps)
    logits, sprob, eprob = pl.pallas_call(
        kernel,
        grid=(B,),
        in_specs=[
            pl.BlockSpec((1, S, D), lambda b: (b, 0, 0)),
            pl.BlockSpec((1, S_enc, D), lambda b: (b, 0, 0)),
            pl.BlockSpec((1, S, S), lambda b: (b, 0, 0)),
            pl.BlockSpec((1, S, S_enc), lambda b: (b, 0, 0)),
            *[_const_spec(w) for w in weights],
        ],
        out_specs=[
            pl.BlockSpec((1, S, V), lambda b: (b, 0, 0)),
            pl.BlockSpec((1, L, n_head, S, S), lambda b: (b, 0, 0, 0, 0)),
            pl.BlockSpec((1, L, n_head, S, S_enc), lambda b: (b, 0, 0, 0, 0)),
        ],
        out_shape=(
            jax.ShapeDtypeStruct((B, S, V), jnp.float32),
            jax.ShapeDtypeStruct((B, L, n_head, S, S), jnp.float32),
            jax.ShapeDtypeStruct((B, L, n_head, S, S_enc), jnp.float32),
        ),
        compiler_params=pltpu.CompilerParams(dimension_semantics=("parallel",)),
    )(x, enc_outputs, self_bias, enc_bias, *weights)

    self_probs = [sprob[:, l] for l in range(L)]
    enc_probs = [eprob[:, l] for l in range(L)]
    return logits, self_probs, enc_probs


# ----------------------------------------------------------------------------
# Deterministic parameter init (PyTorch-shaped weights)
# ----------------------------------------------------------------------------
def init_params(key, *, vocab_size, d_hidden, n_head, d_head, d_ff, n_layers,
                n_dec_seq):
    HD = n_head * d_head
    key_iter = iter(jax.random.split(key, 8 + n_layers * 24))

    def nxt():
        return next(key_iter)

    def lin(d_out, d_in):
        bound = 1.0 / float(np.sqrt(d_in))
        w = jax.random.uniform(nxt(), (d_out, d_in), jnp.float32, -bound, bound)
        b = jax.random.uniform(nxt(), (d_out,), jnp.float32, -bound, bound)
        return w, b

    def mha():
        W_Q, b_Q = lin(HD, d_hidden)
        W_K, b_K = lin(HD, d_hidden)
        W_V, b_V = lin(HD, d_hidden)
        W_O, b_O = lin(d_hidden, HD)
        return dict(W_Q=W_Q, b_Q=b_Q, W_K=W_K, b_K=b_K,
                    W_V=W_V, b_V=b_V, W_O=W_O, b_O=b_O)

    def ln():
        return dict(gamma=jnp.ones((d_hidden,), jnp.float32),
                    beta=jnp.zeros((d_hidden,), jnp.float32))

    layers = []
    for _ in range(n_layers):
        W1, b1 = lin(d_ff, d_hidden)   # Conv1d(d_hidden -> d_ff, k=1) == Linear
        W2, b2 = lin(d_hidden, d_ff)
        layers.append(dict(self_attn=mha(), ln1=ln(),
                           enc_attn=mha(), ln2=ln(),
                           ffn=dict(W1=W1, b1=b1, W2=W2, b2=b2), ln3=ln()))

    emb = jax.random.normal(nxt(), (vocab_size, d_hidden), jnp.float32)
    pos_emb = jnp.asarray(get_sinusoid_encoding_table(n_dec_seq + 1, d_hidden),
                          dtype=jnp.float32)
    out_w, out_b = lin(vocab_size, d_hidden)
    return dict(emb=emb, pos_emb=pos_emb, layers=layers, out_w=out_w, out_b=out_b)


# ----------------------------------------------------------------------------
# Main
# ----------------------------------------------------------------------------
if __name__ == "__main__":
    B, S, S_enc = 2, 8, 8
    d_hidden, n_head, d_head, d_ff = 32, 4, 8, 64
    n_layers, vocab_size, i_padding = 2, 32, 0
    eps = 1e-6

    key = jax.random.PRNGKey(0)
    kp, kd, ke, ko = jax.random.split(key, 4)

    params = init_params(kp, vocab_size=vocab_size, d_hidden=d_hidden,
                         n_head=n_head, d_head=d_head, d_ff=d_ff,
                         n_layers=n_layers, n_dec_seq=S)

    # Decoder tokens with trailing padding; encoder tokens with trailing padding.
    dec_inputs = jax.random.randint(kd, (B, S), 1, vocab_size, dtype=jnp.int32)
    dec_inputs = dec_inputs.at[:, -2:].set(i_padding)
    enc_inputs = jax.random.randint(ke, (B, S_enc), 1, vocab_size, dtype=jnp.int32)
    enc_inputs = enc_inputs.at[:, -3:].set(i_padding)
    enc_outputs = jax.random.normal(ko, (B, S_enc, d_hidden), jnp.float32)

    fwd = jax.jit(functools.partial(decoder_forward, n_head=n_head,
                                    d_head=d_head, i_padding=i_padding, eps=eps))
    logits, self_probs, enc_probs = fwd(params, dec_inputs, enc_inputs, enc_outputs)
    jax.block_until_ready((logits, self_probs, enc_probs))

    # --- sanity checks --------------------------------------------------------
    assert logits.shape == (B, S, vocab_size)
    assert len(self_probs) == n_layers and len(enc_probs) == n_layers
    assert self_probs[0].shape == (B, n_head, S, S)
    assert enc_probs[0].shape == (B, n_head, S, S_enc)

    causal = jnp.triu(jnp.ones((S, S), dtype=bool), k=1)[None, None]
    assert float(jnp.max(jnp.where(causal, self_probs[0], 0.0))) < 1e-6   # causal
    assert float(jnp.max(self_probs[-1][..., -2:])) < 1e-6                # dec pad keys
    assert float(jnp.max(enc_probs[-1][..., -3:])) < 1e-6                 # enc pad keys
    assert bool(jnp.allclose(jnp.sum(self_probs[0], axis=-1), 1.0, atol=1e-2))
    assert bool(jnp.all(jnp.isfinite(logits)))

    print("KERNEL_OK")
</pallas_src>

<mosaic_0001>
module attributes {stable_mosaic.version = 11 : i64} {
  func.func @_decoder_kernel(%arg0: i32, %arg1: memref<1x8x32xf32, #tpu.memory_space<vmem>>, %arg2: memref<1x8x32xf32, #tpu.memory_space<vmem>>, %arg3: memref<1x8x8xf32, #tpu.memory_space<vmem>>, %arg4: memref<1x8x8xf32, #tpu.memory_space<vmem>>, %arg5: memref<2x2x4x32x8xbf16, #tpu.memory_space<vmem>>, %arg6: memref<2x2x4x1x8xf32, #tpu.memory_space<vmem>>, %arg7: memref<2x2x4x32x8xbf16, #tpu.memory_space<vmem>>, %arg8: memref<2x2x4x1x8xf32, #tpu.memory_space<vmem>>, %arg9: memref<2x2x4x32x8xbf16, #tpu.memory_space<vmem>>, %arg10: memref<2x2x4x1x8xf32, #tpu.memory_space<vmem>>, %arg11: memref<2x2x32x32xbf16, #tpu.memory_space<vmem>>, %arg12: memref<2x2x1x32xf32, #tpu.memory_space<vmem>>, %arg13: memref<2x3x1x32xf32, #tpu.memory_space<vmem>>, %arg14: memref<2x3x1x32xf32, #tpu.memory_space<vmem>>, %arg15: memref<2x32x64xbf16, #tpu.memory_space<vmem>>, %arg16: memref<2x1x64xf32, #tpu.memory_space<vmem>>, %arg17: memref<2x64x32xbf16, #tpu.memory_space<vmem>>, %arg18: memref<2x1x32xf32, #tpu.memory_space<vmem>>, %arg19: memref<32x32xbf16, #tpu.memory_space<vmem>>, %arg20: memref<1x32xf32, #tpu.memory_space<vmem>>, %arg21: memref<1x8x32xf32, #tpu.memory_space<vmem>>, %arg22: memref<1x2x4x8x8xf32, #tpu.memory_space<vmem>>, %arg23: memref<1x2x4x8x8xf32, #tpu.memory_space<vmem>>) attributes {dimension_semantics = [#tpu.dimension_semantics<parallel>], iteration_bounds = array<i64: 2>, scalar_prefetch = 0 : i64, scratch_operands = 0 : i64, tpu.core_type = #tpu.core_type<tc>, window_params = [{transform_indices = @transform_0, window_bounds = array<i64: 1, 8, 32>}, {transform_indices = @transform_1, window_bounds = array<i64: 1, 8, 32>}, {transform_indices = @transform_2, window_bounds = array<i64: 1, 8, 8>}, {transform_indices = @transform_3, window_bounds = array<i64: 1, 8, 8>}, {pipeline_mode = #tpu.pipeline_mode<synchronous>, transform_indices = @transform_4, window_bounds = array<i64: 2, 2, 4, 32, 8>}, {pipeline_mode = #tpu.pipeline_mode<synchronous>, transform_indices = @transform_5, window_bounds = array<i64: 2, 2, 4, 1, 8>}, {pipeline_mode = #tpu.pipeline_mode<synchronous>, transform_indices = @transform_6, window_bounds = array<i64: 2, 2, 4, 32, 8>}, {pipeline_mode = #tpu.pipeline_mode<synchronous>, transform_indices = @transform_7, window_bounds = array<i64: 2, 2, 4, 1, 8>}, {pipeline_mode = #tpu.pipeline_mode<synchronous>, transform_indices = @transform_8, window_bounds = array<i64: 2, 2, 4, 32, 8>}, {pipeline_mode = #tpu.pipeline_mode<synchronous>, transform_indices = @transform_9, window_bounds = array<i64: 2, 2, 4, 1, 8>}, {pipeline_mode = #tpu.pipeline_mode<synchronous>, transform_indices = @transform_10, window_bounds = array<i64: 2, 2, 32, 32>}, {pipeline_mode = #tpu.pipeline_mode<synchronous>, transform_indices = @transform_11, window_bounds = array<i64: 2, 2, 1, 32>}, {pipeline_mode = #tpu.pipeline_mode<synchronous>, transform_indices = @transform_12, window_bounds = array<i64: 2, 3, 1, 32>}, {pipeline_mode = #tpu.pipeline_mode<synchronous>, transform_indices = @transform_13, window_bounds = array<i64: 2, 3, 1, 32>}, {pipeline_mode = #tpu.pipeline_mode<synchronous>, transform_indices = @transform_14, window_bounds = array<i64: 2, 32, 64>}, {pipeline_mode = #tpu.pipeline_mode<synchronous>, transform_indices = @transform_15, window_bounds = array<i64: 2, 1, 64>}, {pipeline_mode = #tpu.pipeline_mode<synchronous>, transform_indices = @transform_16, window_bounds = array<i64: 2, 64, 32>}, {pipeline_mode = #tpu.pipeline_mode<synchronous>, transform_indices = @transform_17, window_bounds = array<i64: 2, 1, 32>}, {pipeline_mode = #tpu.pipeline_mode<synchronous>, transform_indices = @transform_18, window_bounds = array<i64: 32, 32>}, {pipeline_mode = #tpu.pipeline_mode<synchronous>, transform_indices = @transform_19, window_bounds = array<i64: 1, 32>}, {transform_indices = @transform_20, window_bounds = array<i64: 1, 8, 32>}, {transform_indices = @transform_21, window_bounds = array<i64: 1, 2, 4, 8, 8>}, {transform_indices = @transform_22, window_bounds = array<i64: 1, 2, 4, 8, 8>}]} {
    %c0 = arith.constant 0 : index
    %c0_0 = arith.constant 0 : index
    %c0_1 = arith.constant 0 : index
    %0 = vector.load %arg1[%c0, %c0_0, %c0_1] : memref<1x8x32xf32, #tpu.memory_space<vmem>>, vector<1x8x32xf32>
    %1 = vector.shape_cast %0 : vector<1x8x32xf32> to vector<8x32xf32>
    %c0_2 = arith.constant 0 : index
    %c0_3 = arith.constant 0 : index
    %c0_4 = arith.constant 0 : index
    %2 = vector.load %arg2[%c0_2, %c0_3, %c0_4] : memref<1x8x32xf32, #tpu.memory_space<vmem>>, vector<1x8x32xf32>
    %3 = vector.shape_cast %2 : vector<1x8x32xf32> to vector<8x32xf32>
    %4 = arith.truncf %3 : vector<8x32xf32> to vector<8x32xbf16>
    %c0_5 = arith.constant 0 : index
    %c0_6 = arith.constant 0 : index
    %c0_7 = arith.constant 0 : index
    %5 = vector.load %arg3[%c0_5, %c0_6, %c0_7] : memref<1x8x8xf32, #tpu.memory_space<vmem>>, vector<1x8x8xf32>
    %6 = vector.shape_cast %5 : vector<1x8x8xf32> to vector<8x8xf32>
    %c0_8 = arith.constant 0 : index
    %c0_9 = arith.constant 0 : index
    %c0_10 = arith.constant 0 : index
    %7 = vector.load %arg4[%c0_8, %c0_9, %c0_10] : memref<1x8x8xf32, #tpu.memory_space<vmem>>, vector<1x8x8xf32>
    %8 = vector.shape_cast %7 : vector<1x8x8xf32> to vector<8x8xf32>
    %9 = arith.truncf %1 : vector<8x32xf32> to vector<8x32xbf16>
    %c0_11 = arith.constant 0 : index
    %c0_12 = arith.constant 0 : index
    %c0_13 = arith.constant 0 : index
    %c0_14 = arith.constant 0 : index
    %c0_15 = arith.constant 0 : index
    %10 = vector.load %arg5[%c0_11, %c0_12, %c0_13, %c0_14, %c0_15] : memref<2x2x4x32x8xbf16, #tpu.memory_space<vmem>>, vector<1x1x1x32x8xbf16>
    %11 = vector.shape_cast %10 : vector<1x1x1x32x8xbf16> to vector<32x8xbf16>
    %cst = arith.constant dense<0.000000e+00> : vector<8x8xf32>
    %12 = tpu.matmul %9, %11, %cst {dimension_numbers = #tpu.dot_dimension_numbers<[1], [0], [0], [1], [0, 0, 1, 1], [], []>} : vector<8x32xbf16>, vector<32x8xbf16>, vector<8x8xf32> -> vector<8x8xf32>
    %c0_16 = arith.constant 0 : index
    %c0_17 = arith.constant 0 : index
    %c0_18 = arith.constant 0 : index
    %c0_19 = arith.constant 0 : index
    %c0_20 = arith.constant 0 : index
    %13 = vector.load %arg6[%c0_16, %c0_17, %c0_18, %c0_19, %c0_20] : memref<2x2x4x1x8xf32, #tpu.memory_space<vmem>>, vector<1x1x1x1x8xf32>
    %14 = vector.shape_cast %13 : vector<1x1x1x1x8xf32> to vector<1x8xf32>
    %15 = vector.broadcast %14 : vector<1x8xf32> to vector<8x8xf32>
    %16 = arith.addf %12, %15 : vector<8x8xf32>
    %c0_21 = arith.constant 0 : index
    %c0_22 = arith.constant 0 : index
    %c0_23 = arith.constant 0 : index
    %c0_24 = arith.constant 0 : index
    %c0_25 = arith.constant 0 : index
    %17 = vector.load %arg7[%c0_21, %c0_22, %c0_23, %c0_24, %c0_25] : memref<2x2x4x32x8xbf16, #tpu.memory_space<vmem>>, vector<1x1x1x32x8xbf16>
    %18 = vector.shape_cast %17 : vector<1x1x1x32x8xbf16> to vector<32x8xbf16>
    %cst_26 = arith.constant dense<0.000000e+00> : vector<8x8xf32>
    %19 = tpu.matmul %9, %18, %cst_26 {dimension_numbers = #tpu.dot_dimension_numbers<[1], [0], [0], [1], [0, 0, 1, 1], [], []>} : vector<8x32xbf16>, vector<32x8xbf16>, vector<8x8xf32> -> vector<8x8xf32>
    %c0_27 = arith.constant 0 : index
    %c0_28 = arith.constant 0 : index
    %c0_29 = arith.constant 0 : index
    %c0_30 = arith.constant 0 : index
    %c0_31 = arith.constant 0 : index
    %20 = vector.load %arg8[%c0_27, %c0_28, %c0_29, %c0_30, %c0_31] : memref<2x2x4x1x8xf32, #tpu.memory_space<vmem>>, vector<1x1x1x1x8xf32>
    %21 = vector.shape_cast %20 : vector<1x1x1x1x8xf32> to vector<1x8xf32>
    %22 = vector.broadcast %21 : vector<1x8xf32> to vector<8x8xf32>
    %23 = arith.addf %19, %22 : vector<8x8xf32>
    %c0_32 = arith.constant 0 : index
    %c0_33 = arith.constant 0 : index
    %c0_34 = arith.constant 0 : index
    %c0_35 = arith.constant 0 : index
    %c0_36 = arith.constant 0 : index
    %24 = vector.load %arg9[%c0_32, %c0_33, %c0_34, %c0_35, %c0_36] : memref<2x2x4x32x8xbf16, #tpu.memory_space<vmem>>, vector<1x1x1x32x8xbf16>
    %25 = vector.shape_cast %24 : vector<1x1x1x32x8xbf16> to vector<32x8xbf16>
    %cst_37 = arith.constant dense<0.000000e+00> : vector<8x8xf32>
    %26 = tpu.matmul %9, %25, %cst_37 {dimension_numbers = #tpu.dot_dimension_numbers<[1], [0], [0], [1], [0, 0, 1, 1], [], []>} : vector<8x32xbf16>, vector<32x8xbf16>, vector<8x8xf32> -> vector<8x8xf32>
    %c0_38 = arith.constant 0 : index
    %c0_39 = arith.constant 0 : index
    %c0_40 = arith.constant 0 : index
    %c0_41 = arith.constant 0 : index
    %c0_42 = arith.constant 0 : index
    %27 = vector.load %arg10[%c0_38, %c0_39, %c0_40, %c0_41, %c0_42] : memref<2x2x4x1x8xf32, #tpu.memory_space<vmem>>, vector<1x1x1x1x8xf32>
    %28 = vector.shape_cast %27 : vector<1x1x1x1x8xf32> to vector<1x8xf32>
    %29 = vector.broadcast %28 : vector<1x8xf32> to vector<8x8xf32>
    %30 = arith.addf %26, %29 : vector<8x8xf32>
    %31 = arith.truncf %16 : vector<8x8xf32> to vector<8x8xbf16>
    %32 = arith.truncf %23 : vector<8x8xf32> to vector<8x8xbf16>
    %cst_43 = arith.constant dense<0.000000e+00> : vector<8x8xf32>
    %33 = tpu.matmul %31, %32, %cst_43 {dimension_numbers = #tpu.dot_dimension_numbers<[1], [1], [0], [0], [0, 0, 1, 0], [], []>} : vector<8x8xbf16>, vector<8x8xbf16>, vector<8x8xf32> -> vector<8x8xf32>
    %34 = arith.addf %33, %6 : vector<8x8xf32>
    %cst_44 = arith.constant dense<0xFF800000> : vector<8xf32>
    %35 = vector.multi_reduction <maximumf>, %34, %cst_44 [1] : vector<8x8xf32> to vector<8xf32>
    %36 = vector.shape_cast %35 : vector<8xf32> to vector<8x1xf32>
    %37 = vector.broadcast %36 : vector<8x1xf32> to vector<8x8xf32>
    %38 = arith.subf %34, %37 : vector<8x8xf32>
    %39 = math.exp %38 : vector<8x8xf32>
    %cst_45 = arith.constant dense<0.000000e+00> : vector<8xf32>
    %40 = vector.multi_reduction <add>, %39, %cst_45 [1] : vector<8x8xf32> to vector<8xf32>
    %41 = vector.shape_cast %40 : vector<8xf32> to vector<8x1xf32>
    %42 = tpu.reciprocal %41 : vector<8x1xf32> -> vector<8x1xf32>
    %43 = vector.broadcast %42 : vector<8x1xf32> to vector<8x8xf32>
    %44 = arith.mulf %39, %43 : vector<8x8xf32>
    %45 = arith.truncf %44 : vector<8x8xf32> to vector<8x8xbf16>
    %46 = arith.truncf %30 : vector<8x8xf32> to vector<8x8xbf16>
    %cst_46 = arith.constant dense<0.000000e+00> : vector<8x8xf32>
    %47 = tpu.matmul %45, %46, %cst_46 {dimension_numbers = #tpu.dot_dimension_numbers<[1], [0], [0], [1], [0, 0, 1, 1], [], []>} : vector<8x8xbf16>, vector<8x8xbf16>, vector<8x8xf32> -> vector<8x8xf32>
    %c0_47 = arith.constant 0 : index
    %c0_48 = arith.constant 0 : index
    %c1 = arith.constant 1 : index
    %c0_49 = arith.constant 0 : index
    %c0_50 = arith.constant 0 : index
    %48 = vector.load %arg5[%c0_47, %c0_48, %c1, %c0_49, %c0_50] : memref<2x2x4x32x8xbf16, #tpu.memory_space<vmem>>, vector<1x1x1x32x8xbf16>
    %49 = vector.shape_cast %48 : vector<1x1x1x32x8xbf16> to vector<32x8xbf16>
    %cst_51 = arith.constant dense<0.000000e+00> : vector<8x8xf32>
    %50 = tpu.matmul %9, %49, %cst_51 {dimension_numbers = #tpu.dot_dimension_numbers<[1], [0], [0], [1], [0, 0, 1, 1], [], []>} : vector<8x32xbf16>, vector<32x8xbf16>, vector<8x8xf32> -> vector<8x8xf32>
    %c0_52 = arith.constant 0 : index
    %c0_53 = arith.constant 0 : index
    %c1_54 = arith.constant 1 : index
    %c0_55 = arith.constant 0 : index
    %c0_56 = arith.constant 0 : index
    %51 = vector.load %arg6[%c0_52, %c0_53, %c1_54, %c0_55, %c0_56] : memref<2x2x4x1x8xf32, #tpu.memory_space<vmem>>, vector<1x1x1x1x8xf32>
    %52 = vector.shape_cast %51 : vector<1x1x1x1x8xf32> to vector<1x8xf32>
    %53 = vector.broadcast %52 : vector<1x8xf32> to vector<8x8xf32>
    %54 = arith.addf %50, %53 : vector<8x8xf32>
    %c0_57 = arith.constant 0 : index
    %c0_58 = arith.constant 0 : index
    %c1_59 = arith.constant 1 : index
    %c0_60 = arith.constant 0 : index
    %c0_61 = arith.constant 0 : index
    %55 = vector.load %arg7[%c0_57, %c0_58, %c1_59, %c0_60, %c0_61] : memref<2x2x4x32x8xbf16, #tpu.memory_space<vmem>>, vector<1x1x1x32x8xbf16>
    %56 = vector.shape_cast %55 : vector<1x1x1x32x8xbf16> to vector<32x8xbf16>
    %cst_62 = arith.constant dense<0.000000e+00> : vector<8x8xf32>
    %57 = tpu.matmul %9, %56, %cst_62 {dimension_numbers = #tpu.dot_dimension_numbers<[1], [0], [0], [1], [0, 0, 1, 1], [], []>} : vector<8x32xbf16>, vector<32x8xbf16>, vector<8x8xf32> -> vector<8x8xf32>
    %c0_63 = arith.constant 0 : index
    %c0_64 = arith.constant 0 : index
    %c1_65 = arith.constant 1 : index
    %c0_66 = arith.constant 0 : index
    %c0_67 = arith.constant 0 : index
    %58 = vector.load %arg8[%c0_63, %c0_64, %c1_65, %c0_66, %c0_67] : memref<2x2x4x1x8xf32, #tpu.memory_space<vmem>>, vector<1x1x1x1x8xf32>
    %59 = vector.shape_cast %58 : vector<1x1x1x1x8xf32> to vector<1x8xf32>
    %60 = vector.broadcast %59 : vector<1x8xf32> to vector<8x8xf32>
    %61 = arith.addf %57, %60 : vector<8x8xf32>
    %c0_68 = arith.constant 0 : index
    %c0_69 = arith.constant 0 : index
    %c1_70 = arith.constant 1 : index
    %c0_71 = arith.constant 0 : index
    %c0_72 = arith.constant 0 : index
    %62 = vector.load %arg9[%c0_68, %c0_69, %c1_70, %c0_71, %c0_72] : memref<2x2x4x32x8xbf16, #tpu.memory_space<vmem>>, vector<1x1x1x32x8xbf16>
    %63 = vector.shape_cast %62 : vector<1x1x1x32x8xbf16> to vector<32x8xbf16>
    %cst_73 = arith.constant dense<0.000000e+00> : vector<8x8xf32>
    %64 = tpu.matmul %9, %63, %cst_73 {dimension_numbers = #tpu.dot_dimension_numbers<[1], [0], [0], [1], [0, 0, 1, 1], [], []>} : vector<8x32xbf16>, vector<32x8xbf16>, vector<8x8xf32> -> vector<8x8xf32>
    %c0_74 = arith.constant 0 : index
    %c0_75 = arith.constant 0 : index
    %c1_76 = arith.constant 1 : index
    %c0_77 = arith.constant 0 : index
    %c0_78 = arith.constant 0 : index
    %65 = vector.load %arg10[%c0_74, %c0_75, %c1_76, %c0_77, %c0_78] : memref<2x2x4x1x8xf32, #tpu.memory_space<vmem>>, vector<1x1x1x1x8xf32>
    %66 = vector.shape_cast %65 : vector<1x1x1x1x8xf32> to vector<1x8xf32>
    %67 = vector.broadcast %66 : vector<1x8xf32> to vector<8x8xf32>
    %68 = arith.addf %64, %67 : vector<8x8xf32>
    %69 = arith.truncf %54 : vector<8x8xf32> to vector<8x8xbf16>
    %70 = arith.truncf %61 : vector<8x8xf32> to vector<8x8xbf16>
    %cst_79 = arith.constant dense<0.000000e+00> : vector<8x8xf32>
    %71 = tpu.matmul %69, %70, %cst_79 {dimension_numbers = #tpu.dot_dimension_numbers<[1], [1], [0], [0], [0, 0, 1, 0], [], []>} : vector<8x8xbf16>, vector<8x8xbf16>, vector<8x8xf32> -> vector<8x8xf32>
    %72 = arith.addf %71, %6 : vector<8x8xf32>
    %cst_80 = arith.constant dense<0xFF800000> : vector<8xf32>
    %73 = vector.multi_reduction <maximumf>, %72, %cst_80 [1] : vector<8x8xf32> to vector<8xf32>
    %74 = vector.shape_cast %73 : vector<8xf32> to vector<8x1xf32>
    %75 = vector.broadcast %74 : vector<8x1xf32> to vector<8x8xf32>
    %76 = arith.subf %72, %75 : vector<8x8xf32>
    %77 = math.exp %76 : vector<8x8xf32>
    %cst_81 = arith.constant dense<0.000000e+00> : vector<8xf32>
    %78 = vector.multi_reduction <add>, %77, %cst_81 [1] : vector<8x8xf32> to vector<8xf32>
    %79 = vector.shape_cast %78 : vector<8xf32> to vector<8x1xf32>
    %80 = tpu.reciprocal %79 : vector<8x1xf32> -> vector<8x1xf32>
    %81 = vector.broadcast %80 : vector<8x1xf32> to vector<8x8xf32>
    %82 = arith.mulf %77, %81 : vector<8x8xf32>
    %83 = arith.truncf %82 : vector<8x8xf32> to vector<8x8xbf16>
    %84 = arith.truncf %68 : vector<8x8xf32> to vector<8x8xbf16>
    %cst_82 = arith.constant dense<0.000000e+00> : vector<8x8xf32>
    %85 = tpu.matmul %83, %84, %cst_82 {dimension_numbers = #tpu.dot_dimension_numbers<[1], [0], [0], [1], [0, 0, 1, 1], [], []>} : vector<8x8xbf16>, vector<8x8xbf16>, vector<8x8xf32> -> vector<8x8xf32>
    %c0_83 = arith.constant 0 : index
    %c0_84 = arith.constant 0 : index
    %c2 = arith.constant 2 : index
    %c0_85 = arith.constant 0 : index
    %c0_86 = arith.constant 0 : index
    %86 = vector.load %arg5[%c0_83, %c0_84, %c2, %c0_85, %c0_86] : memref<2x2x4x32x8xbf16, #tpu.memory_space<vmem>>, vector<1x1x1x32x8xbf16>
    %87 = vector.shape_cast %86 : vector<1x1x1x32x8xbf16> to vector<32x8xbf16>
    %cst_87 = arith.constant dense<0.000000e+00> : vector<8x8xf32>
    %88 = tpu.matmul %9, %87, %cst_87 {dimension_numbers = #tpu.dot_dimension_numbers<[1], [0], [0], [1], [0, 0, 1, 1], [], []>} : vector<8x32xbf16>, vector<32x8xbf16>, vector<8x8xf32> -> vector<8x8xf32>
    %c0_88 = arith.constant 0 : index
    %c0_89 = arith.constant 0 : index
    %c2_90 = arith.constant 2 : index
    %c0_91 = arith.constant 0 : index
    %c0_92 = arith.constant 0 : index
    %89 = vector.load %arg6[%c0_88, %c0_89, %c2_90, %c0_91, %c0_92] : memref<2x2x4x1x8xf32, #tpu.memory_space<vmem>>, vector<1x1x1x1x8xf32>
    %90 = vector.shape_cast %89 : vector<1x1x1x1x8xf32> to vector<1x8xf32>
    %91 = vector.broadcast %90 : vector<1x8xf32> to vector<8x8xf32>
    %92 = arith.addf %88, %91 : vector<8x8xf32>
    %c0_93 = arith.constant 0 : index
    %c0_94 = arith.constant 0 : index
    %c2_95 = arith.constant 2 : index
    %c0_96 = arith.constant 0 : index
    %c0_97 = arith.constant 0 : index
    %93 = vector.load %arg7[%c0_93, %c0_94, %c2_95, %c0_96, %c0_97] : memref<2x2x4x32x8xbf16, #tpu.memory_space<vmem>>, vector<1x1x1x32x8xbf16>
    %94 = vector.shape_cast %93 : vector<1x1x1x32x8xbf16> to vector<32x8xbf16>
    %cst_98 = arith.constant dense<0.000000e+00> : vector<8x8xf32>
    %95 = tpu.matmul %9, %94, %cst_98 {dimension_numbers = #tpu.dot_dimension_numbers<[1], [0], [0], [1], [0, 0, 1, 1], [], []>} : vector<8x32xbf16>, vector<32x8xbf16>, vector<8x8xf32> -> vector<8x8xf32>
    %c0_99 = arith.constant 0 : index
    %c0_100 = arith.constant 0 : index
    %c2_101 = arith.constant 2 : index
    %c0_102 = arith.constant 0 : index
    %c0_103 = arith.constant 0 : index
    %96 = vector.load %arg8[%c0_99, %c0_100, %c2_101, %c0_102, %c0_103] : memref<2x2x4x1x8xf32, #tpu.memory_space<vmem>>, vector<1x1x1x1x8xf32>
    %97 = vector.shape_cast %96 : vector<1x1x1x1x8xf32> to vector<1x8xf32>
    %98 = vector.broadcast %97 : vector<1x8xf32> to vector<8x8xf32>
    %99 = arith.addf %95, %98 : vector<8x8xf32>
    %c0_104 = arith.constant 0 : index
    %c0_105 = arith.constant 0 : index
    %c2_106 = arith.constant 2 : index
    %c0_107 = arith.constant 0 : index
    %c0_108 = arith.constant 0 : index
    %100 = vector.load %arg9[%c0_104, %c0_105, %c2_106, %c0_107, %c0_108] : memref<2x2x4x32x8xbf16, #tpu.memory_space<vmem>>, vector<1x1x1x32x8xbf16>
    %101 = vector.shape_cast %100 : vector<1x1x1x32x8xbf16> to vector<32x8xbf16>
    %cst_109 = arith.constant dense<0.000000e+00> : vector<8x8xf32>
    %102 = tpu.matmul %9, %101, %cst_109 {dimension_numbers = #tpu.dot_dimension_numbers<[1], [0], [0], [1], [0, 0, 1, 1], [], []>} : vector<8x32xbf16>, vector<32x8xbf16>, vector<8x8xf32> -> vector<8x8xf32>
    %c0_110 = arith.constant 0 : index
    %c0_111 = arith.constant 0 : index
    %c2_112 = arith.constant 2 : index
    %c0_113 = arith.constant 0 : index
    %c0_114 = arith.constant 0 : index
    %103 = vector.load %arg10[%c0_110, %c0_111, %c2_112, %c0_113, %c0_114] : memref<2x2x4x1x8xf32, #tpu.memory_space<vmem>>, vector<1x1x1x1x8xf32>
    %104 = vector.shape_cast %103 : vector<1x1x1x1x8xf32> to vector<1x8xf32>
    %105 = vector.broadcast %104 : vector<1x8xf32> to vector<8x8xf32>
    %106 = arith.addf %102, %105 : vector<8x8xf32>
    %107 = arith.truncf %92 : vector<8x8xf32> to vector<8x8xbf16>
    %108 = arith.truncf %99 : vector<8x8xf32> to vector<8x8xbf16>
    %cst_115 = arith.constant dense<0.000000e+00> : vector<8x8xf32>
    %109 = tpu.matmul %107, %108, %cst_115 {dimension_numbers = #tpu.dot_dimension_numbers<[1], [1], [0], [0], [0, 0, 1, 0], [], []>} : vector<8x8xbf16>, vector<8x8xbf16>, vector<8x8xf32> -> vector<8x8xf32>
    %110 = arith.addf %109, %6 : vector<8x8xf32>
    %cst_116 = arith.constant dense<0xFF800000> : vector<8xf32>
    %111 = vector.multi_reduction <maximumf>, %110, %cst_116 [1] : vector<8x8xf32> to vector<8xf32>
    %112 = vector.shape_cast %111 : vector<8xf32> to vector<8x1xf32>
    %113 = vector.broadcast %112 : vector<8x1xf32> to vector<8x8xf32>
    %114 = arith.subf %110, %113 : vector<8x8xf32>
    %115 = math.exp %114 : vector<8x8xf32>
    %cst_117 = arith.constant dense<0.000000e+00> : vector<8xf32>
    %116 = vector.multi_reduction <add>, %115, %cst_117 [1] : vector<8x8xf32> to vector<8xf32>
    %117 = vector.shape_cast %116 : vector<8xf32> to vector<8x1xf32>
    %118 = tpu.reciprocal %117 : vector<8x1xf32> -> vector<8x1xf32>
    %119 = vector.broadcast %118 : vector<8x1xf32> to vector<8x8xf32>
    %120 = arith.mulf %115, %119 : vector<8x8xf32>
    %121 = arith.truncf %120 : vector<8x8xf32> to vector<8x8xbf16>
    %122 = arith.truncf %106 : vector<8x8xf32> to vector<8x8xbf16>
    %cst_118 = arith.constant dense<0.000000e+00> : vector<8x8xf32>
    %123 = tpu.matmul %121, %122, %cst_118 {dimension_numbers = #tpu.dot_dimension_numbers<[1], [0], [0], [1], [0, 0, 1, 1], [], []>} : vector<8x8xbf16>, vector<8x8xbf16>, vector<8x8xf32> -> vector<8x8xf32>
    %c0_119 = arith.constant 0 : index
    %c0_120 = arith.constant 0 : index
    %c3 = arith.constant 3 : index
    %c0_121 = arith.constant 0 : index
    %c0_122 = arith.constant 0 : index
    %124 = vector.load %arg5[%c0_119, %c0_120, %c3, %c0_121, %c0_122] : memref<2x2x4x32x8xbf16, #tpu.memory_space<vmem>>, vector<1x1x1x32x8xbf16>
    %125 = vector.shape_cast %124 : vector<1x1x1x32x8xbf16> to vector<32x8xbf16>
    %cst_123 = arith.constant dense<0.000000e+00> : vector<8x8xf32>
    %126 = tpu.matmul %9, %125, %cst_123 {dimension_numbers = #tpu.dot_dimension_numbers<[1], [0], [0], [1], [0, 0, 1, 1], [], []>} : vector<8x32xbf16>, vector<32x8xbf16>, vector<8x8xf32> -> vector<8x8xf32>
    %c0_124 = arith.constant 0 : index
    %c0_125 = arith.constant 0 : index
    %c3_126 = arith.constant 3 : index
    %c0_127 = arith.constant 0 : index
    %c0_128 = arith.constant 0 : index
    %127 = vector.load %arg6[%c0_124, %c0_125, %c3_126, %c0_127, %c0_128] : memref<2x2x4x1x8xf32, #tpu.memory_space<vmem>>, vector<1x1x1x1x8xf32>
    %128 = vector.shape_cast %127 : vector<1x1x1x1x8xf32> to vector<1x8xf32>
    %129 = vector.broadcast %128 : vector<1x8xf32> to vector<8x8xf32>
    %130 = arith.addf %126, %129 : vector<8x8xf32>
    %c0_129 = arith.constant 0 : index
    %c0_130 = arith.constant 0 : index
    %c3_131 = arith.constant 3 : index
    %c0_132 = arith.constant 0 : index
    %c0_133 = arith.constant 0 : index
    %131 = vector.load %arg7[%c0_129, %c0_130, %c3_131, %c0_132, %c0_133] : memref<2x2x4x32x8xbf16, #tpu.memory_space<vmem>>, vector<1x1x1x32x8xbf16>
    %132 = vector.shape_cast %131 : vector<1x1x1x32x8xbf16> to vector<32x8xbf16>
    %cst_134 = arith.constant dense<0.000000e+00> : vector<8x8xf32>
    %133 = tpu.matmul %9, %132, %cst_134 {dimension_numbers = #tpu.dot_dimension_numbers<[1], [0], [0], [1], [0, 0, 1, 1], [], []>} : vector<8x32xbf16>, vector<32x8xbf16>, vector<8x8xf32> -> vector<8x8xf32>
    %c0_135 = arith.constant 0 : index
    %c0_136 = arith.constant 0 : index
    %c3_137 = arith.constant 3 : index
    %c0_138 = arith.constant 0 : index
    %c0_139 = arith.constant 0 : index
    %134 = vector.load %arg8[%c0_135, %c0_136, %c3_137, %c0_138, %c0_139] : memref<2x2x4x1x8xf32, #tpu.memory_space<vmem>>, vector<1x1x1x1x8xf32>
    %135 = vector.shape_cast %134 : vector<1x1x1x1x8xf32> to vector<1x8xf32>
    %136 = vector.broadcast %135 : vector<1x8xf32> to vector<8x8xf32>
    %137 = arith.addf %133, %136 : vector<8x8xf32>
    %c0_140 = arith.constant 0 : index
    %c0_141 = arith.constant 0 : index
    %c3_142 = arith.constant 3 : index
    %c0_143 = arith.constant 0 : index
    %c0_144 = arith.constant 0 : index
    %138 = vector.load %arg9[%c0_140, %c0_141, %c3_142, %c0_143, %c0_144] : memref<2x2x4x32x8xbf16, #tpu.memory_space<vmem>>, vector<1x1x1x32x8xbf16>
    %139 = vector.shape_cast %138 : vector<1x1x1x32x8xbf16> to vector<32x8xbf16>
    %cst_145 = arith.constant dense<0.000000e+00> : vector<8x8xf32>
    %140 = tpu.matmul %9, %139, %cst_145 {dimension_numbers = #tpu.dot_dimension_numbers<[1], [0], [0], [1], [0, 0, 1, 1], [], []>} : vector<8x32xbf16>, vector<32x8xbf16>, vector<8x8xf32> -> vector<8x8xf32>
    %c0_146 = arith.constant 0 : index
    %c0_147 = arith.constant 0 : index
    %c3_148 = arith.constant 3 : index
    %c0_149 = arith.constant 0 : index
    %c0_150 = arith.constant 0 : index
    %141 = vector.load %arg10[%c0_146, %c0_147, %c3_148, %c0_149, %c0_150] : memref<2x2x4x1x8xf32, #tpu.memory_space<vmem>>, vector<1x1x1x1x8xf32>
    %142 = vector.shape_cast %141 : vector<1x1x1x1x8xf32> to vector<1x8xf32>
    %143 = vector.broadcast %142 : vector<1x8xf32> to vector<8x8xf32>
    %144 = arith.addf %140, %143 : vector<8x8xf32>
    %145 = arith.truncf %130 : vector<8x8xf32> to vector<8x8xbf16>
    %146 = arith.truncf %137 : vector<8x8xf32> to vector<8x8xbf16>
    %cst_151 = arith.constant dense<0.000000e+00> : vector<8x8xf32>
    %147 = tpu.matmul %145, %146, %cst_151 {dimension_numbers = #tpu.dot_dimension_numbers<[1], [1], [0], [0], [0, 0, 1, 0], [], []>} : vector<8x8xbf16>, vector<8x8xbf16>, vector<8x8xf32> -> vector<8x8xf32>
    %148 = arith.addf %147, %6 : vector<8x8xf32>
    %cst_152 = arith.constant dense<0xFF800000> : vector<8xf32>
    %149 = vector.multi_reduction <maximumf>, %148, %cst_152 [1] : vector<8x8xf32> to vector<8xf32>
    %150 = vector.shape_cast %149 : vector<8xf32> to vector<8x1xf32>
    %151 = vector.broadcast %150 : vector<8x1xf32> to vector<8x8xf32>
    %152 = arith.subf %148, %151 : vector<8x8xf32>
    %153 = math.exp %152 : vector<8x8xf32>
    %cst_153 = arith.constant dense<0.000000e+00> : vector<8xf32>
    %154 = vector.multi_reduction <add>, %153, %cst_153 [1] : vector<8x8xf32> to vector<8xf32>
    %155 = vector.shape_cast %154 : vector<8xf32> to vector<8x1xf32>
    %156 = tpu.reciprocal %155 : vector<8x1xf32> -> vector<8x1xf32>
    %157 = vector.broadcast %156 : vector<8x1xf32> to vector<8x8xf32>
    %158 = arith.mulf %153, %157 : vector<8x8xf32>
    %159 = arith.truncf %158 : vector<8x8xf32> to vector<8x8xbf16>
    %160 = arith.truncf %144 : vector<8x8xf32> to vector<8x8xbf16>
    %cst_154 = arith.constant dense<0.000000e+00> : vector<8x8xf32>
    %161 = tpu.matmul %159, %160, %cst_154 {dimension_numbers = #tpu.dot_dimension_numbers<[1], [0], [0], [1], [0, 0, 1, 1], [], []>} : vector<8x8xbf16>, vector<8x8xbf16>, vector<8x8xf32> -> vector<8x8xf32>
    %162 = vector.shape_cast %44 : vector<8x8xf32> to vector<1x8x8xf32>
    %163 = vector.shape_cast %82 : vector<8x8xf32> to vector<1x8x8xf32>
    %164 = vector.shape_cast %120 : vector<8x8xf32> to vector<1x8x8xf32>
    %165 = vector.shape_cast %158 : vector<8x8xf32> to vector<1x8x8xf32>
    %166 = tpu.concatenate %162, %163, %164, %165 in 0 : vector<1x8x8xf32>, vector<1x8x8xf32>, vector<1x8x8xf32>, vector<1x8x8xf32> -> vector<4x8x8xf32>
    %c0_155 = arith.constant 0 : index
    %c0_156 = arith.constant 0 : index
    %c0_157 = arith.constant 0 : index
    %c0_158 = arith.constant 0 : index
    %c0_159 = arith.constant 0 : index
    %167 = vector.load %arg22[%c0_155, %c0_156, %c0_157, %c0_158, %c0_159] : memref<1x2x4x8x8xf32, #tpu.memory_space<vmem>>, vector<1x1x4x8x8xf32>
    %168 = vector.shape_cast %167 : vector<1x1x4x8x8xf32> to vector<4x8x8xf32>
    %169 = vector.shape_cast %166 : vector<4x8x8xf32> to vector<1x1x4x8x8xf32>
    tpu.vector_store %arg22[%c0_155, %c0_156, %c0_157, %c0_158, %c0_159], %169 {strides = array<i32>} : memref<1x2x4x8x8xf32, #tpu.memory_space<vmem>>, vector<1x1x4x8x8xf32>,
    %170 = tpu.concatenate %47, %85, %123, %161 in 1 : vector<8x8xf32>, vector<8x8xf32>, vector<8x8xf32>, vector<8x8xf32> -> vector<8x32xf32>
    %171 = arith.truncf %170 : vector<8x32xf32> to vector<8x32xbf16>
    %c0_160 = arith.constant 0 : index
    %c0_161 = arith.constant 0 : index
    %c0_162 = arith.constant 0 : index
    %c0_163 = arith.constant 0 : index
    %172 = vector.load %arg11[%c0_160, %c0_161, %c0_162, %c0_163] : memref<2x2x32x32xbf16, #tpu.memory_space<vmem>>, vector<1x1x32x32xbf16>
    %173 = vector.shape_cast %172 : vector<1x1x32x32xbf16> to vector<32x32xbf16>
    %cst_164 = arith.constant dense<0.000000e+00> : vector<8x32xf32>
    %174 = tpu.matmul %171, %173, %cst_164 {dimension_numbers = #tpu.dot_dimension_numbers<[1], [0], [0], [1], [0, 0, 1, 1], [], []>} : vector<8x32xbf16>, vector<32x32xbf16>, vector<8x32xf32> -> vector<8x32xf32>
    %c0_165 = arith.constant 0 : index
    %c0_166 = arith.constant 0 : index
    %c0_167 = arith.constant 0 : index
    %c0_168 = arith.constant 0 : index
    %175 = vector.load %arg12[%c0_165, %c0_166, %c0_167, %c0_168] : memref<2x2x1x32xf32, #tpu.memory_space<vmem>>, vector<1x1x1x32xf32>
    %176 = vector.shape_cast %175 : vector<1x1x1x32xf32> to vector<1x32xf32>
    %177 = vector.broadcast %176 : vector<1x32xf32> to vector<8x32xf32>
    %178 = arith.addf %174, %177 : vector<8x32xf32>
    %179 = arith.addf %1, %178 : vector<8x32xf32>
    %cst_169 = arith.constant dense<0.000000e+00> : vector<8xf32>
    %180 = vector.multi_reduction <add>, %179, %cst_169 [1] : vector<8x32xf32> to vector<8xf32>
    %181 = vector.shape_cast %180 : vector<8xf32> to vector<8x1xf32>
    %cst_170 = arith.constant 3.200000e+01 : f32
    %182 = vector.broadcast %cst_170 : f32 to vector<8x1xf32>
    %183 = arith.divf %181, %182 : vector<8x1xf32>
    %184 = vector.broadcast %183 : vector<8x1xf32> to vector<8x32xf32>
    %185 = arith.subf %179, %184 : vector<8x32xf32>
    %186 = arith.mulf %185, %185 : vector<8x32xf32>
    %cst_171 = arith.constant dense<0.000000e+00> : vector<8xf32>
    %187 = vector.multi_reduction <add>, %186, %cst_171 [1] : vector<8x32xf32> to vector<8xf32>
    %188 = vector.shape_cast %187 : vector<8xf32> to vector<8x1xf32>
    %cst_172 = arith.constant 3.200000e+01 : f32
    %189 = vector.broadcast %cst_172 : f32 to vector<8x1xf32>
    %190 = arith.divf %188, %189 : vector<8x1xf32>
    %cst_173 = arith.constant 9.99999997E-7 : f32
    %191 = vector.broadcast %cst_173 : f32 to vector<8x1xf32>
    %192 = arith.addf %190, %191 : vector<8x1xf32>
    %193 = math.rsqrt %192 : vector<8x1xf32>
    %194 = vector.broadcast %193 : vector<8x1xf32> to vector<8x32xf32>
    %195 = arith.mulf %185, %194 : vector<8x32xf32>
    %c0_174 = arith.constant 0 : index
    %c0_175 = arith.constant 0 : index
    %c0_176 = arith.constant 0 : index
    %c0_177 = arith.constant 0 : index
    %196 = vector.load %arg13[%c0_174, %c0_175, %c0_176, %c0_177] : memref<2x3x1x32xf32, #tpu.memory_space<vmem>>, vector<1x1x1x32xf32>
    %197 = vector.shape_cast %196 : vector<1x1x1x32xf32> to vector<1x32xf32>
    %198 = vector.broadcast %197 : vector<1x32xf32> to vector<8x32xf32>
    %199 = arith.mulf %195, %198 : vector<8x32xf32>
    %c0_178 = arith.constant 0 : index
    %c0_179 = arith.constant 0 : index
    %c0_180 = arith.constant 0 : index
    %c0_181 = arith.constant 0 : index
    %200 = vector.load %arg14[%c0_178, %c0_179, %c0_180, %c0_181] : memref<2x3x1x32xf32, #tpu.memory_space<vmem>>, vector<1x1x1x32xf32>
    %201 = vector.shape_cast %200 : vector<1x1x1x32xf32> to vector<1x32xf32>
    %202 = vector.broadcast %201 : vector<1x32xf32> to vector<8x32xf32>
    %203 = arith.addf %199, %202 : vector<8x32xf32>
    %204 = arith.truncf %203 : vector<8x32xf32> to vector<8x32xbf16>
    %c0_182 = arith.constant 0 : index
    %c1_183 = arith.constant 1 : index
    %c0_184 = arith.constant 0 : index
    %c0_185 = arith.constant 0 : index
    %c0_186 = arith.constant 0 : index
    %205 = vector.load %arg5[%c0_182, %c1_183, %c0_184, %c0_185, %c0_186] : memref<2x2x4x32x8xbf16, #tpu.memory_space<vmem>>, vector<1x1x1x32x8xbf16>
    %206 = vector.shape_cast %205 : vector<1x1x1x32x8xbf16> to vector<32x8xbf16>
    %cst_187 = arith.constant dense<0.000000e+00> : vector<8x8xf32>
    %207 = tpu.matmul %204, %206, %cst_187 {dimension_numbers = #tpu.dot_dimension_numbers<[1], [0], [0], [1], [0, 0, 1, 1], [], []>} : vector<8x32xbf16>, vector<32x8xbf16>, vector<8x8xf32> -> vector<8x8xf32>
    %c0_188 = arith.constant 0 : index
    %c1_189 = arith.constant 1 : index
    %c0_190 = arith.constant 0 : index
    %c0_191 = arith.constant 0 : index
    %c0_192 = arith.constant 0 : index
    %208 = vector.load %arg6[%c0_188, %c1_189, %c0_190, %c0_191, %c0_192] : memref<2x2x4x1x8xf32, #tpu.memory_space<vmem>>, vector<1x1x1x1x8xf32>
    %209 = vector.shape_cast %208 : vector<1x1x1x1x8xf32> to vector<1x8xf32>
    %210 = vector.broadcast %209 : vector<1x8xf32> to vector<8x8xf32>
    %211 = arith.addf %207, %210 : vector<8x8xf32>
    %c0_193 = arith.constant 0 : index
    %c1_194 = arith.constant 1 : index
    %c0_195 = arith.constant 0 : index
    %c0_196 = arith.constant 0 : index
    %c0_197 = arith.constant 0 : index
    %212 = vector.load %arg7[%c0_193, %c1_194, %c0_195, %c0_196, %c0_197] : memref<2x2x4x32x8xbf16, #tpu.memory_space<vmem>>, vector<1x1x1x32x8xbf16>
    %213 = vector.shape_cast %212 : vector<1x1x1x32x8xbf16> to vector<32x8xbf16>
    %cst_198 = arith.constant dense<0.000000e+00> : vector<8x8xf32>
    %214 = tpu.matmul %4, %213, %cst_198 {dimension_numbers = #tpu.dot_dimension_numbers<[1], [0], [0], [1], [0, 0, 1, 1], [], []>} : vector<8x32xbf16>, vector<32x8xbf16>, vector<8x8xf32> -> vector<8x8xf32>
    %c0_199 = arith.constant 0 : index
    %c1_200 = arith.constant 1 : index
    %c0_201 = arith.constant 0 : index
    %c0_202 = arith.constant 0 : index
    %c0_203 = arith.constant 0 : index
    %215 = vector.load %arg8[%c0_199, %c1_200, %c0_201, %c0_202, %c0_203] : memref<2x2x4x1x8xf32, #tpu.memory_space<vmem>>, vector<1x1x1x1x8xf32>
    %216 = vector.shape_cast %215 : vector<1x1x1x1x8xf32> to vector<1x8xf32>
    %217 = vector.broadcast %216 : vector<1x8xf32> to vector<8x8xf32>
    %218 = arith.addf %214, %217 : vector<8x8xf32>
    %c0_204 = arith.constant 0 : index
    %c1_205 = arith.constant 1 : index
    %c0_206 = arith.constant 0 : index
    %c0_207 = arith.constant 0 : index
    %c0_208 = arith.constant 0 : index
    %219 = vector.load %arg9[%c0_204, %c1_205, %c0_206, %c0_207, %c0_208] : memref<2x2x4x32x8xbf16, #tpu.memory_space<vmem>>, vector<1x1x1x32x8xbf16>
    %220 = vector.shape_cast %219 : vector<1x1x1x32x8xbf16> to vector<32x8xbf16>
    %cst_209 = arith.constant dense<0.000000e+00> : vector<8x8xf32>
    %221 = tpu.matmul %4, %220, %cst_209 {dimension_numbers = #tpu.dot_dimension_numbers<[1], [0], [0], [1], [0, 0, 1, 1], [], []>} : vector<8x32xbf16>, vector<32x8xbf16>, vector<8x8xf32> -> vector<8x8xf32>
    %c0_210 = arith.constant 0 : index
    %c1_211 = arith.constant 1 : index
    %c0_212 = arith.constant 0 : index
    %c0_213 = arith.constant 0 : index
    %c0_214 = arith.constant 0 : index
    %222 = vector.load %arg10[%c0_210, %c1_211, %c0_212, %c0_213, %c0_214] : memref<2x2x4x1x8xf32, #tpu.memory_space<vmem>>, vector<1x1x1x1x8xf32>
    %223 = vector.shape_cast %222 : vector<1x1x1x1x8xf32> to vector<1x8xf32>
    %224 = vector.broadcast %223 : vector<1x8xf32> to vector<8x8xf32>
    %225 = arith.addf %221, %224 : vector<8x8xf32>
    %226 = arith.truncf %211 : vector<8x8xf32> to vector<8x8xbf16>
    %227 = arith.truncf %218 : vector<8x8xf32> to vector<8x8xbf16>
    %cst_215 = arith.constant dense<0.000000e+00> : vector<8x8xf32>
    %228 = tpu.matmul %226, %227, %cst_215 {dimension_numbers = #tpu.dot_dimension_numbers<[1], [1], [0], [0], [0, 0, 1, 0], [], []>} : vector<8x8xbf16>, vector<8x8xbf16>, vector<8x8xf32> -> vector<8x8xf32>
    %229 = arith.addf %228, %8 : vector<8x8xf32>
    %cst_216 = arith.constant dense<0xFF800000> : vector<8xf32>
    %230 = vector.multi_reduction <maximumf>, %229, %cst_216 [1] : vector<8x8xf32> to vector<8xf32>
    %231 = vector.shape_cast %230 : vector<8xf32> to vector<8x1xf32>
    %232 = vector.broadcast %231 : vector<8x1xf32> to vector<8x8xf32>
    %233 = arith.subf %229, %232 : vector<8x8xf32>
    %234 = math.exp %233 : vector<8x8xf32>
    %cst_217 = arith.constant dense<0.000000e+00> : vector<8xf32>
    %235 = vector.multi_reduction <add>, %234, %cst_217 [1] : vector<8x8xf32> to vector<8xf32>
    %236 = vector.shape_cast %235 : vector<8xf32> to vector<8x1xf32>
    %237 = tpu.reciprocal %236 : vector<8x1xf32> -> vector<8x1xf32>
    %238 = vector.broadcast %237 : vector<8x1xf32> to vector<8x8xf32>
    %239 = arith.mulf %234, %238 : vector<8x8xf32>
    %240 = arith.truncf %239 : vector<8x8xf32> to vector<8x8xbf16>
    %241 = arith.truncf %225 : vector<8x8xf32> to vector<8x8xbf16>
    %cst_218 = arith.constant dense<0.000000e+00> : vector<8x8xf32>
    %242 = tpu.matmul %240, %241, %cst_218 {dimension_numbers = #tpu.dot_dimension_numbers<[1], [0], [0], [1], [0, 0, 1, 1], [], []>} : vector<8x8xbf16>, vector<8x8xbf16>, vector<8x8xf32> -> vector<8x8xf32>
    %c0_219 = arith.constant 0 : index
    %c1_220 = arith.constant 1 : index
    %c1_221 = arith.constant 1 : index
    %c0_222 = arith.constant 0 : index
    %c0_223 = arith.constant 0 : index
    %243 = vector.load %arg5[%c0_219, %c1_220, %c1_221, %c0_222, %c0_223] : memref<2x2x4x32x8xbf16, #tpu.memory_space<vmem>>, vector<1x1x1x32x8xbf16>
    %244 = vector.shape_cast %243 : vector<1x1x1x32x8xbf16> to vector<32x8xbf16>
    %cst_224 = arith.constant dense<0.000000e+00> : vector<8x8xf32>
    %245 = tpu.matmul %204, %244, %cst_224 {dimension_numbers = #tpu.dot_dimension_numbers<[1], [0], [0], [1], [0, 0, 1, 1], [], []>} : vector<8x32xbf16>, vector<32x8xbf16>, vector<8x8xf32> -> vector<8x8xf32>
    %c0_225 = arith.constant 0 : index
    %c1_226 = arith.constant 1 : index
    %c1_227 = arith.constant 1 : index
    %c0_228 = arith.constant 0 : index
    %c0_229 = arith.constant 0 : index
    %246 = vector.load %arg6[%c0_225, %c1_226, %c1_227, %c0_228, %c0_229] : memref<2x2x4x1x8xf32, #tpu.memory_space<vmem>>, vector<1x1x1x1x8xf32>
    %247 = vector.shape_cast %246 : vector<1x1x1x1x8xf32> to vector<1x8xf32>
    %248 = vector.broadcast %247 : vector<1x8xf32> to vector<8x8xf32>
    %249 = arith.addf %245, %248 : vector<8x8xf32>
    %c0_230 = arith.constant 0 : index
    %c1_231 = arith.constant 1 : index
    %c1_232 = arith.constant 1 : index
    %c0_233 = arith.constant 0 : index
    %c0_234 = arith.constant 0 : index
    %250 = vector.load %arg7[%c0_230, %c1_231, %c1_232, %c0_233, %c0_234] : memref<2x2x4x32x8xbf16, #tpu.memory_space<vmem>>, vector<1x1x1x32x8xbf16>
    %251 = vector.shape_cast %250 : vector<1x1x1x32x8xbf16> to vector<32x8xbf16>
    %cst_235 = arith.constant dense<0.000000e+00> : vector<8x8xf32>
    %252 = tpu.matmul %4, %251, %cst_235 {dimension_numbers = #tpu.dot_dimension_numbers<[1], [0], [0], [1], [0, 0, 1, 1], [], []>} : vector<8x32xbf16>, vector<32x8xbf16>, vector<8x8xf32> -> vector<8x8xf32>
    %c0_236 = arith.constant 0 : index
    %c1_237 = arith.constant 1 : index
    %c1_238 = arith.constant 1 : index
    %c0_239 = arith.constant 0 : index
    %c0_240 = arith.constant 0 : index
    %253 = vector.load %arg8[%c0_236, %c1_237, %c1_238, %c0_239, %c0_240] : memref<2x2x4x1x8xf32, #tpu.memory_space<vmem>>, vector<1x1x1x1x8xf32>
    %254 = vector.shape_cast %253 : vector<1x1x1x1x8xf32> to vector<1x8xf32>
    %255 = vector.broadcast %254 : vector<1x8xf32> to vector<8x8xf32>
    %256 = arith.addf %252, %255 : vector<8x8xf32>
    %c0_241 = arith.constant 0 : index
    %c1_242 = arith.constant 1 : index
    %c1_243 = arith.constant 1 : index
    %c0_244 = arith.constant 0 : index
    %c0_245 = arith.constant 0 : index
    %257 = vector.load %arg9[%c0_241, %c1_242, %c1_243, %c0_244, %c0_245] : memref<2x2x4x32x8xbf16, #tpu.memory_space<vmem>>, vector<1x1x1x32x8xbf16>
    %258 = vector.shape_cast %257 : vector<1x1x1x32x8xbf16> to vector<32x8xbf16>
    %cst_246 = arith.constant dense<0.000000e+00> : vector<8x8xf32>
    %259 = tpu.matmul %4, %258, %cst_246 {dimension_numbers = #tpu.dot_dimension_numbers<[1], [0], [0], [1], [0, 0, 1, 1], [], []>} : vector<8x32xbf16>, vector<32x8xbf16>, vector<8x8xf32> -> vector<8x8xf32>
    %c0_247 = arith.constant 0 : index
    %c1_248 = arith.constant 1 : index
    %c1_249 = arith.constant 1 : index
    %c0_250 = arith.constant 0 : index
    %c0_251 = arith.constant 0 : index
    %260 = vector.load %arg10[%c0_247, %c1_248, %c1_249, %c0_250, %c0_251] : memref<2x2x4x1x8xf32, #tpu.memory_space<vmem>>, vector<1x1x1x1x8xf32>
    %261 = vector.shape_cast %260 : vector<1x1x1x1x8xf32> to vector<1x8xf32>
    %262 = vector.broadcast %261 : vector<1x8xf32> to vector<8x8xf32>
    %263 = arith.addf %259, %262 : vector<8x8xf32>
    %264 = arith.truncf %249 : vector<8x8xf32> to vector<8x8xbf16>
    %265 = arith.truncf %256 : vector<8x8xf32> to vector<8x8xbf16>
    %cst_252 = arith.constant dense<0.000000e+00> : vector<8x8xf32>
    %266 = tpu.matmul %264, %265, %cst_252 {dimension_numbers = #tpu.dot_dimension_numbers<[1], [1], [0], [0], [0, 0, 1, 0], [], []>} : vector<8x8xbf16>, vector<8x8xbf16>, vector<8x8xf32> -> vector<8x8xf32>
    %267 = arith.addf %266, %8 : vector<8x8xf32>
    %cst_253 = arith.constant dense<0xFF800000> : vector<8xf32>
    %268 = vector.multi_reduction <maximumf>, %267, %cst_253 [1] : vector<8x8xf32> to vector<8xf32>
    %269 = vector.shape_cast %268 : vector<8xf32> to vector<8x1xf32>
    %270 = vector.broadcast %269 : vector<8x1xf32> to vector<8x8xf32>
    %271 = arith.subf %267, %270 : vector<8x8xf32>
    %272 = math.exp %271 : vector<8x8xf32>
    %cst_254 = arith.constant dense<0.000000e+00> : vector<8xf32>
    %273 = vector.multi_reduction <add>, %272, %cst_254 [1] : vector<8x8xf32> to vector<8xf32>
    %274 = vector.shape_cast %273 : vector<8xf32> to vector<8x1xf32>
    %275 = tpu.reciprocal %274 : vector<8x1xf32> -> vector<8x1xf32>
    %276 = vector.broadcast %275 : vector<8x1xf32> to vector<8x8xf32>
    %277 = arith.mulf %272, %276 : vector<8x8xf32>
    %278 = arith.truncf %277 : vector<8x8xf32> to vector<8x8xbf16>
    %279 = arith.truncf %263 : vector<8x8xf32> to vector<8x8xbf16>
    %cst_255 = arith.constant dense<0.000000e+00> : vector<8x8xf32>
    %280 = tpu.matmul %278, %279, %cst_255 {dimension_numbers = #tpu.dot_dimension_numbers<[1], [0], [0], [1], [0, 0, 1, 1], [], []>} : vector<8x8xbf16>, vector<8x8xbf16>, vector<8x8xf32> -> vector<8x8xf32>
    %c0_256 = arith.constant 0 : index
    %c1_257 = arith.constant 1 : index
    %c2_258 = arith.constant 2 : index
    %c0_259 = arith.constant 0 : index
    %c0_260 = arith.constant 0 : index
    %281 = vector.load %arg5[%c0_256, %c1_257, %c2_258, %c0_259, %c0_260] : memref<2x2x4x32x8xbf16, #tpu.memory_space<vmem>>, vector<1x1x1x32x8xbf16>
    %282 = vector.shape_cast %281 : vector<1x1x1x32x8xbf16> to vector<32x8xbf16>
    %cst_261 = arith.constant dense<0.000000e+00> : vector<8x8xf32>
    %283 = tpu.matmul %204, %282, %cst_261 {dimension_numbers = #tpu.dot_dimension_numbers<[1], [0], [0], [1], [0, 0, 1, 1], [], []>} : vector<8x32xbf16>, vector<32x8xbf16>, vector<8x8xf32> -> vector<8x8xf32>
    %c0_262 = arith.constant 0 : index
    %c1_263 = arith.constant 1 : index
    %c2_264 = arith.constant 2 : index
    %c0_265 = arith.constant 0 : index
    %c0_266 = arith.constant 0 : index
    %284 = vector.load %arg6[%c0_262, %c1_263, %c2_264, %c0_265, %c0_266] : memref<2x2x4x1x8xf32, #tpu.memory_space<vmem>>, vector<1x1x1x1x8xf32>
    %285 = vector.shape_cast %284 : vector<1x1x1x1x8xf32> to vector<1x8xf32>
    %286 = vector.broadcast %285 : vector<1x8xf32> to vector<8x8xf32>
    %287 = arith.addf %283, %286 : vector<8x8xf32>
    %c0_267 = arith.constant 0 : index
    %c1_268 = arith.constant 1 : index
    %c2_269 = arith.constant 2 : index
    %c0_270 = arith.constant 0 : index
    %c0_271 = arith.constant 0 : index
    %288 = vector.load %arg7[%c0_267, %c1_268, %c2_269, %c0_270, %c0_271] : memref<2x2x4x32x8xbf16, #tpu.memory_space<vmem>>, vector<1x1x1x32x8xbf16>
    %289 = vector.shape_cast %288 : vector<1x1x1x32x8xbf16> to vector<32x8xbf16>
    %cst_272 = arith.constant dense<0.000000e+00> : vector<8x8xf32>
    %290 = tpu.matmul %4, %289, %cst_272 {dimension_numbers = #tpu.dot_dimension_numbers<[1], [0], [0], [1], [0, 0, 1, 1], [], []>} : vector<8x32xbf16>, vector<32x8xbf16>, vector<8x8xf32> -> vector<8x8xf32>
    %c0_273 = arith.constant 0 : index
    %c1_274 = arith.constant 1 : index
    %c2_275 = arith.constant 2 : index
    %c0_276 = arith.constant 0 : index
    %c0_277 = arith.constant 0 : index
    %291 = vector.load %arg8[%c0_273, %c1_274, %c2_275, %c0_276, %c0_277] : memref<2x2x4x1x8xf32, #tpu.memory_space<vmem>>, vector<1x1x1x1x8xf32>
    %292 = vector.shape_cast %291 : vector<1x1x1x1x8xf32> to vector<1x8xf32>
    %293 = vector.broadcast %292 : vector<1x8xf32> to vector<8x8xf32>
    %294 = arith.addf %290, %293 : vector<8x8xf32>
    %c0_278 = arith.constant 0 : index
    %c1_279 = arith.constant 1 : index
    %c2_280 = arith.constant 2 : index
    %c0_281 = arith.constant 0 : index
    %c0_282 = arith.constant 0 : index
    %295 = vector.load %arg9[%c0_278, %c1_279, %c2_280, %c0_281, %c0_282] : memref<2x2x4x32x8xbf16, #tpu.memory_space<vmem>>, vector<1x1x1x32x8xbf16>
    %296 = vector.shape_cast %295 : vector<1x1x1x32x8xbf16> to vector<32x8xbf16>
    %cst_283 = arith.constant dense<0.000000e+00> : vector<8x8xf32>
    %297 = tpu.matmul %4, %296, %cst_283 {dimension_numbers = #tpu.dot_dimension_numbers<[1], [0], [0], [1], [0, 0, 1, 1], [], []>} : vector<8x32xbf16>, vector<32x8xbf16>, vector<8x8xf32> -> vector<8x8xf32>
    %c0_284 = arith.constant 0 : index
    %c1_285 = arith.constant 1 : index
    %c2_286 = arith.constant 2 : index
    %c0_287 = arith.constant 0 : index
    %c0_288 = arith.constant 0 : index
    %298 = vector.load %arg10[%c0_284, %c1_285, %c2_286, %c0_287, %c0_288] : memref<2x2x4x1x8xf32, #tpu.memory_space<vmem>>, vector<1x1x1x1x8xf32>
    %299 = vector.shape_cast %298 : vector<1x1x1x1x8xf32> to vector<1x8xf32>
    %300 = vector.broadcast %299 : vector<1x8xf32> to vector<8x8xf32>
    %301 = arith.addf %297, %300 : vector<8x8xf32>
    %302 = arith.truncf %287 : vector<8x8xf32> to vector<8x8xbf16>
    %303 = arith.truncf %294 : vector<8x8xf32> to vector<8x8xbf16>
    %cst_289 = arith.constant dense<0.000000e+00> : vector<8x8xf32>
    %304 = tpu.matmul %302, %303, %cst_289 {dimension_numbers = #tpu.dot_dimension_numbers<[1], [1], [0], [0], [0, 0, 1, 0], [], []>} : vector<8x8xbf16>, vector<8x8xbf16>, vector<8x8xf32> -> vector<8x8xf32>
    %305 = arith.addf %304, %8 : vector<8x8xf32>
    %cst_290 = arith.constant dense<0xFF800000> : vector<8xf32>
    %306 = vector.multi_reduction <maximumf>, %305, %cst_290 [1] : vector<8x8xf32> to vector<8xf32>
    %307 = vector.shape_cast %306 : vector<8xf32> to vector<8x1xf32>
    %308 = vector.broadcast %307 : vector<8x1xf32> to vector<8x8xf32>
    %309 = arith.subf %305, %308 : vector<8x8xf32>
    %310 = math.exp %309 : vector<8x8xf32>
    %cst_291 = arith.constant dense<0.000000e+00> : vector<8xf32>
    %311 = vector.multi_reduction <add>, %310, %cst_291 [1] : vector<8x8xf32> to vector<8xf32>
    %312 = vector.shape_cast %311 : vector<8xf32> to vector<8x1xf32>
    %313 = tpu.reciprocal %312 : vector<8x1xf32> -> vector<8x1xf32>
    %314 = vector.broadcast %313 : vector<8x1xf32> to vector<8x8xf32>
    %315 = arith.mulf %310, %314 : vector<8x8xf32>
    %316 = arith.truncf %315 : vector<8x8xf32> to vector<8x8xbf16>
    %317 = arith.truncf %301 : vector<8x8xf32> to vector<8x8xbf16>
    %cst_292 = arith.constant dense<0.000000e+00> : vector<8x8xf32>
    %318 = tpu.matmul %316, %317, %cst_292 {dimension_numbers = #tpu.dot_dimension_numbers<[1], [0], [0], [1], [0, 0, 1, 1], [], []>} : vector<8x8xbf16>, vector<8x8xbf16>, vector<8x8xf32> -> vector<8x8xf32>
    %c0_293 = arith.constant 0 : index
    %c1_294 = arith.constant 1 : index
    %c3_295 = arith.constant 3 : index
    %c0_296 = arith.constant 0 : index
    %c0_297 = arith.constant 0 : index
    %319 = vector.load %arg5[%c0_293, %c1_294, %c3_295, %c0_296, %c0_297] : memref<2x2x4x32x8xbf16, #tpu.memory_space<vmem>>, vector<1x1x1x32x8xbf16>
    %320 = vector.shape_cast %319 : vector<1x1x1x32x8xbf16> to vector<32x8xbf16>
    %cst_298 = arith.constant dense<0.000000e+00> : vector<8x8xf32>
    %321 = tpu.matmul %204, %320, %cst_298 {dimension_numbers = #tpu.dot_dimension_numbers<[1], [0], [0], [1], [0, 0, 1, 1], [], []>} : vector<8x32xbf16>, vector<32x8xbf16>, vector<8x8xf32> -> vector<8x8xf32>
    %c0_299 = arith.constant 0 : index
    %c1_300 = arith.constant 1 : index
    %c3_301 = arith.constant 3 : index
    %c0_302 = arith.constant 0 : index
    %c0_303 = arith.constant 0 : index
    %322 = vector.load %arg6[%c0_299, %c1_300, %c3_301, %c0_302, %c0_303] : memref<2x2x4x1x8xf32, #tpu.memory_space<vmem>>, vector<1x1x1x1x8xf32>
    %323 = vector.shape_cast %322 : vector<1x1x1x1x8xf32> to vector<1x8xf32>
    %324 = vector.broadcast %323 : vector<1x8xf32> to vector<8x8xf32>
    %325 = arith.addf %321, %324 : vector<8x8xf32>
    %c0_304 = arith.constant 0 : index
    %c1_305 = arith.constant 1 : index
    %c3_306 = arith.constant 3 : index
    %c0_307 = arith.constant 0 : index
    %c0_308 = arith.constant 0 : index
    %326 = vector.load %arg7[%c0_304, %c1_305, %c3_306, %c0_307, %c0_308] : memref<2x2x4x32x8xbf16, #tpu.memory_space<vmem>>, vector<1x1x1x32x8xbf16>
    %327 = vector.shape_cast %326 : vector<1x1x1x32x8xbf16> to vector<32x8xbf16>
    %cst_309 = arith.constant dense<0.000000e+00> : vector<8x8xf32>
    %328 = tpu.matmul %4, %327, %cst_309 {dimension_numbers = #tpu.dot_dimension_numbers<[1], [0], [0], [1], [0, 0, 1, 1], [], []>} : vector<8x32xbf16>, vector<32x8xbf16>, vector<8x8xf32> -> vector<8x8xf32>
    %c0_310 = arith.constant 0 : index
    %c1_311 = arith.constant 1 : index
    %c3_312 = arith.constant 3 : index
    %c0_313 = arith.constant 0 : index
    %c0_314 = arith.constant 0 : index
    %329 = vector.load %arg8[%c0_310, %c1_311, %c3_312, %c0_313, %c0_314] : memref<2x2x4x1x8xf32, #tpu.memory_space<vmem>>, vector<1x1x1x1x8xf32>
    %330 = vector.shape_cast %329 : vector<1x1x1x1x8xf32> to vector<1x8xf32>
    %331 = vector.broadcast %330 : vector<1x8xf32> to vector<8x8xf32>
    %332 = arith.addf %328, %331 : vector<8x8xf32>
    %c0_315 = arith.constant 0 : index
    %c1_316 = arith.constant 1 : index
    %c3_317 = arith.constant 3 : index
    %c0_318 = arith.constant 0 : index
    %c0_319 = arith.constant 0 : index
    %333 = vector.load %arg9[%c0_315, %c1_316, %c3_317, %c0_318, %c0_319] : memref<2x2x4x32x8xbf16, #tpu.memory_space<vmem>>, vector<1x1x1x32x8xbf16>
    %334 = vector.shape_cast %333 : vector<1x1x1x32x8xbf16> to vector<32x8xbf16>
    %cst_320 = arith.constant dense<0.000000e+00> : vector<8x8xf32>
    %335 = tpu.matmul %4, %334, %cst_320 {dimension_numbers = #tpu.dot_dimension_numbers<[1], [0], [0], [1], [0, 0, 1, 1], [], []>} : vector<8x32xbf16>, vector<32x8xbf16>, vector<8x8xf32> -> vector<8x8xf32>
    %c0_321 = arith.constant 0 : index
    %c1_322 = arith.constant 1 : index
    %c3_323 = arith.constant 3 : index
    %c0_324 = arith.constant 0 : index
    %c0_325 = arith.constant 0 : index
    %336 = vector.load %arg10[%c0_321, %c1_322, %c3_323, %c0_324, %c0_325] : memref<2x2x4x1x8xf32, #tpu.memory_space<vmem>>, vector<1x1x1x1x8xf32>
    %337 = vector.shape_cast %336 : vector<1x1x1x1x8xf32> to vector<1x8xf32>
    %338 = vector.broadcast %337 : vector<1x8xf32> to vector<8x8xf32>
    %339 = arith.addf %335, %338 : vector<8x8xf32>
    %340 = arith.truncf %325 : vector<8x8xf32> to vector<8x8xbf16>
    %341 = arith.truncf %332 : vector<8x8xf32> to vector<8x8xbf16>
    %cst_326 = arith.constant dense<0.000000e+00> : vector<8x8xf32>
    %342 = tpu.matmul %340, %341, %cst_326 {dimension_numbers = #tpu.dot_dimension_numbers<[1], [1], [0], [0], [0, 0, 1, 0], [], []>} : vector<8x8xbf16>, vector<8x8xbf16>, vector<8x8xf32> -> vector<8x8xf32>
    %343 = arith.addf %342, %8 : vector<8x8xf32>
    %cst_327 = arith.constant dense<0xFF800000> : vector<8xf32>
    %344 = vector.multi_reduction <maximumf>, %343, %cst_327 [1] : vector<8x8xf32> to vector<8xf32>
    %345 = vector.shape_cast %344 : vector<8xf32> to vector<8x1xf32>
    %346 = vector.broadcast %345 : vector<8x1xf32> to vector<8x8xf32>
    %347 = arith.subf %343, %346 : vector<8x8xf32>
    %348 = math.exp %347 : vector<8x8xf32>
    %cst_328 = arith.constant dense<0.000000e+00> : vector<8xf32>
    %349 = vector.multi_reduction <add>, %348, %cst_328 [1] : vector<8x8xf32> to vector<8xf32>
    %350 = vector.shape_cast %349 : vector<8xf32> to vector<8x1xf32>
    %351 = tpu.reciprocal %350 : vector<8x1xf32> -> vector<8x1xf32>
    %352 = vector.broadcast %351 : vector<8x1xf32> to vector<8x8xf32>
    %353 = arith.mulf %348, %352 : vector<8x8xf32>
    %354 = arith.truncf %353 : vector<8x8xf32> to vector<8x8xbf16>
    %355 = arith.truncf %339 : vector<8x8xf32> to vector<8x8xbf16>
    %cst_329 = arith.constant dense<0.000000e+00> : vector<8x8xf32>
    %356 = tpu.matmul %354, %355, %cst_329 {dimension_numbers = #tpu.dot_dimension_numbers<[1], [0], [0], [1], [0, 0, 1, 1], [], []>} : vector<8x8xbf16>, vector<8x8xbf16>, vector<8x8xf32> -> vector<8x8xf32>
    %357 = vector.shape_cast %239 : vector<8x8xf32> to vector<1x8x8xf32>
    %358 = vector.shape_cast %277 : vector<8x8xf32> to vector<1x8x8xf32>
    %359 = vector.shape_cast %315 : vector<8x8xf32> to vector<1x8x8xf32>
    %360 = vector.shape_cast %353 : vector<8x8xf32> to vector<1x8x8xf32>
    %361 = tpu.concatenate %357, %358, %359, %360 in 0 : vector<1x8x8xf32>, vector<1x8x8xf32>, vector<1x8x8xf32>, vector<1x8x8xf32> -> vector<4x8x8xf32>
    %c0_330 = arith.constant 0 : index
    %c0_331 = arith.constant 0 : index
    %c0_332 = arith.constant 0 : index
    %c0_333 = arith.constant 0 : index
    %c0_334 = arith.constant 0 : index
    %362 = vector.load %arg23[%c0_330, %c0_331, %c0_332, %c0_333, %c0_334] : memref<1x2x4x8x8xf32, #tpu.memory_space<vmem>>, vector<1x1x4x8x8xf32>
    %363 = vector.shape_cast %362 : vector<1x1x4x8x8xf32> to vector<4x8x8xf32>
    %364 = vector.shape_cast %361 : vector<4x8x8xf32> to vector<1x1x4x8x8xf32>
    tpu.vector_store %arg23[%c0_330, %c0_331, %c0_332, %c0_333, %c0_334], %364 {strides = array<i32>} : memref<1x2x4x8x8xf32, #tpu.memory_space<vmem>>, vector<1x1x4x8x8xf32>,
    %365 = tpu.concatenate %242, %280, %318, %356 in 1 : vector<8x8xf32>, vector<8x8xf32>, vector<8x8xf32>, vector<8x8xf32> -> vector<8x32xf32>
    %366 = arith.truncf %365 : vector<8x32xf32> to vector<8x32xbf16>
    %c0_335 = arith.constant 0 : index
    %c1_336 = arith.constant 1 : index
    %c0_337 = arith.constant 0 : index
    %c0_338 = arith.constant 0 : index
    %367 = vector.load %arg11[%c0_335, %c1_336, %c0_337, %c0_338] : memref<2x2x32x32xbf16, #tpu.memory_space<vmem>>, vector<1x1x32x32xbf16>
    %368 = vector.shape_cast %367 : vector<1x1x32x32xbf16> to vector<32x32xbf16>
    %cst_339 = arith.constant dense<0.000000e+00> : vector<8x32xf32>
    %369 = tpu.matmul %366, %368, %cst_339 {dimension_numbers = #tpu.dot_dimension_numbers<[1], [0], [0], [1], [0, 0, 1, 1], [], []>} : vector<8x32xbf16>, vector<32x32xbf16>, vector<8x32xf32> -> vector<8x32xf32>
    %c0_340 = arith.constant 0 : index
    %c1_341 = arith.constant 1 : index
    %c0_342 = arith.constant 0 : index
    %c0_343 = arith.constant 0 : index
    %370 = vector.load %arg12[%c0_340, %c1_341, %c0_342, %c0_343] : memref<2x2x1x32xf32, #tpu.memory_space<vmem>>, vector<1x1x1x32xf32>
    %371 = vector.shape_cast %370 : vector<1x1x1x32xf32> to vector<1x32xf32>
    %372 = vector.broadcast %371 : vector<1x32xf32> to vector<8x32xf32>
    %373 = arith.addf %369, %372 : vector<8x32xf32>
    %374 = arith.addf %203, %373 : vector<8x32xf32>
    %cst_344 = arith.constant dense<0.000000e+00> : vector<8xf32>
    %375 = vector.multi_reduction <add>, %374, %cst_344 [1] : vector<8x32xf32> to vector<8xf32>
    %376 = vector.shape_cast %375 : vector<8xf32> to vector<8x1xf32>
    %cst_345 = arith.constant 3.200000e+01 : f32
    %377 = vector.broadcast %cst_345 : f32 to vector<8x1xf32>
    %378 = arith.divf %376, %377 : vector<8x1xf32>
    %379 = vector.broadcast %378 : vector<8x1xf32> to vector<8x32xf32>
    %380 = arith.subf %374, %379 : vector<8x32xf32>
    %381 = arith.mulf %380, %380 : vector<8x32xf32>
    %cst_346 = arith.constant dense<0.000000e+00> : vector<8xf32>
    %382 = vector.multi_reduction <add>, %381, %cst_346 [1] : vector<8x32xf32> to vector<8xf32>
    %383 = vector.shape_cast %382 : vector<8xf32> to vector<8x1xf32>
    %cst_347 = arith.constant 3.200000e+01 : f32
    %384 = vector.broadcast %cst_347 : f32 to vector<8x1xf32>
    %385 = arith.divf %383, %384 : vector<8x1xf32>
    %cst_348 = arith.constant 9.99999997E-7 : f32
    %386 = vector.broadcast %cst_348 : f32 to vector<8x1xf32>
    %387 = arith.addf %385, %386 : vector<8x1xf32>
    %388 = math.rsqrt %387 : vector<8x1xf32>
    %389 = vector.broadcast %388 : vector<8x1xf32> to vector<8x32xf32>
    %390 = arith.mulf %380, %389 : vector<8x32xf32>
    %c0_349 = arith.constant 0 : index
    %c1_350 = arith.constant 1 : index
    %c0_351 = arith.constant 0 : index
    %c0_352 = arith.constant 0 : index
    %391 = vector.load %arg13[%c0_349, %c1_350, %c0_351, %c0_352] : memref<2x3x1x32xf32, #tpu.memory_space<vmem>>, vector<1x1x1x32xf32>
    %392 = vector.shape_cast %391 : vector<1x1x1x32xf32> to vector<1x32xf32>
    %393 = vector.broadcast %392 : vector<1x32xf32> to vector<8x32xf32>
    %394 = arith.mulf %390, %393 : vector<8x32xf32>
    %c0_353 = arith.constant 0 : index
    %c1_354 = arith.constant 1 : index
    %c0_355 = arith.constant 0 : index
    %c0_356 = arith.constant 0 : index
    %395 = vector.load %arg14[%c0_353, %c1_354, %c0_355, %c0_356] : memref<2x3x1x32xf32, #tpu.memory_space<vmem>>, vector<1x1x1x32xf32>
    %396 = vector.shape_cast %395 : vector<1x1x1x32xf32> to vector<1x32xf32>
    %397 = vector.broadcast %396 : vector<1x32xf32> to vector<8x32xf32>
    %398 = arith.addf %394, %397 : vector<8x32xf32>
    %399 = arith.truncf %398 : vector<8x32xf32> to vector<8x32xbf16>
    %c0_357 = arith.constant 0 : index
    %c0_358 = arith.constant 0 : index
    %c0_359 = arith.constant 0 : index
    %400 = vector.load %arg15[%c0_357, %c0_358, %c0_359] : memref<2x32x64xbf16, #tpu.memory_space<vmem>>, vector<1x32x64xbf16>
    %401 = vector.shape_cast %400 : vector<1x32x64xbf16> to vector<32x64xbf16>
    %cst_360 = arith.constant dense<0.000000e+00> : vector<8x64xf32>
    %402 = tpu.matmul %399, %401, %cst_360 {dimension_numbers = #tpu.dot_dimension_numbers<[1], [0], [0], [1], [0, 0, 1, 1], [], []>} : vector<8x32xbf16>, vector<32x64xbf16>, vector<8x64xf32> -> vector<8x64xf32>
    %c0_361 = arith.constant 0 : index
    %c0_362 = arith.constant 0 : index
    %c0_363 = arith.constant 0 : index
    %403 = vector.load %arg16[%c0_361, %c0_362, %c0_363] : memref<2x1x64xf32, #tpu.memory_space<vmem>>, vector<1x1x64xf32>
    %404 = vector.shape_cast %403 : vector<1x1x64xf32> to vector<1x64xf32>
    %405 = vector.broadcast %404 : vector<1x64xf32> to vector<8x64xf32>
    %406 = arith.addf %402, %405 : vector<8x64xf32>
    %cst_364 = arith.constant 0.000000e+00 : f32
    %407 = vector.broadcast %cst_364 : f32 to vector<8x64xf32>
    %408 = arith.maximumf %406, %407 : vector<8x64xf32>
    %409 = arith.truncf %408 : vector<8x64xf32> to vector<8x64xbf16>
    %c0_365 = arith.constant 0 : index
    %c0_366 = arith.constant 0 : index
    %c0_367 = arith.constant 0 : index
    %410 = vector.load %arg17[%c0_365, %c0_366, %c0_367] : memref<2x64x32xbf16, #tpu.memory_space<vmem>>, vector<1x64x32xbf16>
    %411 = vector.shape_cast %410 : vector<1x64x32xbf16> to vector<64x32xbf16>
    %cst_368 = arith.constant dense<0.000000e+00> : vector<8x32xf32>
    %412 = tpu.matmul %409, %411, %cst_368 {dimension_numbers = #tpu.dot_dimension_numbers<[1], [0], [0], [1], [0, 0, 1, 1], [], []>} : vector<8x64xbf16>, vector<64x32xbf16>, vector<8x32xf32> -> vector<8x32xf32>
    %c0_369 = arith.constant 0 : index
    %c0_370 = arith.constant 0 : index
    %c0_371 = arith.constant 0 : index
    %413 = vector.load %arg18[%c0_369, %c0_370, %c0_371] : memref<2x1x32xf32, #tpu.memory_space<vmem>>, vector<1x1x32xf32>
    %414 = vector.shape_cast %413 : vector<1x1x32xf32> to vector<1x32xf32>
    %415 = vector.broadcast %414 : vector<1x32xf32> to vector<8x32xf32>
    %416 = arith.addf %412, %415 : vector<8x32xf32>
    %417 = arith.addf %398, %416 : vector<8x32xf32>
    %cst_372 = arith.constant dense<0.000000e+00> : vector<8xf32>
    %418 = vector.multi_reduction <add>, %417, %cst_372 [1] : vector<8x32xf32> to vector<8xf32>
    %419 = vector.shape_cast %418 : vector<8xf32> to vector<8x1xf32>
    %cst_373 = arith.constant 3.200000e+01 : f32
    %420 = vector.broadcast %cst_373 : f32 to vector<8x1xf32>
    %421 = arith.divf %419, %420 : vector<8x1xf32>
    %422 = vector.broadcast %421 : vector<8x1xf32> to vector<8x32xf32>
    %423 = arith.subf %417, %422 : vector<8x32xf32>
    %424 = arith.mulf %423, %423 : vector<8x32xf32>
    %cst_374 = arith.constant dense<0.000000e+00> : vector<8xf32>
    %425 = vector.multi_reduction <add>, %424, %cst_374 [1] : vector<8x32xf32> to vector<8xf32>
    %426 = vector.shape_cast %425 : vector<8xf32> to vector<8x1xf32>
    %cst_375 = arith.constant 3.200000e+01 : f32
    %427 = vector.broadcast %cst_375 : f32 to vector<8x1xf32>
    %428 = arith.divf %426, %427 : vector<8x1xf32>
    %cst_376 = arith.constant 9.99999997E-7 : f32
    %429 = vector.broadcast %cst_376 : f32 to vector<8x1xf32>
    %430 = arith.addf %428, %429 : vector<8x1xf32>
    %431 = math.rsqrt %430 : vector<8x1xf32>
    %432 = vector.broadcast %431 : vector<8x1xf32> to vector<8x32xf32>
    %433 = arith.mulf %423, %432 : vector<8x32xf32>
    %c0_377 = arith.constant 0 : index
    %c2_378 = arith.constant 2 : index
    %c0_379 = arith.constant 0 : index
    %c0_380 = arith.constant 0 : index
    %434 = vector.load %arg13[%c0_377, %c2_378, %c0_379, %c0_380] : memref<2x3x1x32xf32, #tpu.memory_space<vmem>>, vector<1x1x1x32xf32>
    %435 = vector.shape_cast %434 : vector<1x1x1x32xf32> to vector<1x32xf32>
    %436 = vector.broadcast %435 : vector<1x32xf32> to vector<8x32xf32>
    %437 = arith.mulf %433, %436 : vector<8x32xf32>
    %c0_381 = arith.constant 0 : index
    %c2_382 = arith.constant 2 : index
    %c0_383 = arith.constant 0 : index
    %c0_384 = arith.constant 0 : index
    %438 = vector.load %arg14[%c0_381, %c2_382, %c0_383, %c0_384] : memref<2x3x1x32xf32, #tpu.memory_space<vmem>>, vector<1x1x1x32xf32>
    %439 = vector.shape_cast %438 : vector<1x1x1x32xf32> to vector<1x32xf32>
    %440 = vector.broadcast %439 : vector<1x32xf32> to vector<8x32xf32>
    %441 = arith.addf %437, %440 : vector<8x32xf32>
    %442 = arith.truncf %441 : vector<8x32xf32> to vector<8x32xbf16>
    %c1_385 = arith.constant 1 : index
    %c0_386 = arith.constant 0 : index
    %c0_387 = arith.constant 0 : index
    %c0_388 = arith.constant 0 : index
    %c0_389 = arith.constant 0 : index
    %443 = vector.load %arg5[%c1_385, %c0_386, %c0_387, %c0_388, %c0_389] : memref<2x2x4x32x8xbf16, #tpu.memory_space<vmem>>, vector<1x1x1x32x8xbf16>
    %444 = vector.shape_cast %443 : vector<1x1x1x32x8xbf16> to vector<32x8xbf16>
    %cst_390 = arith.constant dense<0.000000e+00> : vector<8x8xf32>
    %445 = tpu.matmul %442, %444, %cst_390 {dimension_numbers = #tpu.dot_dimension_numbers<[1], [0], [0], [1], [0, 0, 1, 1], [], []>} : vector<8x32xbf16>, vector<32x8xbf16>, vector<8x8xf32> -> vector<8x8xf32>
    %c1_391 = arith.constant 1 : index
    %c0_392 = arith.constant 0 : index
    %c0_393 = arith.constant 0 : index
    %c0_394 = arith.constant 0 : index
    %c0_395 = arith.constant 0 : index
    %446 = vector.load %arg6[%c1_391, %c0_392, %c0_393, %c0_394, %c0_395] : memref<2x2x4x1x8xf32, #tpu.memory_space<vmem>>, vector<1x1x1x1x8xf32>
    %447 = vector.shape_cast %446 : vector<1x1x1x1x8xf32> to vector<1x8xf32>
    %448 = vector.broadcast %447 : vector<1x8xf32> to vector<8x8xf32>
    %449 = arith.addf %445, %448 : vector<8x8xf32>
    %c1_396 = arith.constant 1 : index
    %c0_397 = arith.constant 0 : index
    %c0_398 = arith.constant 0 : index
    %c0_399 = arith.constant 0 : index
    %c0_400 = arith.constant 0 : index
    %450 = vector.load %arg7[%c1_396, %c0_397, %c0_398, %c0_399, %c0_400] : memref<2x2x4x32x8xbf16, #tpu.memory_space<vmem>>, vector<1x1x1x32x8xbf16>
    %451 = vector.shape_cast %450 : vector<1x1x1x32x8xbf16> to vector<32x8xbf16>
    %cst_401 = arith.constant dense<0.000000e+00> : vector<8x8xf32>
    %452 = tpu.matmul %442, %451, %cst_401 {dimension_numbers = #tpu.dot_dimension_numbers<[1], [0], [0], [1], [0, 0, 1, 1], [], []>} : vector<8x32xbf16>, vector<32x8xbf16>, vector<8x8xf32> -> vector<8x8xf32>
    %c1_402 = arith.constant 1 : index
    %c0_403 = arith.constant 0 : index
    %c0_404 = arith.constant 0 : index
    %c0_405 = arith.constant 0 : index
    %c0_406 = arith.constant 0 : index
    %453 = vector.load %arg8[%c1_402, %c0_403, %c0_404, %c0_405, %c0_406] : memref<2x2x4x1x8xf32, #tpu.memory_space<vmem>>, vector<1x1x1x1x8xf32>
    %454 = vector.shape_cast %453 : vector<1x1x1x1x8xf32> to vector<1x8xf32>
    %455 = vector.broadcast %454 : vector<1x8xf32> to vector<8x8xf32>
    %456 = arith.addf %452, %455 : vector<8x8xf32>
    %c1_407 = arith.constant 1 : index
    %c0_408 = arith.constant 0 : index
    %c0_409 = arith.constant 0 : index
    %c0_410 = arith.constant 0 : index
    %c0_411 = arith.constant 0 : index
    %457 = vector.load %arg9[%c1_407, %c0_408, %c0_409, %c0_410, %c0_411] : memref<2x2x4x32x8xbf16, #tpu.memory_space<vmem>>, vector<1x1x1x32x8xbf16>
    %458 = vector.shape_cast %457 : vector<1x1x1x32x8xbf16> to vector<32x8xbf16>
    %cst_412 = arith.constant dense<0.000000e+00> : vector<8x8xf32>
    %459 = tpu.matmul %442, %458, %cst_412 {dimension_numbers = #tpu.dot_dimension_numbers<[1], [0], [0], [1], [0, 0, 1, 1], [], []>} : vector<8x32xbf16>, vector<32x8xbf16>, vector<8x8xf32> -> vector<8x8xf32>
    %c1_413 = arith.constant 1 : index
    %c0_414 = arith.constant 0 : index
    %c0_415 = arith.constant 0 : index
    %c0_416 = arith.constant 0 : index
    %c0_417 = arith.constant 0 : index
    %460 = vector.load %arg10[%c1_413, %c0_414, %c0_415, %c0_416, %c0_417] : memref<2x2x4x1x8xf32, #tpu.memory_space<vmem>>, vector<1x1x1x1x8xf32>
    %461 = vector.shape_cast %460 : vector<1x1x1x1x8xf32> to vector<1x8xf32>
    %462 = vector.broadcast %461 : vector<1x8xf32> to vector<8x8xf32>
    %463 = arith.addf %459, %462 : vector<8x8xf32>
    %464 = arith.truncf %449 : vector<8x8xf32> to vector<8x8xbf16>
    %465 = arith.truncf %456 : vector<8x8xf32> to vector<8x8xbf16>
    %cst_418 = arith.constant dense<0.000000e+00> : vector<8x8xf32>
    %466 = tpu.matmul %464, %465, %cst_418 {dimension_numbers = #tpu.dot_dimension_numbers<[1], [1], [0], [0], [0, 0, 1, 0], [], []>} : vector<8x8xbf16>, vector<8x8xbf16>, vector<8x8xf32> -> vector<8x8xf32>
    %467 = arith.addf %466, %6 : vector<8x8xf32>
    %cst_419 = arith.constant dense<0xFF800000> : vector<8xf32>
    %468 = vector.multi_reduction <maximumf>, %467, %cst_419 [1] : vector<8x8xf32> to vector<8xf32>
    %469 = vector.shape_cast %468 : vector<8xf32> to vector<8x1xf32>
    %470 = vector.broadcast %469 : vector<8x1xf32> to vector<8x8xf32>
    %471 = arith.subf %467, %470 : vector<8x8xf32>
    %472 = math.exp %471 : vector<8x8xf32>
    %cst_420 = arith.constant dense<0.000000e+00> : vector<8xf32>
    %473 = vector.multi_reduction <add>, %472, %cst_420 [1] : vector<8x8xf32> to vector<8xf32>
    %474 = vector.shape_cast %473 : vector<8xf32> to vector<8x1xf32>
    %475 = tpu.reciprocal %474 : vector<8x1xf32> -> vector<8x1xf32>
    %476 = vector.broadcast %475 : vector<8x1xf32> to vector<8x8xf32>
    %477 = arith.mulf %472, %476 : vector<8x8xf32>
    %478 = arith.truncf %477 : vector<8x8xf32> to vector<8x8xbf16>
    %479 = arith.truncf %463 : vector<8x8xf32> to vector<8x8xbf16>
    %cst_421 = arith.constant dense<0.000000e+00> : vector<8x8xf32>
    %480 = tpu.matmul %478, %479, %cst_421 {dimension_numbers = #tpu.dot_dimension_numbers<[1], [0], [0], [1], [0, 0, 1, 1], [], []>} : vector<8x8xbf16>, vector<8x8xbf16>, vector<8x8xf32> -> vector<8x8xf32>
    %c1_422 = arith.constant 1 : index
    %c0_423 = arith.constant 0 : index
    %c1_424 = arith.constant 1 : index
    %c0_425 = arith.constant 0 : index
    %c0_426 = arith.constant 0 : index
    %481 = vector.load %arg5[%c1_422, %c0_423, %c1_424, %c0_425, %c0_426] : memref<2x2x4x32x8xbf16, #tpu.memory_space<vmem>>, vector<1x1x1x32x8xbf16>
    %482 = vector.shape_cast %481 : vector<1x1x1x32x8xbf16> to vector<32x8xbf16>
    %cst_427 = arith.constant dense<0.000000e+00> : vector<8x8xf32>
    %483 = tpu.matmul %442, %482, %cst_427 {dimension_numbers = #tpu.dot_dimension_numbers<[1], [0], [0], [1], [0, 0, 1, 1], [], []>} : vector<8x32xbf16>, vector<32x8xbf16>, vector<8x8xf32> -> vector<8x8xf32>
    %c1_428 = arith.constant 1 : index
    %c0_429 = arith.constant 0 : index
    %c1_430 = arith.constant 1 : index
    %c0_431 = arith.constant 0 : index
    %c0_432 = arith.constant 0 : index
    %484 = vector.load %arg6[%c1_428, %c0_429, %c1_430, %c0_431, %c0_432] : memref<2x2x4x1x8xf32, #tpu.memory_space<vmem>>, vector<1x1x1x1x8xf32>
    %485 = vector.shape_cast %484 : vector<1x1x1x1x8xf32> to vector<1x8xf32>
    %486 = vector.broadcast %485 : vector<1x8xf32> to vector<8x8xf32>
    %487 = arith.addf %483, %486 : vector<8x8xf32>
    %c1_433 = arith.constant 1 : index
    %c0_434 = arith.constant 0 : index
    %c1_435 = arith.constant 1 : index
    %c0_436 = arith.constant 0 : index
    %c0_437 = arith.constant 0 : index
    %488 = vector.load %arg7[%c1_433, %c0_434, %c1_435, %c0_436, %c0_437] : memref<2x2x4x32x8xbf16, #tpu.memory_space<vmem>>, vector<1x1x1x32x8xbf16>
    %489 = vector.shape_cast %488 : vector<1x1x1x32x8xbf16> to vector<32x8xbf16>
    %cst_438 = arith.constant dense<0.000000e+00> : vector<8x8xf32>
    %490 = tpu.matmul %442, %489, %cst_438 {dimension_numbers = #tpu.dot_dimension_numbers<[1], [0], [0], [1], [0, 0, 1, 1], [], []>} : vector<8x32xbf16>, vector<32x8xbf16>, vector<8x8xf32> -> vector<8x8xf32>
    %c1_439 = arith.constant 1 : index
    %c0_440 = arith.constant 0 : index
    %c1_441 = arith.constant 1 : index
    %c0_442 = arith.constant 0 : index
    %c0_443 = arith.constant 0 : index
    %491 = vector.load %arg8[%c1_439, %c0_440, %c1_441, %c0_442, %c0_443] : memref<2x2x4x1x8xf32, #tpu.memory_space<vmem>>, vector<1x1x1x1x8xf32>
    %492 = vector.shape_cast %491 : vector<1x1x1x1x8xf32> to vector<1x8xf32>
    %493 = vector.broadcast %492 : vector<1x8xf32> to vector<8x8xf32>
    %494 = arith.addf %490, %493 : vector<8x8xf32>
    %c1_444 = arith.constant 1 : index
    %c0_445 = arith.constant 0 : index
    %c1_446 = arith.constant 1 : index
    %c0_447 = arith.constant 0 : index
    %c0_448 = arith.constant 0 : index
    %495 = vector.load %arg9[%c1_444, %c0_445, %c1_446, %c0_447, %c0_448] : memref<2x2x4x32x8xbf16, #tpu.memory_space<vmem>>, vector<1x1x1x32x8xbf16>
    %496 = vector.shape_cast %495 : vector<1x1x1x32x8xbf16> to vector<32x8xbf16>
    %cst_449 = arith.constant dense<0.000000e+00> : vector<8x8xf32>
    %497 = tpu.matmul %442, %496, %cst_449 {dimension_numbers = #tpu.dot_dimension_numbers<[1], [0], [0], [1], [0, 0, 1, 1], [], []>} : vector<8x32xbf16>, vector<32x8xbf16>, vector<8x8xf32> -> vector<8x8xf32>
    %c1_450 = arith.constant 1 : index
    %c0_451 = arith.constant 0 : index
    %c1_452 = arith.constant 1 : index
    %c0_453 = arith.constant 0 : index
    %c0_454 = arith.constant 0 : index
    %498 = vector.load %arg10[%c1_450, %c0_451, %c1_452, %c0_453, %c0_454] : memref<2x2x4x1x8xf32, #tpu.memory_space<vmem>>, vector<1x1x1x1x8xf32>
    %499 = vector.shape_cast %498 : vector<1x1x1x1x8xf32> to vector<1x8xf32>
    %500 = vector.broadcast %499 : vector<1x8xf32> to vector<8x8xf32>
    %501 = arith.addf %497, %500 : vector<8x8xf32>
    %502 = arith.truncf %487 : vector<8x8xf32> to vector<8x8xbf16>
    %503 = arith.truncf %494 : vector<8x8xf32> to vector<8x8xbf16>
    %cst_455 = arith.constant dense<0.000000e+00> : vector<8x8xf32>
    %504 = tpu.matmul %502, %503, %cst_455 {dimension_numbers = #tpu.dot_dimension_numbers<[1], [1], [0], [0], [0, 0, 1, 0], [], []>} : vector<8x8xbf16>, vector<8x8xbf16>, vector<8x8xf32> -> vector<8x8xf32>
    %505 = arith.addf %504, %6 : vector<8x8xf32>
    %cst_456 = arith.constant dense<0xFF800000> : vector<8xf32>
    %506 = vector.multi_reduction <maximumf>, %505, %cst_456 [1] : vector<8x8xf32> to vector<8xf32>
    %507 = vector.shape_cast %506 : vector<8xf32> to vector<8x1xf32>
    %508 = vector.broadcast %507 : vector<8x1xf32> to vector<8x8xf32>
    %509 = arith.subf %505, %508 : vector<8x8xf32>
    %510 = math.exp %509 : vector<8x8xf32>
    %cst_457 = arith.constant dense<0.000000e+00> : vector<8xf32>
    %511 = vector.multi_reduction <add>, %510, %cst_457 [1] : vector<8x8xf32> to vector<8xf32>
    %512 = vector.shape_cast %511 : vector<8xf32> to vector<8x1xf32>
    %513 = tpu.reciprocal %512 : vector<8x1xf32> -> vector<8x1xf32>
    %514 = vector.broadcast %513 : vector<8x1xf32> to vector<8x8xf32>
    %515 = arith.mulf %510, %514 : vector<8x8xf32>
    %516 = arith.truncf %515 : vector<8x8xf32> to vector<8x8xbf16>
    %517 = arith.truncf %501 : vector<8x8xf32> to vector<8x8xbf16>
    %cst_458 = arith.constant dense<0.000000e+00> : vector<8x8xf32>
    %518 = tpu.matmul %516, %517, %cst_458 {dimension_numbers = #tpu.dot_dimension_numbers<[1], [0], [0], [1], [0, 0, 1, 1], [], []>} : vector<8x8xbf16>, vector<8x8xbf16>, vector<8x8xf32> -> vector<8x8xf32>
    %c1_459 = arith.constant 1 : index
    %c0_460 = arith.constant 0 : index
    %c2_461 = arith.constant 2 : index
    %c0_462 = arith.constant 0 : index
    %c0_463 = arith.constant 0 : index
    %519 = vector.load %arg5[%c1_459, %c0_460, %c2_461, %c0_462, %c0_463] : memref<2x2x4x32x8xbf16, #tpu.memory_space<vmem>>, vector<1x1x1x32x8xbf16>
    %520 = vector.shape_cast %519 : vector<1x1x1x32x8xbf16> to vector<32x8xbf16>
    %cst_464 = arith.constant dense<0.000000e+00> : vector<8x8xf32>
    %521 = tpu.matmul %442, %520, %cst_464 {dimension_numbers = #tpu.dot_dimension_numbers<[1], [0], [0], [1], [0, 0, 1, 1], [], []>} : vector<8x32xbf16>, vector<32x8xbf16>, vector<8x8xf32> -> vector<8x8xf32>
    %c1_465 = arith.constant 1 : index
    %c0_466 = arith.constant 0 : index
    %c2_467 = arith.constant 2 : index
    %c0_468 = arith.constant 0 : index
    %c0_469 = arith.constant 0 : index
    %522 = vector.load %arg6[%c1_465, %c0_466, %c2_467, %c0_468, %c0_469] : memref<2x2x4x1x8xf32, #tpu.memory_space<vmem>>, vector<1x1x1x1x8xf32>
    %523 = vector.shape_cast %522 : vector<1x1x1x1x8xf32> to vector<1x8xf32>
    %524 = vector.broadcast %523 : vector<1x8xf32> to vector<8x8xf32>
    %525 = arith.addf %521, %524 : vector<8x8xf32>
    %c1_470 = arith.constant 1 : index
    %c0_471 = arith.constant 0 : index
    %c2_472 = arith.constant 2 : index
    %c0_473 = arith.constant 0 : index
    %c0_474 = arith.constant 0 : index
    %526 = vector.load %arg7[%c1_470, %c0_471, %c2_472, %c0_473, %c0_474] : memref<2x2x4x32x8xbf16, #tpu.memory_space<vmem>>, vector<1x1x1x32x8xbf16>
    %527 = vector.shape_cast %526 : vector<1x1x1x32x8xbf16> to vector<32x8xbf16>
    %cst_475 = arith.constant dense<0.000000e+00> : vector<8x8xf32>
    %528 = tpu.matmul %442, %527, %cst_475 {dimension_numbers = #tpu.dot_dimension_numbers<[1], [0], [0], [1], [0, 0, 1, 1], [], []>} : vector<8x32xbf16>, vector<32x8xbf16>, vector<8x8xf32> -> vector<8x8xf32>
    %c1_476 = arith.constant 1 : index
    %c0_477 = arith.constant 0 : index
    %c2_478 = arith.constant 2 : index
    %c0_479 = arith.constant 0 : index
    %c0_480 = arith.constant 0 : index
    %529 = vector.load %arg8[%c1_476, %c0_477, %c2_478, %c0_479, %c0_480] : memref<2x2x4x1x8xf32, #tpu.memory_space<vmem>>, vector<1x1x1x1x8xf32>
    %530 = vector.shape_cast %529 : vector<1x1x1x1x8xf32> to vector<1x8xf32>
    %531 = vector.broadcast %530 : vector<1x8xf32> to vector<8x8xf32>
    %532 = arith.addf %528, %531 : vector<8x8xf32>
    %c1_481 = arith.constant 1 : index
    %c0_482 = arith.constant 0 : index
    %c2_483 = arith.constant 2 : index
    %c0_484 = arith.constant 0 : index
    %c0_485 = arith.constant 0 : index
    %533 = vector.load %arg9[%c1_481, %c0_482, %c2_483, %c0_484, %c0_485] : memref<2x2x4x32x8xbf16, #tpu.memory_space<vmem>>, vector<1x1x1x32x8xbf16>
    %534 = vector.shape_cast %533 : vector<1x1x1x32x8xbf16> to vector<32x8xbf16>
    %cst_486 = arith.constant dense<0.000000e+00> : vector<8x8xf32>
    %535 = tpu.matmul %442, %534, %cst_486 {dimension_numbers = #tpu.dot_dimension_numbers<[1], [0], [0], [1], [0, 0, 1, 1], [], []>} : vector<8x32xbf16>, vector<32x8xbf16>, vector<8x8xf32> -> vector<8x8xf32>
    %c1_487 = arith.constant 1 : index
    %c0_488 = arith.constant 0 : index
    %c2_489 = arith.constant 2 : index
    %c0_490 = arith.constant 0 : index
    %c0_491 = arith.constant 0 : index
    %536 = vector.load %arg10[%c1_487, %c0_488, %c2_489, %c0_490, %c0_491] : memref<2x2x4x1x8xf32, #tpu.memory_space<vmem>>, vector<1x1x1x1x8xf32>
    %537 = vector.shape_cast %536 : vector<1x1x1x1x8xf32> to vector<1x8xf32>
    %538 = vector.broadcast %537 : vector<1x8xf32> to vector<8x8xf32>
    %539 = arith.addf %535, %538 : vector<8x8xf32>
    %540 = arith.truncf %525 : vector<8x8xf32> to vector<8x8xbf16>
    %541 = arith.truncf %532 : vector<8x8xf32> to vector<8x8xbf16>
    %cst_492 = arith.constant dense<0.000000e+00> : vector<8x8xf32>
    %542 = tpu.matmul %540, %541, %cst_492 {dimension_numbers = #tpu.dot_dimension_numbers<[1], [1], [0], [0], [0, 0, 1, 0], [], []>} : vector<8x8xbf16>, vector<8x8xbf16>, vector<8x8xf32> -> vector<8x8xf32>
    %543 = arith.addf %542, %6 : vector<8x8xf32>
    %cst_493 = arith.constant dense<0xFF800000> : vector<8xf32>
    %544 = vector.multi_reduction <maximumf>, %543, %cst_493 [1] : vector<8x8xf32> to vector<8xf32>
    %545 = vector.shape_cast %544 : vector<8xf32> to vector<8x1xf32>
    %546 = vector.broadcast %545 : vector<8x1xf32> to vector<8x8xf32>
    %547 = arith.subf %543, %546 : vector<8x8xf32>
    %548 = math.exp %547 : vector<8x8xf32>
    %cst_494 = arith.constant dense<0.000000e+00> : vector<8xf32>
    %549 = vector.multi_reduction <add>, %548, %cst_494 [1] : vector<8x8xf32> to vector<8xf32>
    %550 = vector.shape_cast %549 : vector<8xf32> to vector<8x1xf32>
    %551 = tpu.reciprocal %550 : vector<8x1xf32> -> vector<8x1xf32>
    %552 = vector.broadcast %551 : vector<8x1xf32> to vector<8x8xf32>
    %553 = arith.mulf %548, %552 : vector<8x8xf32>
    %554 = arith.truncf %553 : vector<8x8xf32> to vector<8x8xbf16>
    %555 = arith.truncf %539 : vector<8x8xf32> to vector<8x8xbf16>
    %cst_495 = arith.constant dense<0.000000e+00> : vector<8x8xf32>
    %556 = tpu.matmul %554, %555, %cst_495 {dimension_numbers = #tpu.dot_dimension_numbers<[1], [0], [0], [1], [0, 0, 1, 1], [], []>} : vector<8x8xbf16>, vector<8x8xbf16>, vector<8x8xf32> -> vector<8x8xf32>
    %c1_496 = arith.constant 1 : index
    %c0_497 = arith.constant 0 : index
    %c3_498 = arith.constant 3 : index
    %c0_499 = arith.constant 0 : index
    %c0_500 = arith.constant 0 : index
    %557 = vector.load %arg5[%c1_496, %c0_497, %c3_498, %c0_499, %c0_500] : memref<2x2x4x32x8xbf16, #tpu.memory_space<vmem>>, vector<1x1x1x32x8xbf16>
    %558 = vector.shape_cast %557 : vector<1x1x1x32x8xbf16> to vector<32x8xbf16>
    %cst_501 = arith.constant dense<0.000000e+00> : vector<8x8xf32>
    %559 = tpu.matmul %442, %558, %cst_501 {dimension_numbers = #tpu.dot_dimension_numbers<[1], [0], [0], [1], [0, 0, 1, 1], [], []>} : vector<8x32xbf16>, vector<32x8xbf16>, vector<8x8xf32> -> vector<8x8xf32>
    %c1_502 = arith.constant 1 : index
    %c0_503 = arith.constant 0 : index
    %c3_504 = arith.constant 3 : index
    %c0_505 = arith.constant 0 : index
    %c0_506 = arith.constant 0 : index
    %560 = vector.load %arg6[%c1_502, %c0_503, %c3_504, %c0_505, %c0_506] : memref<2x2x4x1x8xf32, #tpu.memory_space<vmem>>, vector<1x1x1x1x8xf32>
    %561 = vector.shape_cast %560 : vector<1x1x1x1x8xf32> to vector<1x8xf32>
    %562 = vector.broadcast %561 : vector<1x8xf32> to vector<8x8xf32>
    %563 = arith.addf %559, %562 : vector<8x8xf32>
    %c1_507 = arith.constant 1 : index
    %c0_508 = arith.constant 0 : index
    %c3_509 = arith.constant 3 : index
    %c0_510 = arith.constant 0 : index
    %c0_511 = arith.constant 0 : index
    %564 = vector.load %arg7[%c1_507, %c0_508, %c3_509, %c0_510, %c0_511] : memref<2x2x4x32x8xbf16, #tpu.memory_space<vmem>>, vector<1x1x1x32x8xbf16>
    %565 = vector.shape_cast %564 : vector<1x1x1x32x8xbf16> to vector<32x8xbf16>
    %cst_512 = arith.constant dense<0.000000e+00> : vector<8x8xf32>
    %566 = tpu.matmul %442, %565, %cst_512 {dimension_numbers = #tpu.dot_dimension_numbers<[1], [0], [0], [1], [0, 0, 1, 1], [], []>} : vector<8x32xbf16>, vector<32x8xbf16>, vector<8x8xf32> -> vector<8x8xf32>
    %c1_513 = arith.constant 1 : index
    %c0_514 = arith.constant 0 : index
    %c3_515 = arith.constant 3 : index
    %c0_516 = arith.constant 0 : index
    %c0_517 = arith.constant 0 : index
    %567 = vector.load %arg8[%c1_513, %c0_514, %c3_515, %c0_516, %c0_517] : memref<2x2x4x1x8xf32, #tpu.memory_space<vmem>>, vector<1x1x1x1x8xf32>
    %568 = vector.shape_cast %567 : vector<1x1x1x1x8xf32> to vector<1x8xf32>
    %569 = vector.broadcast %568 : vector<1x8xf32> to vector<8x8xf32>
    %570 = arith.addf %566, %569 : vector<8x8xf32>
    %c1_518 = arith.constant 1 : index
    %c0_519 = arith.constant 0 : index
    %c3_520 = arith.constant 3 : index
    %c0_521 = arith.constant 0 : index
    %c0_522 = arith.constant 0 : index
    %571 = vector.load %arg9[%c1_518, %c0_519, %c3_520, %c0_521, %c0_522] : memref<2x2x4x32x8xbf16, #tpu.memory_space<vmem>>, vector<1x1x1x32x8xbf16>
    %572 = vector.shape_cast %571 : vector<1x1x1x32x8xbf16> to vector<32x8xbf16>
    %cst_523 = arith.constant dense<0.000000e+00> : vector<8x8xf32>
    %573 = tpu.matmul %442, %572, %cst_523 {dimension_numbers = #tpu.dot_dimension_numbers<[1], [0], [0], [1], [0, 0, 1, 1], [], []>} : vector<8x32xbf16>, vector<32x8xbf16>, vector<8x8xf32> -> vector<8x8xf32>
    %c1_524 = arith.constant 1 : index
    %c0_525 = arith.constant 0 : index
    %c3_526 = arith.constant 3 : index
    %c0_527 = arith.constant 0 : index
    %c0_528 = arith.constant 0 : index
    %574 = vector.load %arg10[%c1_524, %c0_525, %c3_526, %c0_527, %c0_528] : memref<2x2x4x1x8xf32, #tpu.memory_space<vmem>>, vector<1x1x1x1x8xf32>
    %575 = vector.shape_cast %574 : vector<1x1x1x1x8xf32> to vector<1x8xf32>
    %576 = vector.broadcast %575 : vector<1x8xf32> to vector<8x8xf32>
    %577 = arith.addf %573, %576 : vector<8x8xf32>
    %578 = arith.truncf %563 : vector<8x8xf32> to vector<8x8xbf16>
    %579 = arith.truncf %570 : vector<8x8xf32> to vector<8x8xbf16>
    %cst_529 = arith.constant dense<0.000000e+00> : vector<8x8xf32>
    %580 = tpu.matmul %578, %579, %cst_529 {dimension_numbers = #tpu.dot_dimension_numbers<[1], [1], [0], [0], [0, 0, 1, 0], [], []>} : vector<8x8xbf16>, vector<8x8xbf16>, vector<8x8xf32> -> vector<8x8xf32>
    %581 = arith.addf %580, %6 : vector<8x8xf32>
    %cst_530 = arith.constant dense<0xFF800000> : vector<8xf32>
    %582 = vector.multi_reduction <maximumf>, %581, %cst_530 [1] : vector<8x8xf32> to vector<8xf32>
    %583 = vector.shape_cast %582 : vector<8xf32> to vector<8x1xf32>
    %584 = vector.broadcast %583 : vector<8x1xf32> to vector<8x8xf32>
    %585 = arith.subf %581, %584 : vector<8x8xf32>
    %586 = math.exp %585 : vector<8x8xf32>
    %cst_531 = arith.constant dense<0.000000e+00> : vector<8xf32>
    %587 = vector.multi_reduction <add>, %586, %cst_531 [1] : vector<8x8xf32> to vector<8xf32>
    %588 = vector.shape_cast %587 : vector<8xf32> to vector<8x1xf32>
    %589 = tpu.reciprocal %588 : vector<8x1xf32> -> vector<8x1xf32>
    %590 = vector.broadcast %589 : vector<8x1xf32> to vector<8x8xf32>
    %591 = arith.mulf %586, %590 : vector<8x8xf32>
    %592 = arith.truncf %591 : vector<8x8xf32> to vector<8x8xbf16>
    %593 = arith.truncf %577 : vector<8x8xf32> to vector<8x8xbf16>
    %cst_532 = arith.constant dense<0.000000e+00> : vector<8x8xf32>
    %594 = tpu.matmul %592, %593, %cst_532 {dimension_numbers = #tpu.dot_dimension_numbers<[1], [0], [0], [1], [0, 0, 1, 1], [], []>} : vector<8x8xbf16>, vector<8x8xbf16>, vector<8x8xf32> -> vector<8x8xf32>
    %595 = vector.shape_cast %477 : vector<8x8xf32> to vector<1x8x8xf32>
    %596 = vector.shape_cast %515 : vector<8x8xf32> to vector<1x8x8xf32>
    %597 = vector.shape_cast %553 : vector<8x8xf32> to vector<1x8x8xf32>
    %598 = vector.shape_cast %591 : vector<8x8xf32> to vector<1x8x8xf32>
    %599 = tpu.concatenate %595, %596, %597, %598 in 0 : vector<1x8x8xf32>, vector<1x8x8xf32>, vector<1x8x8xf32>, vector<1x8x8xf32> -> vector<4x8x8xf32>
    %c0_533 = arith.constant 0 : index
    %c1_534 = arith.constant 1 : index
    %c0_535 = arith.constant 0 : index
    %c0_536 = arith.constant 0 : index
    %c0_537 = arith.constant 0 : index
    %600 = vector.load %arg22[%c0_533, %c1_534, %c0_535, %c0_536, %c0_537] : memref<1x2x4x8x8xf32, #tpu.memory_space<vmem>>, vector<1x1x4x8x8xf32>
    %601 = vector.shape_cast %600 : vector<1x1x4x8x8xf32> to vector<4x8x8xf32>
    %602 = vector.shape_cast %599 : vector<4x8x8xf32> to vector<1x1x4x8x8xf32>
    tpu.vector_store %arg22[%c0_533, %c1_534, %c0_535, %c0_536, %c0_537], %602 {strides = array<i32>} : memref<1x2x4x8x8xf32, #tpu.memory_space<vmem>>, vector<1x1x4x8x8xf32>,
    %603 = tpu.concatenate %480, %518, %556, %594 in 1 : vector<8x8xf32>, vector<8x8xf32>, vector<8x8xf32>, vector<8x8xf32> -> vector<8x32xf32>
    %604 = arith.truncf %603 : vector<8x32xf32> to vector<8x32xbf16>
    %c1_538 = arith.constant 1 : index
    %c0_539 = arith.constant 0 : index
    %c0_540 = arith.constant 0 : index
    %c0_541 = arith.constant 0 : index
    %605 = vector.load %arg11[%c1_538, %c0_539, %c0_540, %c0_541] : memref<2x2x32x32xbf16, #tpu.memory_space<vmem>>, vector<1x1x32x32xbf16>
    %606 = vector.shape_cast %605 : vector<1x1x32x32xbf16> to vector<32x32xbf16>
    %cst_542 = arith.constant dense<0.000000e+00> : vector<8x32xf32>
    %607 = tpu.matmul %604, %606, %cst_542 {dimension_numbers = #tpu.dot_dimension_numbers<[1], [0], [0], [1], [0, 0, 1, 1], [], []>} : vector<8x32xbf16>, vector<32x32xbf16>, vector<8x32xf32> -> vector<8x32xf32>
    %c1_543 = arith.constant 1 : index
    %c0_544 = arith.constant 0 : index
    %c0_545 = arith.constant 0 : index
    %c0_546 = arith.constant 0 : index
    %608 = vector.load %arg12[%c1_543, %c0_544, %c0_545, %c0_546] : memref<2x2x1x32xf32, #tpu.memory_space<vmem>>, vector<1x1x1x32xf32>
    %609 = vector.shape_cast %608 : vector<1x1x1x32xf32> to vector<1x32xf32>
    %610 = vector.broadcast %609 : vector<1x32xf32> to vector<8x32xf32>
    %611 = arith.addf %607, %610 : vector<8x32xf32>
    %612 = arith.addf %441, %611 : vector<8x32xf32>
    %cst_547 = arith.constant dense<0.000000e+00> : vector<8xf32>
    %613 = vector.multi_reduction <add>, %612, %cst_547 [1] : vector<8x32xf32> to vector<8xf32>
    %614 = vector.shape_cast %613 : vector<8xf32> to vector<8x1xf32>
    %cst_548 = arith.constant 3.200000e+01 : f32
    %615 = vector.broadcast %cst_548 : f32 to vector<8x1xf32>
    %616 = arith.divf %614, %615 : vector<8x1xf32>
    %617 = vector.broadcast %616 : vector<8x1xf32> to vector<8x32xf32>
    %618 = arith.subf %612, %617 : vector<8x32xf32>
    %619 = arith.mulf %618, %618 : vector<8x32xf32>
    %cst_549 = arith.constant dense<0.000000e+00> : vector<8xf32>
    %620 = vector.multi_reduction <add>, %619, %cst_549 [1] : vector<8x32xf32> to vector<8xf32>
    %621 = vector.shape_cast %620 : vector<8xf32> to vector<8x1xf32>
    %cst_550 = arith.constant 3.200000e+01 : f32
    %622 = vector.broadcast %cst_550 : f32 to vector<8x1xf32>
    %623 = arith.divf %621, %622 : vector<8x1xf32>
    %cst_551 = arith.constant 9.99999997E-7 : f32
    %624 = vector.broadcast %cst_551 : f32 to vector<8x1xf32>
    %625 = arith.addf %623, %624 : vector<8x1xf32>
    %626 = math.rsqrt %625 : vector<8x1xf32>
    %627 = vector.broadcast %626 : vector<8x1xf32> to vector<8x32xf32>
    %628 = arith.mulf %618, %627 : vector<8x32xf32>
    %c1_552 = arith.constant 1 : index
    %c0_553 = arith.constant 0 : index
    %c0_554 = arith.constant 0 : index
    %c0_555 = arith.constant 0 : index
    %629 = vector.load %arg13[%c1_552, %c0_553, %c0_554, %c0_555] : memref<2x3x1x32xf32, #tpu.memory_space<vmem>>, vector<1x1x1x32xf32>
    %630 = vector.shape_cast %629 : vector<1x1x1x32xf32> to vector<1x32xf32>
    %631 = vector.broadcast %630 : vector<1x32xf32> to vector<8x32xf32>
    %632 = arith.mulf %628, %631 : vector<8x32xf32>
    %c1_556 = arith.constant 1 : index
    %c0_557 = arith.constant 0 : index
    %c0_558 = arith.constant 0 : index
    %c0_559 = arith.constant 0 : index
    %633 = vector.load %arg14[%c1_556, %c0_557, %c0_558, %c0_559] : memref<2x3x1x32xf32, #tpu.memory_space<vmem>>, vector<1x1x1x32xf32>
    %634 = vector.shape_cast %633 : vector<1x1x1x32xf32> to vector<1x32xf32>
    %635 = vector.broadcast %634 : vector<1x32xf32> to vector<8x32xf32>
    %636 = arith.addf %632, %635 : vector<8x32xf32>
    %637 = arith.truncf %636 : vector<8x32xf32> to vector<8x32xbf16>
    %c1_560 = arith.constant 1 : index
    %c1_561 = arith.constant 1 : index
    %c0_562 = arith.constant 0 : index
    %c0_563 = arith.constant 0 : index
    %c0_564 = arith.constant 0 : index
    %638 = vector.load %arg5[%c1_560, %c1_561, %c0_562, %c0_563, %c0_564] : memref<2x2x4x32x8xbf16, #tpu.memory_space<vmem>>, vector<1x1x1x32x8xbf16>
    %639 = vector.shape_cast %638 : vector<1x1x1x32x8xbf16> to vector<32x8xbf16>
    %cst_565 = arith.constant dense<0.000000e+00> : vector<8x8xf32>
    %640 = tpu.matmul %637, %639, %cst_565 {dimension_numbers = #tpu.dot_dimension_numbers<[1], [0], [0], [1], [0, 0, 1, 1], [], []>} : vector<8x32xbf16>, vector<32x8xbf16>, vector<8x8xf32> -> vector<8x8xf32>
    %c1_566 = arith.constant 1 : index
    %c1_567 = arith.constant 1 : index
    %c0_568 = arith.constant 0 : index
    %c0_569 = arith.constant 0 : index
    %c0_570 = arith.constant 0 : index
    %641 = vector.load %arg6[%c1_566, %c1_567, %c0_568, %c0_569, %c0_570] : memref<2x2x4x1x8xf32, #tpu.memory_space<vmem>>, vector<1x1x1x1x8xf32>
    %642 = vector.shape_cast %641 : vector<1x1x1x1x8xf32> to vector<1x8xf32>
    %643 = vector.broadcast %642 : vector<1x8xf32> to vector<8x8xf32>
    %644 = arith.addf %640, %643 : vector<8x8xf32>
    %c1_571 = arith.constant 1 : index
    %c1_572 = arith.constant 1 : index
    %c0_573 = arith.constant 0 : index
    %c0_574 = arith.constant 0 : index
    %c0_575 = arith.constant 0 : index
    %645 = vector.load %arg7[%c1_571, %c1_572, %c0_573, %c0_574, %c0_575] : memref<2x2x4x32x8xbf16, #tpu.memory_space<vmem>>, vector<1x1x1x32x8xbf16>
    %646 = vector.shape_cast %645 : vector<1x1x1x32x8xbf16> to vector<32x8xbf16>
    %cst_576 = arith.constant dense<0.000000e+00> : vector<8x8xf32>
    %647 = tpu.matmul %4, %646, %cst_576 {dimension_numbers = #tpu.dot_dimension_numbers<[1], [0], [0], [1], [0, 0, 1, 1], [], []>} : vector<8x32xbf16>, vector<32x8xbf16>, vector<8x8xf32> -> vector<8x8xf32>
    %c1_577 = arith.constant 1 : index
    %c1_578 = arith.constant 1 : index
    %c0_579 = arith.constant 0 : index
    %c0_580 = arith.constant 0 : index
    %c0_581 = arith.constant 0 : index
    %648 = vector.load %arg8[%c1_577, %c1_578, %c0_579, %c0_580, %c0_581] : memref<2x2x4x1x8xf32, #tpu.memory_space<vmem>>, vector<1x1x1x1x8xf32>
    %649 = vector.shape_cast %648 : vector<1x1x1x1x8xf32> to vector<1x8xf32>
    %650 = vector.broadcast %649 : vector<1x8xf32> to vector<8x8xf32>
    %651 = arith.addf %647, %650 : vector<8x8xf32>
    %c1_582 = arith.constant 1 : index
    %c1_583 = arith.constant 1 : index
    %c0_584 = arith.constant 0 : index
    %c0_585 = arith.constant 0 : index
    %c0_586 = arith.constant 0 : index
    %652 = vector.load %arg9[%c1_582, %c1_583, %c0_584, %c0_585, %c0_586] : memref<2x2x4x32x8xbf16, #tpu.memory_space<vmem>>, vector<1x1x1x32x8xbf16>
    %653 = vector.shape_cast %652 : vector<1x1x1x32x8xbf16> to vector<32x8xbf16>
    %cst_587 = arith.constant dense<0.000000e+00> : vector<8x8xf32>
    %654 = tpu.matmul %4, %653, %cst_587 {dimension_numbers = #tpu.dot_dimension_numbers<[1], [0], [0], [1], [0, 0, 1, 1], [], []>} : vector<8x32xbf16>, vector<32x8xbf16>, vector<8x8xf32> -> vector<8x8xf32>
    %c1_588 = arith.constant 1 : index
    %c1_589 = arith.constant 1 : index
    %c0_590 = arith.constant 0 : index
    %c0_591 = arith.constant 0 : index
    %c0_592 = arith.constant 0 : index
    %655 = vector.load %arg10[%c1_588, %c1_589, %c0_590, %c0_591, %c0_592] : memref<2x2x4x1x8xf32, #tpu.memory_space<vmem>>, vector<1x1x1x1x8xf32>
    %656 = vector.shape_cast %655 : vector<1x1x1x1x8xf32> to vector<1x8xf32>
    %657 = vector.broadcast %656 : vector<1x8xf32> to vector<8x8xf32>
    %658 = arith.addf %654, %657 : vector<8x8xf32>
    %659 = arith.truncf %644 : vector<8x8xf32> to vector<8x8xbf16>
    %660 = arith.truncf %651 : vector<8x8xf32> to vector<8x8xbf16>
    %cst_593 = arith.constant dense<0.000000e+00> : vector<8x8xf32>
    %661 = tpu.matmul %659, %660, %cst_593 {dimension_numbers = #tpu.dot_dimension_numbers<[1], [1], [0], [0], [0, 0, 1, 0], [], []>} : vector<8x8xbf16>, vector<8x8xbf16>, vector<8x8xf32> -> vector<8x8xf32>
    %662 = arith.addf %661, %8 : vector<8x8xf32>
    %cst_594 = arith.constant dense<0xFF800000> : vector<8xf32>
    %663 = vector.multi_reduction <maximumf>, %662, %cst_594 [1] : vector<8x8xf32> to vector<8xf32>
    %664 = vector.shape_cast %663 : vector<8xf32> to vector<8x1xf32>
    %665 = vector.broadcast %664 : vector<8x1xf32> to vector<8x8xf32>
    %666 = arith.subf %662, %665 : vector<8x8xf32>
    %667 = math.exp %666 : vector<8x8xf32>
    %cst_595 = arith.constant dense<0.000000e+00> : vector<8xf32>
    %668 = vector.multi_reduction <add>, %667, %cst_595 [1] : vector<8x8xf32> to vector<8xf32>
    %669 = vector.shape_cast %668 : vector<8xf32> to vector<8x1xf32>
    %670 = tpu.reciprocal %669 : vector<8x1xf32> -> vector<8x1xf32>
    %671 = vector.broadcast %670 : vector<8x1xf32> to vector<8x8xf32>
    %672 = arith.mulf %667, %671 : vector<8x8xf32>
    %673 = arith.truncf %672 : vector<8x8xf32> to vector<8x8xbf16>
    %674 = arith.truncf %658 : vector<8x8xf32> to vector<8x8xbf16>
    %cst_596 = arith.constant dense<0.000000e+00> : vector<8x8xf32>
    %675 = tpu.matmul %673, %674, %cst_596 {dimension_numbers = #tpu.dot_dimension_numbers<[1], [0], [0], [1], [0, 0, 1, 1], [], []>} : vector<8x8xbf16>, vector<8x8xbf16>, vector<8x8xf32> -> vector<8x8xf32>
    %c1_597 = arith.constant 1 : index
    %c1_598 = arith.constant 1 : index
    %c1_599 = arith.constant 1 : index
    %c0_600 = arith.constant 0 : index
    %c0_601 = arith.constant 0 : index
    %676 = vector.load %arg5[%c1_597, %c1_598, %c1_599, %c0_600, %c0_601] : memref<2x2x4x32x8xbf16, #tpu.memory_space<vmem>>, vector<1x1x1x32x8xbf16>
    %677 = vector.shape_cast %676 : vector<1x1x1x32x8xbf16> to vector<32x8xbf16>
    %cst_602 = arith.constant dense<0.000000e+00> : vector<8x8xf32>
    %678 = tpu.matmul %637, %677, %cst_602 {dimension_numbers = #tpu.dot_dimension_numbers<[1], [0], [0], [1], [0, 0, 1, 1], [], []>} : vector<8x32xbf16>, vector<32x8xbf16>, vector<8x8xf32> -> vector<8x8xf32>
    %c1_603 = arith.constant 1 : index
    %c1_604 = arith.constant 1 : index
    %c1_605 = arith.constant 1 : index
    %c0_606 = arith.constant 0 : index
    %c0_607 = arith.constant 0 : index
    %679 = vector.load %arg6[%c1_603, %c1_604, %c1_605, %c0_606, %c0_607] : memref<2x2x4x1x8xf32, #tpu.memory_space<vmem>>, vector<1x1x1x1x8xf32>
    %680 = vector.shape_cast %679 : vector<1x1x1x1x8xf32> to vector<1x8xf32>
    %681 = vector.broadcast %680 : vector<1x8xf32> to vector<8x8xf32>
    %682 = arith.addf %678, %681 : vector<8x8xf32>
    %c1_608 = arith.constant 1 : index
    %c1_609 = arith.constant 1 : index
    %c1_610 = arith.constant 1 : index
    %c0_611 = arith.constant 0 : index
    %c0_612 = arith.constant 0 : index
    %683 = vector.load %arg7[%c1_608, %c1_609, %c1_610, %c0_611, %c0_612] : memref<2x2x4x32x8xbf16, #tpu.memory_space<vmem>>, vector<1x1x1x32x8xbf16>
    %684 = vector.shape_cast %683 : vector<1x1x1x32x8xbf16> to vector<32x8xbf16>
    %cst_613 = arith.constant dense<0.000000e+00> : vector<8x8xf32>
    %685 = tpu.matmul %4, %684, %cst_613 {dimension_numbers = #tpu.dot_dimension_numbers<[1], [0], [0], [1], [0, 0, 1, 1], [], []>} : vector<8x32xbf16>, vector<32x8xbf16>, vector<8x8xf32> -> vector<8x8xf32>
    %c1_614 = arith.constant 1 : index
    %c1_615 = arith.constant 1 : index
    %c1_616 = arith.constant 1 : index
    %c0_617 = arith.constant 0 : index
    %c0_618 = arith.constant 0 : index
    %686 = vector.load %arg8[%c1_614, %c1_615, %c1_616, %c0_617, %c0_618] : memref<2x2x4x1x8xf32, #tpu.memory_space<vmem>>, vector<1x1x1x1x8xf32>
    %687 = vector.shape_cast %686 : vector<1x1x1x1x8xf32> to vector<1x8xf32>
    %688 = vector.broadcast %687 : vector<1x8xf32> to vector<8x8xf32>
    %689 = arith.addf %685, %688 : vector<8x8xf32>
    %c1_619 = arith.constant 1 : index
    %c1_620 = arith.constant 1 : index
    %c1_621 = arith.constant 1 : index
    %c0_622 = arith.constant 0 : index
    %c0_623 = arith.constant 0 : index
    %690 = vector.load %arg9[%c1_619, %c1_620, %c1_621, %c0_622, %c0_623] : memref<2x2x4x32x8xbf16, #tpu.memory_space<vmem>>, vector<1x1x1x32x8xbf16>
    %691 = vector.shape_cast %690 : vector<1x1x1x32x8xbf16> to vector<32x8xbf16>
    %cst_624 = arith.constant dense<0.000000e+00> : vector<8x8xf32>
    %692 = tpu.matmul %4, %691, %cst_624 {dimension_numbers = #tpu.dot_dimension_numbers<[1], [0], [0], [1], [0, 0, 1, 1], [], []>} : vector<8x32xbf16>, vector<32x8xbf16>, vector<8x8xf32> -> vector<8x8xf32>
    %c1_625 = arith.constant 1 : index
    %c1_626 = arith.constant 1 : index
    %c1_627 = arith.constant 1 : index
    %c0_628 = arith.constant 0 : index
    %c0_629 = arith.constant 0 : index
    %693 = vector.load %arg10[%c1_625, %c1_626, %c1_627, %c0_628, %c0_629] : memref<2x2x4x1x8xf32, #tpu.memory_space<vmem>>, vector<1x1x1x1x8xf32>
    %694 = vector.shape_cast %693 : vector<1x1x1x1x8xf32> to vector<1x8xf32>
    %695 = vector.broadcast %694 : vector<1x8xf32> to vector<8x8xf32>
    %696 = arith.addf %692, %695 : vector<8x8xf32>
    %697 = arith.truncf %682 : vector<8x8xf32> to vector<8x8xbf16>
    %698 = arith.truncf %689 : vector<8x8xf32> to vector<8x8xbf16>
    %cst_630 = arith.constant dense<0.000000e+00> : vector<8x8xf32>
    %699 = tpu.matmul %697, %698, %cst_630 {dimension_numbers = #tpu.dot_dimension_numbers<[1], [1], [0], [0], [0, 0, 1, 0], [], []>} : vector<8x8xbf16>, vector<8x8xbf16>, vector<8x8xf32> -> vector<8x8xf32>
    %700 = arith.addf %699, %8 : vector<8x8xf32>
    %cst_631 = arith.constant dense<0xFF800000> : vector<8xf32>
    %701 = vector.multi_reduction <maximumf>, %700, %cst_631 [1] : vector<8x8xf32> to vector<8xf32>
    %702 = vector.shape_cast %701 : vector<8xf32> to vector<8x1xf32>
    %703 = vector.broadcast %702 : vector<8x1xf32> to vector<8x8xf32>
    %704 = arith.subf %700, %703 : vector<8x8xf32>
    %705 = math.exp %704 : vector<8x8xf32>
    %cst_632 = arith.constant dense<0.000000e+00> : vector<8xf32>
    %706 = vector.multi_reduction <add>, %705, %cst_632 [1] : vector<8x8xf32> to vector<8xf32>
    %707 = vector.shape_cast %706 : vector<8xf32> to vector<8x1xf32>
    %708 = tpu.reciprocal %707 : vector<8x1xf32> -> vector<8x1xf32>
    %709 = vector.broadcast %708 : vector<8x1xf32> to vector<8x8xf32>
    %710 = arith.mulf %705, %709 : vector<8x8xf32>
    %711 = arith.truncf %710 : vector<8x8xf32> to vector<8x8xbf16>
    %712 = arith.truncf %696 : vector<8x8xf32> to vector<8x8xbf16>
    %cst_633 = arith.constant dense<0.000000e+00> : vector<8x8xf32>
    %713 = tpu.matmul %711, %712, %cst_633 {dimension_numbers = #tpu.dot_dimension_numbers<[1], [0], [0], [1], [0, 0, 1, 1], [], []>} : vector<8x8xbf16>, vector<8x8xbf16>, vector<8x8xf32> -> vector<8x8xf32>
    %c1_634 = arith.constant 1 : index
    %c1_635 = arith.constant 1 : index
    %c2_636 = arith.constant 2 : index
    %c0_637 = arith.constant 0 : index
    %c0_638 = arith.constant 0 : index
    %714 = vector.load %arg5[%c1_634, %c1_635, %c2_636, %c0_637, %c0_638] : memref<2x2x4x32x8xbf16, #tpu.memory_space<vmem>>, vector<1x1x1x32x8xbf16>
    %715 = vector.shape_cast %714 : vector<1x1x1x32x8xbf16> to vector<32x8xbf16>
    %cst_639 = arith.constant dense<0.000000e+00> : vector<8x8xf32>
    %716 = tpu.matmul %637, %715, %cst_639 {dimension_numbers = #tpu.dot_dimension_numbers<[1], [0], [0], [1], [0, 0, 1, 1], [], []>} : vector<8x32xbf16>, vector<32x8xbf16>, vector<8x8xf32> -> vector<8x8xf32>
    %c1_640 = arith.constant 1 : index
    %c1_641 = arith.constant 1 : index
    %c2_642 = arith.constant 2 : index
    %c0_643 = arith.constant 0 : index
    %c0_644 = arith.constant 0 : index
    %717 = vector.load %arg6[%c1_640, %c1_641, %c2_642, %c0_643, %c0_644] : memref<2x2x4x1x8xf32, #tpu.memory_space<vmem>>, vector<1x1x1x1x8xf32>
    %718 = vector.shape_cast %717 : vector<1x1x1x1x8xf32> to vector<1x8xf32>
    %719 = vector.broadcast %718 : vector<1x8xf32> to vector<8x8xf32>
    %720 = arith.addf %716, %719 : vector<8x8xf32>
    %c1_645 = arith.constant 1 : index
    %c1_646 = arith.constant 1 : index
    %c2_647 = arith.constant 2 : index
    %c0_648 = arith.constant 0 : index
    %c0_649 = arith.constant 0 : index
    %721 = vector.load %arg7[%c1_645, %c1_646, %c2_647, %c0_648, %c0_649] : memref<2x2x4x32x8xbf16, #tpu.memory_space<vmem>>, vector<1x1x1x32x8xbf16>
    %722 = vector.shape_cast %721 : vector<1x1x1x32x8xbf16> to vector<32x8xbf16>
    %cst_650 = arith.constant dense<0.000000e+00> : vector<8x8xf32>
    %723 = tpu.matmul %4, %722, %cst_650 {dimension_numbers = #tpu.dot_dimension_numbers<[1], [0], [0], [1], [0, 0, 1, 1], [], []>} : vector<8x32xbf16>, vector<32x8xbf16>, vector<8x8xf32> -> vector<8x8xf32>
    %c1_651 = arith.constant 1 : index
    %c1_652 = arith.constant 1 : index
    %c2_653 = arith.constant 2 : index
    %c0_654 = arith.constant 0 : index
    %c0_655 = arith.constant 0 : index
    %724 = vector.load %arg8[%c1_651, %c1_652, %c2_653, %c0_654, %c0_655] : memref<2x2x4x1x8xf32, #tpu.memory_space<vmem>>, vector<1x1x1x1x8xf32>
    %725 = vector.shape_cast %724 : vector<1x1x1x1x8xf32> to vector<1x8xf32>
    %726 = vector.broadcast %725 : vector<1x8xf32> to vector<8x8xf32>
    %727 = arith.addf %723, %726 : vector<8x8xf32>
    %c1_656 = arith.constant 1 : index
    %c1_657 = arith.constant 1 : index
    %c2_658 = arith.constant 2 : index
    %c0_659 = arith.constant 0 : index
    %c0_660 = arith.constant 0 : index
    %728 = vector.load %arg9[%c1_656, %c1_657, %c2_658, %c0_659, %c0_660] : memref<2x2x4x32x8xbf16, #tpu.memory_space<vmem>>, vector<1x1x1x32x8xbf16>
    %729 = vector.shape_cast %728 : vector<1x1x1x32x8xbf16> to vector<32x8xbf16>
    %cst_661 = arith.constant dense<0.000000e+00> : vector<8x8xf32>
    %730 = tpu.matmul %4, %729, %cst_661 {dimension_numbers = #tpu.dot_dimension_numbers<[1], [0], [0], [1], [0, 0, 1, 1], [], []>} : vector<8x32xbf16>, vector<32x8xbf16>, vector<8x8xf32> -> vector<8x8xf32>
    %c1_662 = arith.constant 1 : index
    %c1_663 = arith.constant 1 : index
    %c2_664 = arith.constant 2 : index
    %c0_665 = arith.constant 0 : index
    %c0_666 = arith.constant 0 : index
    %731 = vector.load %arg10[%c1_662, %c1_663, %c2_664, %c0_665, %c0_666] : memref<2x2x4x1x8xf32, #tpu.memory_space<vmem>>, vector<1x1x1x1x8xf32>
    %732 = vector.shape_cast %731 : vector<1x1x1x1x8xf32> to vector<1x8xf32>
    %733 = vector.broadcast %732 : vector<1x8xf32> to vector<8x8xf32>
    %734 = arith.addf %730, %733 : vector<8x8xf32>
    %735 = arith.truncf %720 : vector<8x8xf32> to vector<8x8xbf16>
    %736 = arith.truncf %727 : vector<8x8xf32> to vector<8x8xbf16>
    %cst_667 = arith.constant dense<0.000000e+00> : vector<8x8xf32>
    %737 = tpu.matmul %735, %736, %cst_667 {dimension_numbers = #tpu.dot_dimension_numbers<[1], [1], [0], [0], [0, 0, 1, 0], [], []>} : vector<8x8xbf16>, vector<8x8xbf16>, vector<8x8xf32> -> vector<8x8xf32>
    %738 = arith.addf %737, %8 : vector<8x8xf32>
    %cst_668 = arith.constant dense<0xFF800000> : vector<8xf32>
    %739 = vector.multi_reduction <maximumf>, %738, %cst_668 [1] : vector<8x8xf32> to vector<8xf32>
    %740 = vector.shape_cast %739 : vector<8xf32> to vector<8x1xf32>
    %741 = vector.broadcast %740 : vector<8x1xf32> to vector<8x8xf32>
    %742 = arith.subf %738, %741 : vector<8x8xf32>
    %743 = math.exp %742 : vector<8x8xf32>
    %cst_669 = arith.constant dense<0.000000e+00> : vector<8xf32>
    %744 = vector.multi_reduction <add>, %743, %cst_669 [1] : vector<8x8xf32> to vector<8xf32>
    %745 = vector.shape_cast %744 : vector<8xf32> to vector<8x1xf32>
    %746 = tpu.reciprocal %745 : vector<8x1xf32> -> vector<8x1xf32>
    %747 = vector.broadcast %746 : vector<8x1xf32> to vector<8x8xf32>
    %748 = arith.mulf %743, %747 : vector<8x8xf32>
    %749 = arith.truncf %748 : vector<8x8xf32> to vector<8x8xbf16>
    %750 = arith.truncf %734 : vector<8x8xf32> to vector<8x8xbf16>
    %cst_670 = arith.constant dense<0.000000e+00> : vector<8x8xf32>
    %751 = tpu.matmul %749, %750, %cst_670 {dimension_numbers = #tpu.dot_dimension_numbers<[1], [0], [0], [1], [0, 0, 1, 1], [], []>} : vector<8x8xbf16>, vector<8x8xbf16>, vector<8x8xf32> -> vector<8x8xf32>
    %c1_671 = arith.constant 1 : index
    %c1_672 = arith.constant 1 : index
    %c3_673 = arith.constant 3 : index
    %c0_674 = arith.constant 0 : index
    %c0_675 = arith.constant 0 : index
    %752 = vector.load %arg5[%c1_671, %c1_672, %c3_673, %c0_674, %c0_675] : memref<2x2x4x32x8xbf16, #tpu.memory_space<vmem>>, vector<1x1x1x32x8xbf16>
    %753 = vector.shape_cast %752 : vector<1x1x1x32x8xbf16> to vector<32x8xbf16>
    %cst_676 = arith.constant dense<0.000000e+00> : vector<8x8xf32>
    %754 = tpu.matmul %637, %753, %cst_676 {dimension_numbers = #tpu.dot_dimension_numbers<[1], [0], [0], [1], [0, 0, 1, 1], [], []>} : vector<8x32xbf16>, vector<32x8xbf16>, vector<8x8xf32> -> vector<8x8xf32>
    %c1_677 = arith.constant 1 : index
    %c1_678 = arith.constant 1 : index
    %c3_679 = arith.constant 3 : index
    %c0_680 = arith.constant 0 : index
    %c0_681 = arith.constant 0 : index
    %755 = vector.load %arg6[%c1_677, %c1_678, %c3_679, %c0_680, %c0_681] : memref<2x2x4x1x8xf32, #tpu.memory_space<vmem>>, vector<1x1x1x1x8xf32>
    %756 = vector.shape_cast %755 : vector<1x1x1x1x8xf32> to vector<1x8xf32>
    %757 = vector.broadcast %756 : vector<1x8xf32> to vector<8x8xf32>
    %758 = arith.addf %754, %757 : vector<8x8xf32>
    %c1_682 = arith.constant 1 : index
    %c1_683 = arith.constant 1 : index
    %c3_684 = arith.constant 3 : index
    %c0_685 = arith.constant 0 : index
    %c0_686 = arith.constant 0 : index
    %759 = vector.load %arg7[%c1_682, %c1_683, %c3_684, %c0_685, %c0_686] : memref<2x2x4x32x8xbf16, #tpu.memory_space<vmem>>, vector<1x1x1x32x8xbf16>
    %760 = vector.shape_cast %759 : vector<1x1x1x32x8xbf16> to vector<32x8xbf16>
    %cst_687 = arith.constant dense<0.000000e+00> : vector<8x8xf32>
    %761 = tpu.matmul %4, %760, %cst_687 {dimension_numbers = #tpu.dot_dimension_numbers<[1], [0], [0], [1], [0, 0, 1, 1], [], []>} : vector<8x32xbf16>, vector<32x8xbf16>, vector<8x8xf32> -> vector<8x8xf32>
    %c1_688 = arith.constant 1 : index
    %c1_689 = arith.constant 1 : index
    %c3_690 = arith.constant 3 : index
    %c0_691 = arith.constant 0 : index
    %c0_692 = arith.constant 0 : index
    %762 = vector.load %arg8[%c1_688, %c1_689, %c3_690, %c0_691, %c0_692] : memref<2x2x4x1x8xf32, #tpu.memory_space<vmem>>, vector<1x1x1x1x8xf32>
    %763 = vector.shape_cast %762 : vector<1x1x1x1x8xf32> to vector<1x8xf32>
    %764 = vector.broadcast %763 : vector<1x8xf32> to vector<8x8xf32>
    %765 = arith.addf %761, %764 : vector<8x8xf32>
    %c1_693 = arith.constant 1 : index
    %c1_694 = arith.constant 1 : index
    %c3_695 = arith.constant 3 : index
    %c0_696 = arith.constant 0 : index
    %c0_697 = arith.constant 0 : index
    %766 = vector.load %arg9[%c1_693, %c1_694, %c3_695, %c0_696, %c0_697] : memref<2x2x4x32x8xbf16, #tpu.memory_space<vmem>>, vector<1x1x1x32x8xbf16>
    %767 = vector.shape_cast %766 : vector<1x1x1x32x8xbf16> to vector<32x8xbf16>
    %cst_698 = arith.constant dense<0.000000e+00> : vector<8x8xf32>
    %768 = tpu.matmul %4, %767, %cst_698 {dimension_numbers = #tpu.dot_dimension_numbers<[1], [0], [0], [1], [0, 0, 1, 1], [], []>} : vector<8x32xbf16>, vector<32x8xbf16>, vector<8x8xf32> -> vector<8x8xf32>
    %c1_699 = arith.constant 1 : index
    %c1_700 = arith.constant 1 : index
    %c3_701 = arith.constant 3 : index
    %c0_702 = arith.constant 0 : index
    %c0_703 = arith.constant 0 : index
    %769 = vector.load %arg10[%c1_699, %c1_700, %c3_701, %c0_702, %c0_703] : memref<2x2x4x1x8xf32, #tpu.memory_space<vmem>>, vector<1x1x1x1x8xf32>
    %770 = vector.shape_cast %769 : vector<1x1x1x1x8xf32> to vector<1x8xf32>
    %771 = vector.broadcast %770 : vector<1x8xf32> to vector<8x8xf32>
    %772 = arith.addf %768, %771 : vector<8x8xf32>
    %773 = arith.truncf %758 : vector<8x8xf32> to vector<8x8xbf16>
    %774 = arith.truncf %765 : vector<8x8xf32> to vector<8x8xbf16>
    %cst_704 = arith.constant dense<0.000000e+00> : vector<8x8xf32>
    %775 = tpu.matmul %773, %774, %cst_704 {dimension_numbers = #tpu.dot_dimension_numbers<[1], [1], [0], [0], [0, 0, 1, 0], [], []>} : vector<8x8xbf16>, vector<8x8xbf16>, vector<8x8xf32> -> vector<8x8xf32>
    %776 = arith.addf %775, %8 : vector<8x8xf32>
    %cst_705 = arith.constant dense<0xFF800000> : vector<8xf32>
    %777 = vector.multi_reduction <maximumf>, %776, %cst_705 [1] : vector<8x8xf32> to vector<8xf32>
    %778 = vector.shape_cast %777 : vector<8xf32> to vector<8x1xf32>
    %779 = vector.broadcast %778 : vector<8x1xf32> to vector<8x8xf32>
    %780 = arith.subf %776, %779 : vector<8x8xf32>
    %781 = math.exp %780 : vector<8x8xf32>
    %cst_706 = arith.constant dense<0.000000e+00> : vector<8xf32>
    %782 = vector.multi_reduction <add>, %781, %cst_706 [1] : vector<8x8xf32> to vector<8xf32>
    %783 = vector.shape_cast %782 : vector<8xf32> to vector<8x1xf32>
    %784 = tpu.reciprocal %783 : vector<8x1xf32> -> vector<8x1xf32>
    %785 = vector.broadcast %784 : vector<8x1xf32> to vector<8x8xf32>
    %786 = arith.mulf %781, %785 : vector<8x8xf32>
    %787 = arith.truncf %786 : vector<8x8xf32> to vector<8x8xbf16>
    %788 = arith.truncf %772 : vector<8x8xf32> to vector<8x8xbf16>
    %cst_707 = arith.constant dense<0.000000e+00> : vector<8x8xf32>
    %789 = tpu.matmul %787, %788, %cst_707 {dimension_numbers = #tpu.dot_dimension_numbers<[1], [0], [0], [1], [0, 0, 1, 1], [], []>} : vector<8x8xbf16>, vector<8x8xbf16>, vector<8x8xf32> -> vector<8x8xf32>
    %790 = vector.shape_cast %672 : vector<8x8xf32> to vector<1x8x8xf32>
    %791 = vector.shape_cast %710 : vector<8x8xf32> to vector<1x8x8xf32>
    %792 = vector.shape_cast %748 : vector<8x8xf32> to vector<1x8x8xf32>
    %793 = vector.shape_cast %786 : vector<8x8xf32> to vector<1x8x8xf32>
    %794 = tpu.concatenate %790, %791, %792, %793 in 0 : vector<1x8x8xf32>, vector<1x8x8xf32>, vector<1x8x8xf32>, vector<1x8x8xf32> -> vector<4x8x8xf32>
    %c0_708 = arith.constant 0 : index
    %c1_709 = arith.constant 1 : index
    %c0_710 = arith.constant 0 : index
    %c0_711 = arith.constant 0 : index
    %c0_712 = arith.constant 0 : index
    %795 = vector.load %arg23[%c0_708, %c1_709, %c0_710, %c0_711, %c0_712] : memref<1x2x4x8x8xf32, #tpu.memory_space<vmem>>, vector<1x1x4x8x8xf32>
    %796 = vector.shape_cast %795 : vector<1x1x4x8x8xf32> to vector<4x8x8xf32>
    %797 = vector.shape_cast %794 : vector<4x8x8xf32> to vector<1x1x4x8x8xf32>
    tpu.vector_store %arg23[%c0_708, %c1_709, %c0_710, %c0_711, %c0_712], %797 {strides = array<i32>} : memref<1x2x4x8x8xf32, #tpu.memory_space<vmem>>, vector<1x1x4x8x8xf32>,
    %798 = tpu.concatenate %675, %713, %751, %789 in 1 : vector<8x8xf32>, vector<8x8xf32>, vector<8x8xf32>, vector<8x8xf32> -> vector<8x32xf32>
    %799 = arith.truncf %798 : vector<8x32xf32> to vector<8x32xbf16>
    %c1_713 = arith.constant 1 : index
    %c1_714 = arith.constant 1 : index
    %c0_715 = arith.constant 0 : index
    %c0_716 = arith.constant 0 : index
    %800 = vector.load %arg11[%c1_713, %c1_714, %c0_715, %c0_716] : memref<2x2x32x32xbf16, #tpu.memory_space<vmem>>, vector<1x1x32x32xbf16>
    %801 = vector.shape_cast %800 : vector<1x1x32x32xbf16> to vector<32x32xbf16>
    %cst_717 = arith.constant dense<0.000000e+00> : vector<8x32xf32>
    %802 = tpu.matmul %799, %801, %cst_717 {dimension_numbers = #tpu.dot_dimension_numbers<[1], [0], [0], [1], [0, 0, 1, 1], [], []>} : vector<8x32xbf16>, vector<32x32xbf16>, vector<8x32xf32> -> vector<8x32xf32>
    %c1_718 = arith.constant 1 : index
    %c1_719 = arith.constant 1 : index
    %c0_720 = arith.constant 0 : index
    %c0_721 = arith.constant 0 : index
    %803 = vector.load %arg12[%c1_718, %c1_719, %c0_720, %c0_721] : memref<2x2x1x32xf32, #tpu.memory_space<vmem>>, vector<1x1x1x32xf32>
    %804 = vector.shape_cast %803 : vector<1x1x1x32xf32> to vector<1x32xf32>
    %805 = vector.broadcast %804 : vector<1x32xf32> to vector<8x32xf32>
    %806 = arith.addf %802, %805 : vector<8x32xf32>
    %807 = arith.addf %636, %806 : vector<8x32xf32>
    %cst_722 = arith.constant dense<0.000000e+00> : vector<8xf32>
    %808 = vector.multi_reduction <add>, %807, %cst_722 [1] : vector<8x32xf32> to vector<8xf32>
    %809 = vector.shape_cast %808 : vector<8xf32> to vector<8x1xf32>
    %cst_723 = arith.constant 3.200000e+01 : f32
    %810 = vector.broadcast %cst_723 : f32 to vector<8x1xf32>
    %811 = arith.divf %809, %810 : vector<8x1xf32>
    %812 = vector.broadcast %811 : vector<8x1xf32> to vector<8x32xf32>
    %813 = arith.subf %807, %812 : vector<8x32xf32>
    %814 = arith.mulf %813, %813 : vector<8x32xf32>
    %cst_724 = arith.constant dense<0.000000e+00> : vector<8xf32>
    %815 = vector.multi_reduction <add>, %814, %cst_724 [1] : vector<8x32xf32> to vector<8xf32>
    %816 = vector.shape_cast %815 : vector<8xf32> to vector<8x1xf32>
    %cst_725 = arith.constant 3.200000e+01 : f32
    %817 = vector.broadcast %cst_725 : f32 to vector<8x1xf32>
    %818 = arith.divf %816, %817 : vector<8x1xf32>
    %cst_726 = arith.constant 9.99999997E-7 : f32
    %819 = vector.broadcast %cst_726 : f32 to vector<8x1xf32>
    %820 = arith.addf %818, %819 : vector<8x1xf32>
    %821 = math.rsqrt %820 : vector<8x1xf32>
    %822 = vector.broadcast %821 : vector<8x1xf32> to vector<8x32xf32>
    %823 = arith.mulf %813, %822 : vector<8x32xf32>
    %c1_727 = arith.constant 1 : index
    %c1_728 = arith.constant 1 : index
    %c0_729 = arith.constant 0 : index
    %c0_730 = arith.constant 0 : index
    %824 = vector.load %arg13[%c1_727, %c1_728, %c0_729, %c0_730] : memref<2x3x1x32xf32, #tpu.memory_space<vmem>>, vector<1x1x1x32xf32>
    %825 = vector.shape_cast %824 : vector<1x1x1x32xf32> to vector<1x32xf32>
    %826 = vector.broadcast %825 : vector<1x32xf32> to vector<8x32xf32>
    %827 = arith.mulf %823, %826 : vector<8x32xf32>
    %c1_731 = arith.constant 1 : index
    %c1_732 = arith.constant 1 : index
    %c0_733 = arith.constant 0 : index
    %c0_734 = arith.constant 0 : index
    %828 = vector.load %arg14[%c1_731, %c1_732, %c0_733, %c0_734] : memref<2x3x1x32xf32, #tpu.memory_space<vmem>>, vector<1x1x1x32xf32>
    %829 = vector.shape_cast %828 : vector<1x1x1x32xf32> to vector<1x32xf32>
    %830 = vector.broadcast %829 : vector<1x32xf32> to vector<8x32xf32>
    %831 = arith.addf %827, %830 : vector<8x32xf32>
    %832 = arith.truncf %831 : vector<8x32xf32> to vector<8x32xbf16>
    %c1_735 = arith.constant 1 : index
    %c0_736 = arith.constant 0 : index
    %c0_737 = arith.constant 0 : index
    %833 = vector.load %arg15[%c1_735, %c0_736, %c0_737] : memref<2x32x64xbf16, #tpu.memory_space<vmem>>, vector<1x32x64xbf16>
    %834 = vector.shape_cast %833 : vector<1x32x64xbf16> to vector<32x64xbf16>
    %cst_738 = arith.constant dense<0.000000e+00> : vector<8x64xf32>
    %835 = tpu.matmul %832, %834, %cst_738 {dimension_numbers = #tpu.dot_dimension_numbers<[1], [0], [0], [1], [0, 0, 1, 1], [], []>} : vector<8x32xbf16>, vector<32x64xbf16>, vector<8x64xf32> -> vector<8x64xf32>
    %c1_739 = arith.constant 1 : index
    %c0_740 = arith.constant 0 : index
    %c0_741 = arith.constant 0 : index
    %836 = vector.load %arg16[%c1_739, %c0_740, %c0_741] : memref<2x1x64xf32, #tpu.memory_space<vmem>>, vector<1x1x64xf32>
    %837 = vector.shape_cast %836 : vector<1x1x64xf32> to vector<1x64xf32>
    %838 = vector.broadcast %837 : vector<1x64xf32> to vector<8x64xf32>
    %839 = arith.addf %835, %838 : vector<8x64xf32>
    %cst_742 = arith.constant 0.000000e+00 : f32
    %840 = vector.broadcast %cst_742 : f32 to vector<8x64xf32>
    %841 = arith.maximumf %839, %840 : vector<8x64xf32>
    %842 = arith.truncf %841 : vector<8x64xf32> to vector<8x64xbf16>
    %c1_743 = arith.constant 1 : index
    %c0_744 = arith.constant 0 : index
    %c0_745 = arith.constant 0 : index
    %843 = vector.load %arg17[%c1_743, %c0_744, %c0_745] : memref<2x64x32xbf16, #tpu.memory_space<vmem>>, vector<1x64x32xbf16>
    %844 = vector.shape_cast %843 : vector<1x64x32xbf16> to vector<64x32xbf16>
    %cst_746 = arith.constant dense<0.000000e+00> : vector<8x32xf32>
    %845 = tpu.matmul %842, %844, %cst_746 {dimension_numbers = #tpu.dot_dimension_numbers<[1], [0], [0], [1], [0, 0, 1, 1], [], []>} : vector<8x64xbf16>, vector<64x32xbf16>, vector<8x32xf32> -> vector<8x32xf32>
    %c1_747 = arith.constant 1 : index
    %c0_748 = arith.constant 0 : index
    %c0_749 = arith.constant 0 : index
    %846 = vector.load %arg18[%c1_747, %c0_748, %c0_749] : memref<2x1x32xf32, #tpu.memory_space<vmem>>, vector<1x1x32xf32>
    %847 = vector.shape_cast %846 : vector<1x1x32xf32> to vector<1x32xf32>
    %848 = vector.broadcast %847 : vector<1x32xf32> to vector<8x32xf32>
    %849 = arith.addf %845, %848 : vector<8x32xf32>
    %850 = arith.addf %831, %849 : vector<8x32xf32>
    %cst_750 = arith.constant dense<0.000000e+00> : vector<8xf32>
    %851 = vector.multi_reduction <add>, %850, %cst_750 [1] : vector<8x32xf32> to vector<8xf32>
    %852 = vector.shape_cast %851 : vector<8xf32> to vector<8x1xf32>
    %cst_751 = arith.constant 3.200000e+01 : f32
    %853 = vector.broadcast %cst_751 : f32 to vector<8x1xf32>
    %854 = arith.divf %852, %853 : vector<8x1xf32>
    %855 = vector.broadcast %854 : vector<8x1xf32> to vector<8x32xf32>
    %856 = arith.subf %850, %855 : vector<8x32xf32>
    %857 = arith.mulf %856, %856 : vector<8x32xf32>
    %cst_752 = arith.constant dense<0.000000e+00> : vector<8xf32>
    %858 = vector.multi_reduction <add>, %857, %cst_752 [1] : vector<8x32xf32> to vector<8xf32>
    %859 = vector.shape_cast %858 : vector<8xf32> to vector<8x1xf32>
    %cst_753 = arith.constant 3.200000e+01 : f32
    %860 = vector.broadcast %cst_753 : f32 to vector<8x1xf32>
    %861 = arith.divf %859, %860 : vector<8x1xf32>
    %cst_754 = arith.constant 9.99999997E-7 : f32
    %862 = vector.broadcast %cst_754 : f32 to vector<8x1xf32>
    %863 = arith.addf %861, %862 : vector<8x1xf32>
    %864 = math.rsqrt %863 : vector<8x1xf32>
    %865 = vector.broadcast %864 : vector<8x1xf32> to vector<8x32xf32>
    %866 = arith.mulf %856, %865 : vector<8x32xf32>
    %c1_755 = arith.constant 1 : index
    %c2_756 = arith.constant 2 : index
    %c0_757 = arith.constant 0 : index
    %c0_758 = arith.constant 0 : index
    %867 = vector.load %arg13[%c1_755, %c2_756, %c0_757, %c0_758] : memref<2x3x1x32xf32, #tpu.memory_space<vmem>>, vector<1x1x1x32xf32>
    %868 = vector.shape_cast %867 : vector<1x1x1x32xf32> to vector<1x32xf32>
    %869 = vector.broadcast %868 : vector<1x32xf32> to vector<8x32xf32>
    %870 = arith.mulf %866, %869 : vector<8x32xf32>
    %c1_759 = arith.constant 1 : index
    %c2_760 = arith.constant 2 : index
    %c0_761 = arith.constant 0 : index
    %c0_762 = arith.constant 0 : index
    %871 = vector.load %arg14[%c1_759, %c2_760, %c0_761, %c0_762] : memref<2x3x1x32xf32, #tpu.memory_space<vmem>>, vector<1x1x1x32xf32>
    %872 = vector.shape_cast %871 : vector<1x1x1x32xf32> to vector<1x32xf32>
    %873 = vector.broadcast %872 : vector<1x32xf32> to vector<8x32xf32>
    %874 = arith.addf %870, %873 : vector<8x32xf32>
    %875 = arith.truncf %874 : vector<8x32xf32> to vector<8x32xbf16>
    %c0_763 = arith.constant 0 : index
    %c0_764 = arith.constant 0 : index
    %876 = vector.load %arg19[%c0_763, %c0_764] : memref<32x32xbf16, #tpu.memory_space<vmem>>, vector<32x32xbf16>
    %cst_765 = arith.constant dense<0.000000e+00> : vector<8x32xf32>
    %877 = tpu.matmul %875, %876, %cst_765 {dimension_numbers = #tpu.dot_dimension_numbers<[1], [0], [0], [1], [0, 0, 1, 1], [], []>} : vector<8x32xbf16>, vector<32x32xbf16>, vector<8x32xf32> -> vector<8x32xf32>
    %c0_766 = arith.constant 0 : index
    %c0_767 = arith.constant 0 : index
    %878 = vector.load %arg20[%c0_766, %c0_767] : memref<1x32xf32, #tpu.memory_space<vmem>>, vector<1x32xf32>
    %879 = vector.broadcast %878 : vector<1x32xf32> to vector<8x32xf32>
    %880 = arith.addf %877, %879 : vector<8x32xf32>
    %c0_768 = arith.constant 0 : index
    %c0_769 = arith.constant 0 : index
    %c0_770 = arith.constant 0 : index
    %881 = vector.load %arg21[%c0_768, %c0_769, %c0_770] : memref<1x8x32xf32, #tpu.memory_space<vmem>>, vector<1x8x32xf32>
    %882 = vector.shape_cast %881 : vector<1x8x32xf32> to vector<8x32xf32>
    %883 = vector.shape_cast %880 : vector<8x32xf32> to vector<1x8x32xf32>
    tpu.vector_store %arg21[%c0_768, %c0_769, %c0_770], %883 {strides = array<i32>} : memref<1x8x32xf32, #tpu.memory_space<vmem>>, vector<1x8x32xf32>,
    return
  }
  func.func @transform_0(%arg0: i32) -> (i32, i32, i32) {
    %c0_i32 = arith.constant 0 : i32
    %c0_i32_0 = arith.constant 0 : i32
    %c0_i32_1 = arith.constant 0 : i32
    return %arg0, %c0_i32, %c0_i32_0 : i32, i32, i32
  }
  func.func @transform_1(%arg0: i32) -> (i32, i32, i32) {
    %c0_i32 = arith.constant 0 : i32
    %c0_i32_0 = arith.constant 0 : i32
    %c0_i32_1 = arith.constant 0 : i32
    return %arg0, %c0_i32, %c0_i32_0 : i32, i32, i32
  }
  func.func @transform_2(%arg0: i32) -> (i32, i32, i32) {
    %c0_i32 = arith.constant 0 : i32
    %c0_i32_0 = arith.constant 0 : i32
    %c0_i32_1 = arith.constant 0 : i32
    return %arg0, %c0_i32, %c0_i32_0 : i32, i32, i32
  }
  func.func @transform_3(%arg0: i32) -> (i32, i32, i32) {
    %c0_i32 = arith.constant 0 : i32
    %c0_i32_0 = arith.constant 0 : i32
    %c0_i32_1 = arith.constant 0 : i32
    return %arg0, %c0_i32, %c0_i32_0 : i32, i32, i32
  }
  func.func @transform_4(%arg0: i32) -> (i32, i32, i32, i32, i32) {
    %c0_i32 = arith.constant 0 : i32
    %c0_i32_0 = arith.constant 0 : i32
    %c0_i32_1 = arith.constant 0 : i32
    %c0_i32_2 = arith.constant 0 : i32
    %c0_i32_3 = arith.constant 0 : i32
    %c0_i32_4 = arith.constant 0 : i32
    return %c0_i32, %c0_i32_0, %c0_i32_1, %c0_i32_2, %c0_i32_3 : i32, i32, i32, i32, i32
  }
  func.func @transform_5(%arg0: i32) -> (i32, i32, i32, i32, i32) {
    %c0_i32 = arith.constant 0 : i32
    %c0_i32_0 = arith.constant 0 : i32
    %c0_i32_1 = arith.constant 0 : i32
    %c0_i32_2 = arith.constant 0 : i32
    %c0_i32_3 = arith.constant 0 : i32
    %c0_i32_4 = arith.constant 0 : i32
    return %c0_i32, %c0_i32_0, %c0_i32_1, %c0_i32_2, %c0_i32_3 : i32, i32, i32, i32, i32
  }
  func.func @transform_6(%arg0: i32) -> (i32, i32, i32, i32, i32) {
    %c0_i32 = arith.constant 0 : i32
    %c0_i32_0 = arith.constant 0 : i32
    %c0_i32_1 = arith.constant 0 : i32
    %c0_i32_2 = arith.constant 0 : i32
    %c0_i32_3 = arith.constant 0 : i32
    %c0_i32_4 = arith.constant 0 : i32
    return %c0_i32, %c0_i32_0, %c0_i32_1, %c0_i32_2, %c0_i32_3 : i32, i32, i32, i32, i32
  }
  func.func @transform_7(%arg0: i32) -> (i32, i32, i32, i32, i32) {
    %c0_i32 = arith.constant 0 : i32
    %c0_i32_0 = arith.constant 0 : i32
    %c0_i32_1 = arith.constant 0 : i32
    %c0_i32_2 = arith.constant 0 : i32
    %c0_i32_3 = arith.constant 0 : i32
    %c0_i32_4 = arith.constant 0 : i32
    return %c0_i32, %c0_i32_0, %c0_i32_1, %c0_i32_2, %c0_i32_3 : i32, i32, i32, i32, i32
  }
  func.func @transform_8(%arg0: i32) -> (i32, i32, i32, i32, i32) {
    %c0_i32 = arith.constant 0 : i32
    %c0_i32_0 = arith.constant 0 : i32
    %c0_i32_1 = arith.constant 0 : i32
    %c0_i32_2 = arith.constant 0 : i32
    %c0_i32_3 = arith.constant 0 : i32
    %c0_i32_4 = arith.constant 0 : i32
    return %c0_i32, %c0_i32_0, %c0_i32_1, %c0_i32_2, %c0_i32_3 : i32, i32, i32, i32, i32
  }
  func.func @transform_9(%arg0: i32) -> (i32, i32, i32, i32, i32) {
    %c0_i32 = arith.constant 0 : i32
    %c0_i32_0 = arith.constant 0 : i32
    %c0_i32_1 = arith.constant 0 : i32
    %c0_i32_2 = arith.constant 0 : i32
    %c0_i32_3 = arith.constant 0 : i32
    %c0_i32_4 = arith.constant 0 : i32
    return %c0_i32, %c0_i32_0, %c0_i32_1, %c0_i32_2, %c0_i32_3 : i32, i32, i32, i32, i32
  }
  func.func @transform_10(%arg0: i32) -> (i32, i32, i32, i32) {
    %c0_i32 = arith.constant 0 : i32
    %c0_i32_0 = arith.constant 0 : i32
    %c0_i32_1 = arith.constant 0 : i32
    %c0_i32_2 = arith.constant 0 : i32
    %c0_i32_3 = arith.constant 0 : i32
    return %c0_i32, %c0_i32_0, %c0_i32_1, %c0_i32_2 : i32, i32, i32, i32
  }
  func.func @transform_11(%arg0: i32) -> (i32, i32, i32, i32) {
    %c0_i32 = arith.constant 0 : i32
    %c0_i32_0 = arith.constant 0 : i32
    %c0_i32_1 = arith.constant 0 : i32
    %c0_i32_2 = arith.constant 0 : i32
    %c0_i32_3 = arith.constant 0 : i32
    return %c0_i32, %c0_i32_0, %c0_i32_1, %c0_i32_2 : i32, i32, i32, i32
  }
  func.func @transform_12(%arg0: i32) -> (i32, i32, i32, i32) {
    %c0_i32 = arith.constant 0 : i32
    %c0_i32_0 = arith.constant 0 : i32
    %c0_i32_1 = arith.constant 0 : i32
    %c0_i32_2 = arith.constant 0 : i32
    %c0_i32_3 = arith.constant 0 : i32
    return %c0_i32, %c0_i32_0, %c0_i32_1, %c0_i32_2 : i32, i32, i32, i32
  }
  func.func @transform_13(%arg0: i32) -> (i32, i32, i32, i32) {
    %c0_i32 = arith.constant 0 : i32
    %c0_i32_0 = arith.constant 0 : i32
    %c0_i32_1 = arith.constant 0 : i32
    %c0_i32_2 = arith.constant 0 : i32
    %c0_i32_3 = arith.constant 0 : i32
    return %c0_i32, %c0_i32_0, %c0_i32_1, %c0_i32_2 : i32, i32, i32, i32
  }
  func.func @transform_14(%arg0: i32) -> (i32, i32, i32) {
    %c0_i32 = arith.constant 0 : i32
    %c0_i32_0 = arith.constant 0 : i32
    %c0_i32_1 = arith.constant 0 : i32
    %c0_i32_2 = arith.constant 0 : i32
    return %c0_i32, %c0_i32_0, %c0_i32_1 : i32, i32, i32
  }
  func.func @transform_15(%arg0: i32) -> (i32, i32, i32) {
    %c0_i32 = arith.constant 0 : i32
    %c0_i32_0 = arith.constant 0 : i32
    %c0_i32_1 = arith.constant 0 : i32
    %c0_i32_2 = arith.constant 0 : i32
    return %c0_i32, %c0_i32_0, %c0_i32_1 : i32, i32, i32
  }
  func.func @transform_16(%arg0: i32) -> (i32, i32, i32) {
    %c0_i32 = arith.constant 0 : i32
    %c0_i32_0 = arith.constant 0 : i32
    %c0_i32_1 = arith.constant 0 : i32
    %c0_i32_2 = arith.constant 0 : i32
    return %c0_i32, %c0_i32_0, %c0_i32_1 : i32, i32, i32
  }
  func.func @transform_17(%arg0: i32) -> (i32, i32, i32) {
    %c0_i32 = arith.constant 0 : i32
    %c0_i32_0 = arith.constant 0 : i32
    %c0_i32_1 = arith.constant 0 : i32
    %c0_i32_2 = arith.constant 0 : i32
    return %c0_i32, %c0_i32_0, %c0_i32_1 : i32, i32, i32
  }
  func.func @transform_18(%arg0: i32) -> (i32, i32) {
    %c0_i32 = arith.constant 0 : i32
    %c0_i32_0 = arith.constant 0 : i32
    %c0_i32_1 = arith.constant 0 : i32
    return %c0_i32, %c0_i32_0 : i32, i32
  }
  func.func @transform_19(%arg0: i32) -> (i32, i32) {
    %c0_i32 = arith.constant 0 : i32
    %c0_i32_0 = arith.constant 0 : i32
    %c0_i32_1 = arith.constant 0 : i32
    return %c0_i32, %c0_i32_0 : i32, i32
  }
  func.func @transform_20(%arg0: i32) -> (i32, i32, i32) {
    %c0_i32 = arith.constant 0 : i32
    %c0_i32_0 = arith.constant 0 : i32
    %c0_i32_1 = arith.constant 0 : i32
    return %arg0, %c0_i32, %c0_i32_0 : i32, i32, i32
  }
  func.func @transform_21(%arg0: i32) -> (i32, i32, i32, i32, i32) {
    %c0_i32 = arith.constant 0 : i32
    %c0_i32_0 = arith.constant 0 : i32
    %c0_i32_1 = arith.constant 0 : i32
    %c0_i32_2 = arith.constant 0 : i32
    %c0_i32_3 = arith.constant 0 : i32
    return %arg0, %c0_i32, %c0_i32_0, %c0_i32_1, %c0_i32_2 : i32, i32, i32, i32, i32
  }
  func.func @transform_22(%arg0: i32) -> (i32, i32, i32, i32, i32) {
    %c0_i32 = arith.constant 0 : i32
    %c0_i32_0 = arith.constant 0 : i32
    %c0_i32_1 = arith.constant 0 : i32
    %c0_i32_2 = arith.constant 0 : i32
    %c0_i32_3 = arith.constant 0 : i32
    return %arg0, %c0_i32, %c0_i32_0, %c0_i32_1, %c0_i32_2 : i32, i32, i32, i32, i32
  }
}

</mosaic_0001>

<bundles_post_ra>
// kernel: decoder_forward.1
= control target key start
LH: loop header
LB: loop body
LE: loop exit
PB: predicated region body
PF: predicated region fallthrough
CT: control target
= control target key end

     0   :  { %s9969_s0 = inlined_call_operand.vmem [shape: f32[2,8,32], index: 0, kind: input, shape index: {}]   ;;  %s9970_s1 = inlined_call_operand.vmem [shape: f32[2,8,32], index: 1, kind: input, shape index: {}]   ;;  %s9971_s2 = inlined_call_operand.vmem [shape: f32[2,8,8], index: 2, kind: input, shape index: {}]   ;;  %s9972_s3 = inlined_call_operand.vmem [shape: f32[2,8,8], index: 3, kind: input, shape index: {}]   ;;  %s9973_s4 = inlined_call_operand.vmem [shape: bf16[2,2,4,32,8], index: 4, kind: input, shape index: {}]   ;;  %s9974_s5 = inlined_call_operand.vmem [shape: f32[2,2,4,1,8], index: 5, kind: input, shape index: {}]   ;;  %s9975_s6 = inlined_call_operand.vmem [shape: bf16[2,2,4,32,8], index: 6, kind: input, shape index: {}]   ;;  %s9976_s7 = inlined_call_operand.vmem [shape: f32[2,2,4,1,8], index: 7, kind: input, shape index: {}]   ;;  %s9977_s8 = inlined_call_operand.vmem [shape: bf16[2,2,4,32,8], index: 8, kind: input, shape index: {}]   ;;  %s9978_s9 = inlined_call_operand.vmem [shape: f32[2,2,4,1,8], index: 9, kind: input, shape index: {}]   ;;  %s9979_s10 = inlined_call_operand.vmem [shape: bf16[2,2,32,32], index: 10, kind: input, shape index: {}]   ;;  %s9980_s11 = inlined_call_operand.vmem [shape: f32[2,2,1,32], index: 11, kind: input, shape index: {}]   ;;  %s9981_s12 = inlined_call_operand.vmem [shape: f32[2,3,1,32], index: 12, kind: input, shape index: {}]   ;;  %s9982_s13 = inlined_call_operand.vmem [shape: f32[2,3,1,32], index: 13, kind: input, shape index: {}]   ;;  %s9983_s14 = inlined_call_operand.vmem [shape: bf16[2,32,64], index: 14, kind: input, shape index: {}]   ;;  %s9984_s15 = inlined_call_operand.vmem [shape: f32[2,1,64], index: 15, kind: input, shape index: {}]   ;;  %s9985_s16 = inlined_call_operand.vmem [shape: bf16[2,64,32], index: 16, kind: input, shape index: {}]   ;;  %s9986_s17 = inlined_call_operand.vmem [shape: f32[2,1,32], index: 17, kind: input, shape index: {}]   ;;  %s9987_s18 = inlined_call_operand.vmem [shape: bf16[32,32], index: 18, kind: input, shape index: {}]   ;;  %s9988_s19 = inlined_call_operand.vmem [shape: f32[1,32], index: 19, kind: input, shape index: {}]   ;;  %s9989_s20 = inlined_call_operand.hbm [shape: f32[2,8,32], index: 20, kind: output, shape index: {0}]   ;;  %s9990_s21 = inlined_call_operand.vmem [shape: f32[2,2,4,8,8], index: 21, kind: output, shape index: {1}]   ;;  %s9991_s22 = inlined_call_operand.vmem [shape: f32[2,2,4,8,8], index: 22, kind: output, shape index: {2}]  }
   0x1   :  { %10012 = sst [smem:[#allocation13_spill]] %s9969_s0 }
   0x2   :  { %10013 = sst [smem:[#allocation14_spill]] %s9970_s1 }
   0x3   :  { %10014 = sst [smem:[#allocation15_spill]] %s9971_s2 }
   0x4   :  { %10015 = sst [smem:[#allocation16_spill]] %s9972_s3 }
   0x5   :  { %10016 = sst [smem:[#allocation17_spill]] %s9973_s4 }
   0x6   :  { %10017 = sst [smem:[#allocation18_spill]] %s9974_s5 }
   0x7   :  { %10018 = sst [smem:[#allocation19_spill]] %s9975_s6 }
   0x8   :  { %10019 = sst [smem:[#allocation20_spill]] %s9988_s19 }
   0x9   :  { %10020 = sst [smem:[#allocation21_spill]] %s9989_s20 }
   0xa   :  { %10021 = sst [smem:[#allocation22_spill]] %s9990_s21 }
   0xb   :  { %10022 = sst [smem:[#allocation23_spill]] %s9991_s22 }
   0xc   :  { %28 = vsyncpa [#allocation3], 0 }
   0xd   :  { %30 = vsyncpa [#allocation3 + $0x1], 0  ;;  %s8592_s3 = smov 0   ;;  %s8594_s28 = smov 0  }
   0xe   :  { %s8596_s29 = smov 0   ;;  %s8598_s30 = smov 0  }
   0xf LB: > { %10023 = sst [smem:[#allocation5_spill]] %s8457_s3  ;;  %s8613_s4 = sadd.s32 4294967295, %s8469_s30   ;;  %s8469_s30 = sphi %s8598_s30, %s10055_s30   ;;  %s8465_s29 = sphi %s8596_s29, %s10057_s29   ;;  %s8461_s28 = sphi %s8594_s28, %s10059_s28   ;;  %s8457_s3 = sphi %s8592_s3, %s10058_s3  }
  0x10   : > { %10024 = sst [smem:[#allocation6_spill]] %s8465_s29  ;;  %s6704_s0 = sadd.s32 4294967294, %s8469_s30  }
  0x11   : > { %10025 = sst [smem:[#allocation7_spill]] %s8469_s30  ;;  %s8617_s23 = sadd.s32 1, %s8469_s30  }
  0x12   : > { %10026 = sst [smem:[#allocation8_spill]] %s8613_s4  ;;  %s483_s1 = sadd.s32 1, %s8465_s29 }
  0x13   : > { %10027 = sst [smem:[#allocation9_spill]] %s8617_s23  ;;  %s480_s5 = ssub.s32 %s8469_s30, %s8617_s23 }
  0x14   : > { %p493_p0 = scmp.ne.s32.totalorder %s8465_s29, %s8461_s28  ;;  %p481_p1 = scmp.eq.s32.totalorder %s480_s5, 0 }
  0x15   : > { %p494_p2 = scmp.eq.s32.totalorder %s8613_s4, 1  ;;  %p499_p3 = scmp.ne.s32.totalorder %s8461_s28, %s8457_s3 }
  0x16   : > { %p500_p4 = scmp.eq.s32.totalorder %s6704_s0, 1  ;;  %p6707_p7 = scmp.ge.s32.totalorder %s8469_s30, 1 }
  0x17   : > { %s8628_s24 = scalar_select %p481_p1, %s8465_s29, %s483_s1  }
  0x18   : > { %p8630_p5 = por %p494_p2, %p493_p0  ;;  %p8634_p6 = por %p500_p4, %p499_p3 }
  0x19   : > { %10028 = sst [smem:[#allocation10_spill]] %s8628_s24  ;;  %p646_p8 = scmp.lt.s32.totalorder %s8469_s30, 3 }
  0x1a   : > { %s10029_s6 = scalar_select %p8630_p5, 1, 0 }
  0x1b   : > { %s10031_s25 = scalar_select %p8634_p6, 1, 0 }
  0x1c   : > { %10030 = sst [smem:[#allocation11_spill]] %s10029_s6  ;;  %p647_p9 = pnand %p6707_p7, %p646_p8 }
  0x1d   : > { %10032 = sst [smem:[#allocation12_spill]] %s10031_s25  ;;  %s10033_s27 = sld [smem:[#allocation19_spill]] (!%p647_p9)  ;;  %v8471_v1 = vmov (!%p647_p9), 0.0   ;;  %vm8472_vm0 = vmmov (!%p647_p9), 0   ;;  %vm785_vm1 = vcmask (!%p647_p9), 261120   ;;  %vm957_vm2 = vcmask (!%p647_p9), 64512  }
  0x1e   : > { %650 = sbr.rel (%p647_p9) target bundleno = 17366 (0x43d6), region = 100  ;;  %7518 = vmatprep.subr.bf16.mxu1 (!%p647_p9), %v8471_v1  ;;  %7510 = vmatprep.subr.bf16.mxu0 (!%p647_p9), %v8471_v1  ;;  %s10034_s29 = sld [smem:[#allocation17_spill]] (!%p647_p9)  ;;  %v6721_v7 = vld [vmem:[%s9976_s7] ss:$0 sm:$0xff] (!%p647_p9)  ;;  %v8215_v23 = vld [vmem:[%s9977_s8 + $0x8] sm:$0xff] (!%p647_p9)   ;;  %vm1020_vm3 = vcmask (!%p647_p9), 1043456  }
  0x1f   : > { %7522 = vmatprep.mubr.msk.bf16.mxu1 (!%p647_p9), %vm8472_vm0, %v8471_v1  ;;  %p729_p10 = scmp.lt.s32.totalorder (!%p647_p9), %s8613_s4, 1  ;;  %7514 = vmatprep.mubr.msk.bf16.mxu0 (!%p647_p9), %vm8472_vm0, %v8471_v1  ;;  %s10036_s5 = sld [smem:[#allocation13_spill]] (!%p647_p9)  ;;  %v8214_v22 = vld [vmem:[%s9977_s8] sm:$0xff] (!%p647_p9)   ;;  %vm1987_vm4 = vcmask (!%p647_p9), 130048   ;;  %vm1989_vm5 = vcmask (!%p647_p9), 195584   ;;  %vm3532_vm6 = vcmask (!%p647_p9), 523264  }
  0x20   : > { %s10038_s2 = sld [smem:[#allocation15_spill]] (!%p647_p9)  ;;  %v6725_v39 = vld [vmem:[%s9978_s9] ss:$0 sm:$0xff] (!%p647_p9)  ;;  %s10039_s21 = sld [smem:[#allocation22_spill]] (!%p647_p9)  ;;  %v6745_v60 = vld [vmem:[%s9976_s7 + $0x1] ss:$0 sm:$0xff] (!%p647_p9) }
  0x21   : > { %s10008_s24 = smov (!%p647_p9), 8   ;;  %s10004_s3 = smov (!%p647_p9), 16  }
  0x22   : > { %s10040_s19 = sld [smem:[#allocation14_spill]] (!%p647_p9)  ;;  %s10043_s22 = sld [smem:[#allocation23_spill]] (!%p647_p9) }
  0x23   : > { %v8210_v0 = vld [vmem:[%s10033_s27] sm:$0xff] (!%p647_p9)   ;;  %v8211_v2 = vld [vmem:[%s10033_s27 + $0x8] sm:$0xff] (!%p647_p9)   ;;  %v8216_v49 = vld [vmem:[%s10033_s27 + $0x10] sm:$0xff] (!%p647_p9)  }
  0x24   : > { %7519 = vmatpush3.bf16.msra.mxu1 (!%p647_p9), %v8210_v0  ;;  %s10035_s23 = smov (!%p647_p9), %s10034_s29  ;;  %v8212_v3 = vld [vmem:[%s10034_s29] sm:$0xff] (!%p647_p9)   ;;  %v8217_v51 = vld [vmem:[%s10033_s27 + $0x18] sm:$0xff] (!%p647_p9)  }
  0x25   : > { %7520 = vmatprep.subr.bf16.mxu1 %v8471_v1  ;;  %7511 = vmatpush3.bf16.msra.mxu0 %v8212_v3  ;;  %s8658_s26 = scalar_select %p729_p10, %s8613_s4, 1  ;;  %v8213_v4 = vld [vmem:[%s10035_s23 + $0x8] sm:$0xff]   ;;  %v8218_v44 = vld [vmem:[%s10035_s23 + $0x10] sm:$0xff]   ;;  %v8219_v45 = vld [vmem:[%s10035_s23 + $0x18] sm:$0xff]  }
  0x26   : > { %7512 = vmatprep.subr.bf16.mxu0 %v8471_v1 }
  0x27   : > { %s8665_s29 = sshll.u32 %s8658_s26, 3  ;;  %s10010_s30 = sshll.u32 %s8658_s26, 6 }
  0x28   : > { %7521 = vmatpush3.bf16.msra.mxu1 %v8211_v2  ;;  %s8671_s25 = scalar_lea.vmem %s10036_s5, %s8665_s29  ;;  %s10037_s5 = sld [smem:[#allocation18_spill]] }
  0x29   : > { %7534 = vmatprep.subr.bf16.mxu1 %v8471_v1  ;;  %v756_v5 = vld [vmem:[%s8671_s25] sm:$0xff]  ;;  %7513 = vmatpush3.bf16.msra.mxu0 %v8213_v4  ;;  %s8713_s0 = scalar_lea.vmem %s10038_s2, %s8665_s29  ;;  %s8744_s20 = scalar_lea.vmem %s10039_s21, %s10010_s30 }
  0x2a   : > { %v8675_v6 = vpack.c.bf16 %v756_v5, %v756_v5  ;;  %7526 = vmatprep.subr.bf16.mxu0 %v8471_v1  ;;  %v8716_v24 = vld [vmem:[%s8713_s0] sm:$0xff]  ;;  %s736_s6 = scalar_lea.vmem %s10040_s19, %s8665_s29  ;;  %s10044_s19 = smov 8  }
  0x2c   : > { %7523 = vmatmul.mubr.msk.bf16.vlgmr.msra.gmra.mrb[0].mxu1 %vm785_vm1, %v8675_v6  ;;  %7515 = vmatmul.mubr.msk.bf16.vlgmr.msra.gmra.mrb[0].mxu0 %vm785_vm1, %v8675_v6 }
  0x2d   : > { %7536 = vmatprep.mubr.msk.bf16.mxu1 %vm8472_vm0, %v8471_v1  ;;  %7530 = vmatprep.mubr.msk.bf16.mxu0 %vm8472_vm0, %v8471_v1 }
  0x2e   : > { %v6717_v14 = vld [vmem:[%s10037_s5] ss:$0 sm:$0xff]  ;;  %7527 = vmatpush3.bf16.msra.mxu0 %v8214_v22  ;;  %v6736_v2 = vld [vmem:[%s10037_s5 + $0x1] ss:$0 sm:$0xff] }
  0x2f   : > { %7528 = vmatprep.subr.bf16.mxu0 %v8471_v1 }
  0x32   : > { %7529 = vmatpush3.bf16.msra.mxu0 %v8215_v23 }
  0x33   : > { %7540 = vmatprep.subr.bf16.mxu0 %v8471_v1 }
  0x35   : > { %7531 = vmatmul.mubr.msk.bf16.vlgmr.msra.gmra.mrb[4].mxu0 %vm785_vm1, %v8675_v6 }
  0x36   : > { %7542 = vmatprep.mubr.msk.bf16.mxu0 %vm8472_vm0, %v8471_v1 }
  0xff   : > { %v886_v8 = vpop.f32.mrb[0].mxu1  ;;  %v823_v9 = vpop.f32.mrb[0].mxu0 }
 0x100   : > { %v887_v10 = vadd.f32 %v6721_v7, %v886_v8  ;;  %v7524_v11 = vpop.f32.mrb[1].mxu1  ;;  %v7516_v12 = vpop.f32.mrb[1].mxu0  ;;  %v824_v20 = vadd.f32 %v6717_v14, %v823_v9  ;;  %v8220_v9 = vld [vmem:[%s9977_s8 + $0x10] sm:$0xff]  }
 0x101   : > { %v889_v13 = vpop.f32.mrb[2].mxu1  ;;  %v826_v15 = vpop.f32.mrb[2].mxu0 }
 0x102   : > { %v956_v16 = vpack.c.bf16 %v887_v10, %v887_v10  ;;  %v7525_v17 = vpop.f32.mrb[3].mxu1  ;;  %v7517_v18 = vpop.f32.mrb[3].mxu0  ;;  %v955_v21 = vpack.c.bf16 %v824_v20, %v824_v20  ;;  %v8221_v10 = vld [vmem:[%s9977_s8 + $0x18] sm:$0xff]  }
 0x103   : > { %v6754_v17 = vld [vmem:[%s9978_s9 + $0x1] ss:$0 sm:$0xff] }
 0x104   : > { %v962_v19 = vsel %vm957_vm2, %v956_v16, 0 }
 0x105   : > { %7535 = vmatpush3.bf16.xpose.msra.mxu1 %v962_v19 }
 0x106   : > { %7546 = vmatprep.subr.bf16.mxu1 %v8471_v1 }
 0x108   : > { %v949_v36 = vpop.f32.mrb[4].mxu0 }
 0x109   : > { %v7532_v37 = vpop.f32.mrb[5].mxu0  ;;  %v950_v41 = vadd.f32 %v6725_v39, %v949_v36  ;;  %v8222_v36 = vld [vmem:[%s10033_s27 + $0x20] sm:$0xff]  }
 0x10a   : > { %v952_v38 = vpop.f32.mrb[6].mxu0 }
 0x10b   : > { %v7533_v40 = vpop.f32.mrb[7].mxu0  ;;  %v1016_v42 = vpack.c.bf16 %v950_v41, %v950_v41  ;;  %v8223_v38 = vld [vmem:[%s10033_s27 + $0x28] sm:$0xff]  }
 0x10c   : > { %7537 = vmatmul.mubr.msk.bf16.vlgmr.msra.gmra.mrb[4].mxu1 %vm957_vm2, %v955_v21 }
 0x10d   : > { %7550 = vmatprep.mubr.msk.bf16.mxu1 %vm8472_vm0, %v8471_v1  ;;  %v1022_v43 = vsel %vm1020_vm3, %v1016_v42, 0  ;;  %7547 = vmatpush3.bf16.msra.mxu1 %v8218_v44 }
 0x10e   : > { %7541 = vmatpush3.bf16.msra.mxu0 %v1022_v43  ;;  %7548 = vmatprep.subr.bf16.mxu1 %v8471_v1 }
 0x10f   : > { %7554 = vmatprep.subr.bf16.mxu0 %v8471_v1 }
 0x111   : > { %7549 = vmatpush3.bf16.msra.mxu1 %v8219_v45 }
 0x112   : > { %7562 = vmatprep.subr.bf16.mxu1 %v8471_v1 }
 0x114   : > { %7551 = vmatmul.mubr.msk.bf16.vlgmr.msra.gmra.mrb[8].mxu1 %vm785_vm1, %v8675_v6 }
 0x115   : > { %7566 = vmatprep.mubr.msk.bf16.mxu1 %vm8472_vm0, %v8471_v1  ;;  %7563 = vmatpush3.bf16.msra.mxu1 %v8220_v9 }
 0x116   : > { %7564 = vmatprep.subr.bf16.mxu1 %v8471_v1 }
 0x119   : > { %7565 = vmatpush3.bf16.msra.mxu1 %v8221_v10 }
 0x11a   : > { %7576 = vmatprep.subr.bf16.mxu1 %v8471_v1 }
 0x11c   : > { %7567 = vmatmul.mubr.msk.bf16.vlgmr.msra.gmra.mrb[12].mxu1 %vm785_vm1, %v8675_v6 }
 0x11d   : > { %7578 = vmatprep.mubr.msk.bf16.mxu1 %vm8472_vm0, %v8471_v1 }
 0x1df   : > { %v998_v25 = vpop.f32.mrb[4].mxu1 }
 0x1e0   : > { %v999_v26 = vadd.f32 %v998_v25, %v8716_v24  ;;  %v7538_v27 = vpop.f32.mrb[5].mxu1 }
 0x1e1   : > { %v1001_v28 = vpop.f32.mrb[6].mxu1 }
 0x1e2   : > { %v7539_v29 = vpop.f32.mrb[7].mxu1  ;;  %v1004_v30 = vsel %vm957_vm2, %v999_v26, -inf }
 0x1e3   : > { %1005 = vmax.xlane.f32.xlu0 %v1004_v30 }
 0x1e7   : > { %v1123_v52 = vpop.f32.mrb[8].mxu1 }
 0x1e8   : > { %v7552_v53 = vpop.f32.mrb[9].mxu1  ;;  %v1124_v7 = vadd.f32 %v6736_v2, %v1123_v52  ;;  %v6765_v52 = vld [vmem:[%s10037_s5 + $0x2] ss:$0 sm:$0xff] }
 0x1e9   : > { %v1126_v54 = vpop.f32.mrb[10].mxu1 }
 0x1ea   : > { %v7553_v55 = vpop.f32.mrb[11].mxu1  ;;  %v1259_v8 = vpack.c.bf16 %v1124_v7, %v1124_v7 }
 0x1ef   : > { %v1253_v18 = vpop.f32.mrb[12].mxu1 }
 0x1f0   : > { %v1254_v19 = vadd.f32 %v6754_v17, %v1253_v18  ;;  %v7568_v20 = vpop.f32.mrb[13].mxu1  ;;  %v8230_v18 = vld [vmem:[%s10035_s23 + $0x30] sm:$0xff]  }
 0x1f1   : > { %v1256_v21 = vpop.f32.mrb[14].mxu1 }
 0x1f2   : > { %v1319_v22 = vpack.c.bf16 %v1254_v19, %v1254_v19  ;;  %v7569_v23 = vpop.f32.mrb[15].mxu1  ;;  %v8231_v19 = vld [vmem:[%s10035_s23 + $0x38] sm:$0xff]  }
 0x1f3   : > { %v8228_v23 = vld [vmem:[%s10033_s27 + $0x30] sm:$0xff]  }
 0x1f4   : > { %v1324_v25 = vsel %vm1020_vm3, %v1319_v22, 0 }
 0x1f5   : > { %7577 = vmatpush3.bf16.msra.mxu1 %v1324_v25 }
 0x1f6   : > { %7590 = vmatprep.subr.bf16.mxu1 %v8471_v1 }
 0x270   : > { %v1006_v31 = vpop.xlane.xlu0 %1005 }
 0x271   : > { %v1007_v32 = vsub.f32 %v999_v26, %v1006_v31  ;;  %v8224_v31 = vld [vmem:[%s10035_s23 + $0x20] sm:$0xff]  }
 0x273   : > { %v1008_v33 = vmul.f32 1.442695, %v1007_v32  ;;  %v8225_v32 = vld [vmem:[%s10035_s23 + $0x28] sm:$0xff]  }
 0x275   : > { %8328 = vpow2.f32 %v1008_v33 }
 0x27f   : > { %v8329_v34 = vpop.eup %8328 }
 0x280   : > { %v1010_v35 = vsel %vm957_vm2, %v8329_v34, 0.0 }
 0x281   : > { %1011 = vadd.xlane.f32.xlu0 %v1010_v35 }
 0x30e   : > { %v1012_v46 = vpop.xlane.xlu0 %1011 }
 0x30f   : > { %8330 = vrcp.f32 %v1012_v46 }
 0x319   : > { %v8331_v47 = vpop.eup %8330 }
 0x31a   : > { %v1014_v48 = vmul.f32 %v8331_v47, %v8329_v34  ;;  %v6774_v47 = vld [vmem:[%s9976_s7 + $0x2] ss:$0 sm:$0xff] }
 0x31c   : > { %1970 = vst.msk [vmem:[%s8744_s20] sm:$0xff] %vm957_vm2, %v1014_v48  ;;  %v1015_v50 = vpack.c.bf16 %v1014_v48, %v1014_v48 }
 0x31e   : > { %7543 = vmatmul.mubr.msk.bf16.vlgmr.msra.gmra.mrb[8].mxu0 %vm957_vm2, %v1015_v50 }
 0x31f   : > { %7555 = vmatpush3.bf16.msra.mxu0 %v8216_v49  ;;  %7558 = vmatprep.mubr.msk.bf16.mxu0 %vm8472_vm0, %v8471_v1 }
 0x320   : > { %7556 = vmatprep.subr.bf16.mxu0 %v8471_v1 }
 0x323   : > { %7557 = vmatpush3.bf16.msra.mxu0 %v8217_v51 }
 0x324   : > { %7570 = vmatprep.subr.bf16.mxu0 %v8471_v1 }
 0x326   : > { %7559 = vmatmul.mubr.msk.bf16.vlgmr.msra.gmra.mrb[12].mxu0 %vm785_vm1, %v8675_v6 }
 0x327   : > { %7572 = vmatprep.mubr.msk.bf16.mxu0 %vm8472_vm0, %v8471_v1 }
 0x3f1   : > { %v8763_v56 = vpop.f32.mrb[8].mxu0 }
 0x3f2   : > { %v7544_v57 = vpop.f32.mrb[9].mxu0 }
 0x3f3   : > { %v1061_v58 = vpop.f32.mrb[10].mxu0 }
 0x3f4   : > { %v7545_v59 = vpop.f32.mrb[11].mxu0 }
 0x3f5   : > { %v8226_v59 = vld [vmem:[%s9977_s8 + $0x20] sm:$0xff]  }
 0x3f9   : > { %v1188_v61 = vpop.f32.mrb[12].mxu0 }
 0x3fa   : > { %v1189_v62 = vadd.f32 %v6745_v60, %v1188_v61  ;;  %v7560_v63 = vpop.f32.mrb[13].mxu0  ;;  %v8227_v60 = vld [vmem:[%s9977_s8 + $0x28] sm:$0xff]  }
 0x3fb   : > { %v1191_v0 = vpop.f32.mrb[14].mxu0 }
 0x3fc   : > { %v1260_v3 = vpack.c.bf16 %v1189_v62, %v1189_v62  ;;  %v7561_v4 = vpop.f32.mrb[15].mxu0 }
 0x3fe   : > { %v1265_v5 = vsel %vm957_vm2, %v1260_v3, 0 }
 0x3ff   : > { %7571 = vmatpush3.bf16.xpose.msra.mxu0 %v1265_v5 }
 0x400   : > { %7582 = vmatprep.subr.bf16.mxu0 %v8471_v1 }
 0x406   : > { %7573 = vmatmul.mubr.msk.bf16.vlgmr.msra.gmra.mrb[16].mxu0 %vm957_vm2, %v1259_v8 }
 0x407   : > { %7586 = vmatprep.mubr.msk.bf16.mxu0 %vm8472_vm0, %v8471_v1  ;;  %7583 = vmatpush3.bf16.msra.mxu0 %v8224_v31 }
 0x408   : > { %7584 = vmatprep.subr.bf16.mxu0 %v8471_v1 }
 0x40b   : > { %7585 = vmatpush3.bf16.msra.mxu0 %v8225_v32 }
 0x40c   : > { %7598 = vmatprep.subr.bf16.mxu0 %v8471_v1 }
 0x40e   : > { %7587 = vmatmul.mubr.msk.bf16.vlgmr.msra.gmra.mrb[20].mxu0 %vm785_vm1, %v8675_v6 }
 0x40f   : > { %7602 = vmatprep.mubr.msk.bf16.mxu0 %vm8472_vm0, %v8471_v1  ;;  %7599 = vmatpush3.bf16.msra.mxu0 %v8226_v59 }
 0x410   : > { %7600 = vmatprep.subr.bf16.mxu0 %v8471_v1 }
 0x413   : > { %7601 = vmatpush3.bf16.msra.mxu0 %v8227_v60 }
 0x414   : > { %7612 = vmatprep.subr.bf16.mxu0 %v8471_v1 }
 0x416   : > { %7603 = vmatmul.mubr.msk.bf16.vlgmr.msra.gmra.mrb[24].mxu0 %vm785_vm1, %v8675_v6 }
 0x417   : > { %7614 = vmatprep.mubr.msk.bf16.mxu0 %vm8472_vm0, %v8471_v1 }
 0x4d9   : > { %v1301_v11 = vpop.f32.mrb[16].mxu0 }
 0x4da   : > { %v1302_v12 = vadd.f32 %v1301_v11, %v8716_v24  ;;  %v7574_v13 = vpop.f32.mrb[17].mxu0 }
 0x4db   : > { %v1304_v14 = vpop.f32.mrb[18].mxu0  ;;  %v6783_v13 = vld [vmem:[%s9978_s9 + $0x2] ss:$0 sm:$0xff] }
 0x4dc   : > { %v7575_v15 = vpop.f32.mrb[19].mxu0  ;;  %v1307_v16 = vsel %vm957_vm2, %v1302_v12, -inf }
 0x4dd   : > { %1308 = vmax.xlane.f32.xlu1 %v1307_v16 }
 0x4e1   : > { %v1425_v39 = vpop.f32.mrb[20].mxu0 }
 0x4e2   : > { %v7588_v40 = vpop.f32.mrb[21].mxu0  ;;  %v1426_v57 = vadd.f32 %v6765_v52, %v1425_v39 }
 0x4e3   : > { %v1428_v41 = vpop.f32.mrb[22].mxu0  ;;  %v6794_v40 = vld [vmem:[%s10037_s5 + $0x3] ss:$0 sm:$0xff] }
 0x4e4   : > { %v7589_v42 = vpop.f32.mrb[23].mxu0  ;;  %v1561_v58 = vpack.c.bf16 %v1426_v57, %v1426_v57 }
 0x4e9   : > { %v1555_v10 = vpop.f32.mrb[24].mxu0 }
 0x4ea   : > { %v7604_v11 = vpop.f32.mrb[25].mxu0  ;;  %v1556_v15 = vadd.f32 %v6783_v13, %v1555_v10 }
 0x4ec   : > { %v1621_v16 = vpack.c.bf16 %v1556_v15, %v1556_v15 }
 0x4ee   : > { %v1626_v17 = vsel %vm1020_vm3, %v1621_v16, 0 }
 0x4ef   : > { %7613 = vmatpush3.bf16.msra.mxu0 %v1626_v17 }
 0x4f0   : > { %7626 = vmatprep.subr.bf16.mxu0 %v8471_v1 }
 0x56a   : > { %v1309_v26 = vpop.xlane.xlu1 %1308 }
 0x56b   : > { %v1310_v27 = vsub.f32 %v1302_v12, %v1309_v26  ;;  %v1558_v12 = vpop.f32.mrb[26].mxu0  ;;  %v8229_v26 = vld [vmem:[%s10033_s27 + $0x38] sm:$0xff]  }
 0x56c   : > { %v7605_v14 = vpop.f32.mrb[27].mxu0 }
 0x56d   : > { %v1311_v28 = vmul.f32 1.442695, %v1310_v27 }
 0x56f   : > { %8332 = vpow2.f32 %v1311_v28 }
 0x579   : > { %v8333_v29 = vpop.eup %8332 }
 0x57a   : > { %v1313_v30 = vsel %vm957_vm2, %v8333_v29, 0.0 }
 0x57b   : > { %1314 = vadd.xlane.f32.xlu1 %v1313_v30 }
 0x608   : > { %v1315_v33 = vpop.xlane.xlu1 %1314 }
 0x609   : > { %8334 = vrcp.f32 %v1315_v33 }
 0x613   : > { %v8335_v34 = vpop.eup %8334 }
 0x614   : > { %v1317_v35 = vmul.f32 %v8335_v34, %v8333_v29 }
 0x616   : > { %1971 = vst.msk [vmem:[%s8744_s20 + $0x8] sm:$0xff] %vm957_vm2, %v1317_v35  ;;  %v1318_v37 = vpack.c.bf16 %v1317_v35, %v1317_v35  ;;  %v6803_v35 = vld [vmem:[%s9976_s7 + $0x3] ss:$0 sm:$0xff] }
 0x618   : > { %7579 = vmatmul.mubr.msk.bf16.vlgmr.msra.gmra.mrb[16].mxu1 %vm957_vm2, %v1318_v37 }
 0x619   : > { %7591 = vmatpush3.bf16.msra.mxu1 %v8222_v36  ;;  %7594 = vmatprep.mubr.msk.bf16.mxu1 %vm8472_vm0, %v8471_v1 }
 0x61a   : > { %7592 = vmatprep.subr.bf16.mxu1 %v8471_v1 }
 0x61d   : > { %7593 = vmatpush3.bf16.msra.mxu1 %v8223_v38 }
 0x61e   : > { %7606 = vmatprep.subr.bf16.mxu1 %v8471_v1 }
 0x620   : > { %7595 = vmatmul.mubr.msk.bf16.vlgmr.msra.gmra.mrb[20].mxu1 %vm785_vm1, %v8675_v6 }
 0x621   : > { %7608 = vmatprep.mubr.msk.bf16.mxu1 %vm8472_vm0, %v8471_v1 }
 0x6eb   : > { %v8825_v43 = vpop.f32.mrb[16].mxu1 }
 0x6ec   : > { %v7580_v44 = vpop.f32.mrb[17].mxu1 }
 0x6ed   : > { %v1363_v45 = vpop.f32.mrb[18].mxu1 }
 0x6ee   : > { %v7581_v46 = vpop.f32.mrb[19].mxu1 }
 0x6f3   : > { %v1490_v48 = vpop.f32.mrb[20].mxu1 }
 0x6f4   : > { %v1491_v49 = vadd.f32 %v6774_v47, %v1490_v48  ;;  %v7596_v50 = vpop.f32.mrb[21].mxu1  ;;  %v8232_v47 = vld [vmem:[%s9977_s8 + $0x30] sm:$0xff]   ;;  %v8233_v48 = vld [vmem:[%s9977_s8 + $0x38] sm:$0xff]  }
 0x6f5   : > { %v1493_v51 = vpop.f32.mrb[22].mxu1 }
 0x6f6   : > { %v1562_v53 = vpack.c.bf16 %v1491_v49, %v1491_v49  ;;  %v7597_v54 = vpop.f32.mrb[23].mxu1 }
 0x6f8   : > { %v1567_v55 = vsel %vm957_vm2, %v1562_v53, 0 }
 0x6f9   : > { %7607 = vmatpush3.bf16.xpose.msra.mxu1 %v1567_v55 }
 0x6fa   : > { %7618 = vmatprep.subr.bf16.mxu1 %v8471_v1 }
 0x700   : > { %7609 = vmatmul.mubr.msk.bf16.vlgmr.msra.gmra.mrb[24].mxu1 %vm957_vm2, %v1561_v58 }
 0x701   : > { %7622 = vmatprep.mubr.msk.bf16.mxu1 %vm8472_vm0, %v8471_v1  ;;  %7619 = vmatpush3.bf16.msra.mxu1 %v8230_v18 }
 0x702   : > { %7620 = vmatprep.subr.bf16.mxu1 %v8471_v1 }
 0x705   : > { %7621 = vmatpush3.bf16.msra.mxu1 %v8231_v19 }
 0x706   : > { %7634 = vmatprep.subr.bf16.mxu1 %v8471_v1 }
 0x708   : > { %7623 = vmatmul.mubr.msk.bf16.vlgmr.msra.gmra.mrb[28].mxu1 %vm785_vm1, %v8675_v6 }
 0x709   : > { %7638 = vmatprep.mubr.msk.bf16.mxu1 %vm8472_vm0, %v8471_v1  ;;  %7635 = vmatpush3.bf16.msra.mxu1 %v8232_v47 }
 0x70a   : > { %7636 = vmatprep.subr.bf16.mxu1 %v8471_v1 }
 0x70d   : > { %7637 = vmatpush3.bf16.msra.mxu1 %v8233_v48  ;;  %v6823_v48 = vld [vmem:[%s9982_s13] ss:$0 sm:$0xff] }
 0x70e   : > { %7648 = vmatprep.subr.bf16.mxu1 %v8471_v1 }
 0x710   : > { %7639 = vmatmul.mubr.msk.bf16.vlgmr.msra.gmra.mrb[32].mxu1 %vm785_vm1, %v8675_v6 }
 0x711   : > { %7650 = vmatprep.mubr.msk.bf16.mxu1 %vm8472_vm0, %v8471_v1 }
 0x7d3   : > { %v1603_v61 = vpop.f32.mrb[24].mxu1 }
 0x7d4   : > { %v1604_v62 = vadd.f32 %v1603_v61, %v8716_v24  ;;  %v7610_v63 = vpop.f32.mrb[25].mxu1 }
 0x7d5   : > { %v1606_v0 = vpop.f32.mrb[26].mxu1 }
 0x7d6   : > { %v7611_v2 = vpop.f32.mrb[27].mxu1  ;;  %v1609_v3 = vsel %vm957_vm2, %v1604_v62, -inf }
 0x7d7   : > { %1610 = vmax.xlane.f32.xlu0 %v1609_v3 }
 0x7db   : > { %v1727_v27 = vpop.f32.mrb[28].mxu1 }
 0x7dc   : > { %v7624_v28 = vpop.f32.mrb[29].mxu1  ;;  %v1728_v45 = vadd.f32 %v6794_v40, %v1727_v27  ;;  %v8404_v27 = vld [vmem:[%s8671_s25] sm:$0xff]  ;;  %v8239_v40 = vld [vmem:[%s10035_s23 + $0x48] sm:$0xff]  }
 0x7dd   : > { %v1730_v29 = vpop.f32.mrb[30].mxu1 }
 0x7de   : > { %v7625_v30 = vpop.f32.mrb[31].mxu1  ;;  %v1863_v46 = vpack.c.bf16 %v1728_v45, %v1728_v45 }
 0x7e3   : > { %v1857_v55 = vpop.f32.mrb[32].mxu1 }
 0x7e4   : > { %v7640_v58 = vpop.f32.mrb[33].mxu1 }
 0x7e5   : > { %v1860_v59 = vpop.f32.mrb[34].mxu1 }
 0x864   : > { %v1611_v4 = vpop.xlane.xlu0 %1610 }
 0x865   : > { %v1612_v5 = vsub.f32 %v1604_v62, %v1611_v4 }
 0x867   : > { %v1613_v7 = vmul.f32 1.442695, %v1612_v5 }
 0x869   : > { %8336 = vpow2.f32 %v1613_v7 }
 0x873   : > { %v8337_v8 = vpop.eup %8336 }
 0x874   : > { %v1615_v9 = vsel %vm957_vm2, %v8337_v8, 0.0 }
 0x875   : > { %1616 = vadd.xlane.f32.xlu1 %v1615_v9  ;;  %v8235_v9 = vld [vmem:[%s9979_s10 + $0x8] sm:$0xff]  }
 0x902   : > { %v1617_v20 = vpop.xlane.xlu1 %1616 }
 0x903   : > { %8338 = vrcp.f32 %v1617_v20 }
 0x90d   : > { %v8339_v21 = vpop.eup %8338 }
 0x90e   : > { %v1619_v22 = vmul.f32 %v8339_v21, %v8337_v8  ;;  %v8234_v8 = vld [vmem:[%s9979_s10] sm:$0xff]  }
 0x90f   : > { %v6818_v21 = vld [vmem:[%s9980_s11] ss:$0 sm:$0xff] }
 0x910   : > { %1972 = vst.msk [vmem:[%s8744_s20 + $0x10] sm:$0xff] %vm957_vm2, %v1619_v22  ;;  %v1620_v25 = vpack.c.bf16 %v1619_v22, %v1619_v22 }
 0x912   : > { %7615 = vmatmul.mubr.msk.bf16.vlgmr.msra.gmra.mrb[28].mxu0 %vm957_vm2, %v1620_v25 }
 0x913   : > { %7627 = vmatpush3.bf16.msra.mxu0 %v8228_v23  ;;  %7630 = vmatprep.mubr.msk.bf16.mxu0 %vm8472_vm0, %v8471_v1 }
 0x914   : > { %7628 = vmatprep.subr.bf16.mxu0 %v8471_v1 }
 0x917   : > { %7629 = vmatpush3.bf16.msra.mxu0 %v8229_v26 }
 0x918   : > { %7642 = vmatprep.subr.bf16.mxu0 %v8471_v1 }
 0x91a   : > { %7631 = vmatmul.mubr.msk.bf16.vlgmr.msra.gmra.mrb[32].mxu0 %vm785_vm1, %v8675_v6  ;;  %v6812_v6 = vld [vmem:[%s9978_s9 + $0x3] ss:$0 sm:$0xff] }
 0x91b   : > { %7644 = vmatprep.mubr.msk.bf16.mxu0 %vm8472_vm0, %v8471_v1  ;;  %v1858_v57 = vadd.f32 %v6812_v6, %v1857_v55 }
 0x91d   : > { %v1923_v60 = vpack.c.bf16 %v1858_v57, %v1858_v57 }
 0x91f   : > { %v1928_v61 = vsel %vm1020_vm3, %v1923_v60, 0  ;;  %v6829_v60 = vld [vmem:[%s10037_s5 + $0x4] ss:$0 sm:$0xff] }
 0x920   : > { %7649 = vmatpush3.bf16.msra.mxu1 %v1928_v61 }
 0x921   : > { %7662 = vmatprep.subr.bf16.mxu1 %v8471_v1 }
 0x9e5   : > { %v1662_v31 = vpop.f32.mrb[28].mxu0 }
 0x9e6   : > { %v7616_v32 = vpop.f32.mrb[29].mxu0 }
 0x9e7   : > { %v1665_v33 = vpop.f32.mrb[30].mxu0 }
 0x9e8   : > { %v7617_v34 = vpop.f32.mrb[31].mxu0 }
 0x9ed   : > { %v1792_v36 = vpop.f32.mrb[32].mxu0 }
 0x9ee   : > { %v1793_v37 = vadd.f32 %v6803_v35, %v1792_v36  ;;  %v7632_v38 = vpop.f32.mrb[33].mxu0  ;;  %v8236_v35 = vld [vmem:[%s10033_s27 + $0x40] sm:$0xff]  }
 0x9ef   : > { %v1795_v39 = vpop.f32.mrb[34].mxu0  ;;  %v757_v36 = vld [vmem:[%s736_s6] sm:$0xff]  ;;  %s10041_s6 = sld [smem:[#allocation16_spill]] }
 0x9f0   : > { %v1864_v41 = vpack.c.bf16 %v1793_v37, %v1793_v37  ;;  %v7633_v42 = vpop.f32.mrb[35].mxu0  ;;  %v8237_v37 = vld [vmem:[%s10033_s27 + $0x48] sm:$0xff]   ;;  %v8959_v38 = vpack.c.bf16 %v757_v36, %v757_v36  ;;  %v8238_v39 = vld [vmem:[%s10035_s23 + $0x40] sm:$0xff]   ;;  %v8245_v36 = vld [vmem:[%s10033_s27 + $0x58] sm:$0xff]  }
 0x9f2   : > { %v1869_v44 = vsel %vm957_vm2, %v1864_v41, 0 }
 0x9f3   : > { %7643 = vmatpush3.bf16.xpose.msra.mxu0 %v1869_v44 }
 0x9f4   : > { %7654 = vmatprep.subr.bf16.mxu0 %v8471_v1 }
 0x9f5   : > { %s9029_s25 = scalar_lea.vmem %s10041_s6, %s8665_s29  ;;  %s10042_s29 = sshll.u32 %s8658_s26, 6 }
 0x9f6   : > { %s9047_s2 = scalar_lea.vmem %s10043_s22, %s10042_s29  ;;  %s10046_s6 = smov 24  }
 0x9fa   : > { %7645 = vmatmul.mubr.msk.bf16.vlgmr.msra.gmra.mrb[36].mxu0 %vm957_vm2, %v1863_v46  ;;  %v6822_v46 = vld [vmem:[%s9981_s12] ss:$0 sm:$0xff] }
 0x9fb   : > { %7658 = vmatprep.mubr.msk.bf16.mxu0 %vm8472_vm0, %v8471_v1  ;;  %7655 = vmatpush3.bf16.msra.mxu0 %v8234_v8 }
 0x9fc   : > { %7656 = vmatprep.subr.bf16.mxu0 %v8471_v1 }
 0x9ff   : > { %7657 = vmatpush3.bf16.msra.mxu0 %v8235_v9 }
 0xa00   : > { %7670 = vmatprep.subr.bf16.mxu0 %v8471_v1 }
 0xacd   : > { %v1905_v49 = vpop.f32.mrb[36].mxu0 }
 0xace   : > { %v1906_v50 = vadd.f32 %v1905_v49, %v8716_v24  ;;  %v7646_v51 = vpop.f32.mrb[37].mxu0  ;;  %v7641_v24 = vpop.f32.mrb[35].mxu1 }
 0xacf   : > { %v1908_v52 = vpop.f32.mrb[38].mxu0 }
 0xad0   : > { %v7647_v53 = vpop.f32.mrb[39].mxu0  ;;  %v1911_v54 = vsel %vm957_vm2, %v1906_v50, -inf  ;;  %v6838_v52 = vld [vmem:[%s9976_s7 + $0x4] ss:$0 sm:$0xff] }
 0xad1   : > { %1912 = vmax.xlane.f32.xlu0 %v1911_v54 }
 0xae7   : > { %1975 = vrot.lane.b32.xlu0 %v8825_v43, %s10008_s24 }
 0xb5e   : > { %v1913_v62 = vpop.xlane.xlu0 %1912 }
 0xb5f   : > { %v1914_v63 = vsub.f32 %v1906_v50, %v1913_v62 }
 0xb61   : > { %v1915_v0 = vmul.f32 1.442695, %v1914_v63 }
 0xb62   : > { %v1976_v14 = vpop.permute.xlu0 %1975 }
 0xb63   : > { %8340 = vpow2.f32 %v1915_v0  ;;  %v1986_v16 = vsel %vm957_vm2, %v8763_v56, %v1976_v14  ;;  %v8240_v0 = vld [vmem:[%s10035_s23 + $0x50] sm:$0xff]  }
 0xb6d   : > { %v8341_v43 = vpop.eup %8340 }
 0xb6e   : > { %v1917_v2 = vsel %vm957_vm2, %v8341_v43, 0.0 }
 0xb6f   : > { %1918 = vadd.xlane.f32.xlu1 %v1917_v2 }
 0xb80   : > { %1979 = vrot.lane.b32.xlu1 %v1662_v31, %s10004_s3  ;;  %s10006_s3 = smov 24  }
 0xbfc   : > { %v1919_v3 = vpop.xlane.xlu1 %1918 }
 0xbfd   : > { %8342 = vrcp.f32 %v1919_v3  ;;  %v8241_v3 = vld [vmem:[%s10035_s23 + $0x58] sm:$0xff]  }
 0xc00   : > { %v1980_v15 = vpop.permute.xlu1 %1979 }
 0xc01   : > { %v1988_v17 = vsel %vm1987_vm4, %v1986_v16, %v1980_v15 }
 0xc07   : > { %v8343_v4 = vpop.eup %8342 }
 0xc08   : > { %v1921_v5 = vmul.f32 %v8343_v4, %v8341_v43  ;;  %v8242_v4 = vld [vmem:[%s9977_s8 + $0x40] sm:$0xff]  }
 0xc0a   : > { %1973 = vst.msk [vmem:[%s8744_s20 + $0x18] sm:$0xff] %vm957_vm2, %v1921_v5  ;;  %v1922_v7 = vpack.c.bf16 %v1921_v5, %v1921_v5  ;;  %v8243_v5 = vld [vmem:[%s9977_s8 + $0x48] sm:$0xff]  }
 0xc0c   : > { %7651 = vmatmul.mubr.msk.bf16.vlgmr.msra.gmra.mrb[36].mxu1 %vm957_vm2, %v1922_v7  ;;  %v9032_v7 = vld [vmem:[%s9029_s25] sm:$0xff] }
 0xc0d   : > { %7666 = vmatprep.mubr.msk.bf16.mxu1 %vm8472_vm0, %v8471_v1  ;;  %7663 = vmatpush3.bf16.msra.mxu1 %v8238_v39 }
 0xc0e   : > { %7664 = vmatprep.subr.bf16.mxu1 %v8471_v1 }
 0xc11   : > { %7665 = vmatpush3.bf16.msra.mxu1 %v8239_v40 }
 0xc12   : > { %7678 = vmatprep.subr.bf16.mxu1 %v8471_v1 }
 0xcdf   : > { %v1964_v10 = vpop.f32.mrb[36].mxu1 }
 0xce0   : > { %1983 = vrot.lane.b32.xlu1 %v1964_v10, %s10006_s3  ;;  %v7652_v11 = vpop.f32.mrb[37].mxu1  ;;  %s10045_s3 = smov 16  }
 0xce1   : > { %v1967_v12 = vpop.f32.mrb[38].mxu1 }
 0xce2   : > { %v7653_v13 = vpop.f32.mrb[39].mxu1 }
 0xd52   : > { %v1984_v18 = vpop.permute.xlu1 %1983 }
 0xd53   : > { %v1990_v19 = vsel %vm1989_vm5, %v1988_v17, %v1984_v18  ;;  %v6847_v18 = vld [vmem:[%s9978_s9 + $0x4] ss:$0 sm:$0xff] }
 0xd54   : > { %v1991_v20 = vpack.c.bf16 %v1990_v19, %v1990_v19 }
 0xd56   : > { %7659 = vmatmul.mubr.msk.bf16.vlgmr.msra.gmra.mrb[40].mxu0 %vm785_vm1, %v1991_v20 }
 0xd57   : > { %7674 = vmatprep.mubr.msk.bf16.mxu0 %vm8472_vm0, %v8471_v1  ;;  %7671 = vmatpush3.bf16.msra.mxu0 %v8236_v35 }
 0xd58   : > { %7672 = vmatprep.subr.bf16.mxu0 %v8471_v1 }
 0xd5b   : > { %7673 = vmatpush3.bf16.msra.mxu0 %v8237_v37 }
 0xd5c   : > { %7686 = vmatprep.subr.bf16.mxu0 %v8471_v1 }
 0xd5e   : > { %7675 = vmatmul.mubr.msk.bf16.vlgmr.msra.gmra.mrb[44].mxu0 %vm785_vm1, %v8959_v38 }
 0xd5f   : > { %7688 = vmatprep.mubr.msk.bf16.mxu0 %vm8472_vm0, %v8471_v1 }
 0xe29   : > { %v2052_v22 = vpop.f32.mrb[40].mxu0 }
 0xe2a   : > { %v2053_v23 = vadd.f32 %v6818_v21, %v2052_v22  ;;  %v7660_v25 = vpop.f32.mrb[41].mxu0 }
 0xe2b   : > { %v2055_v56 = vpop.f32.mrb[42].mxu0 }
 0xe2c   : > { %v7661_v26 = vpop.f32.mrb[43].mxu0  ;;  %v2058_v28 = vadd.f32 %v8404_v27, %v2053_v23 }
 0xe2e   : > { %v2059_v29 = vsel %vm785_vm1, %v2058_v28, 0.0 }
 0xe2f   : > { %2060 = vadd.xlane.f32.xlu1 %v2059_v29 }
 0xe31   : > { %v2220_v53 = vpop.f32.mrb[44].mxu0 }
 0xe32   : > { %v2221_v54 = vadd.f32 %v6838_v52, %v2220_v53  ;;  %v7676_v6 = vpop.f32.mrb[45].mxu0  ;;  %v6858_v52 = vld [vmem:[%s10037_s5 + $0x5] ss:$0 sm:$0xff] }
 0xe33   : > { %v2223_v55 = vpop.f32.mrb[46].mxu0  ;;  %v8246_v6 = vld [vmem:[%s10035_s23 + $0x60] sm:$0xff]  }
 0xe34   : > { %v2292_v57 = vpack.c.bf16 %v2221_v54, %v2221_v54  ;;  %v7677_v58 = vpop.f32.mrb[47].mxu0 }
 0xe35   : > { %v8248_v58 = vld [vmem:[%s9977_s8 + $0x50] sm:$0xff]  }
 0xe36   : > { %v2297_v59 = vsel %vm957_vm2, %v2292_v57, 0  ;;  %v8247_v57 = vld [vmem:[%s10035_s23 + $0x68] sm:$0xff]  }
 0xe37   : > { %7687 = vmatpush3.bf16.xpose.msra.mxu0 %v2297_v59  ;;  %v8249_v59 = vld [vmem:[%s9977_s8 + $0x58] sm:$0xff]  }
 0xe38   : > { %7698 = vmatprep.subr.bf16.mxu0 %v8471_v1 }
 0xebc   : > { %v2061_v30 = vpop.xlane.xlu1 %2060 }
 0xebd   : > { %v2063_v31 = vmul.f32 0.03125, %v2061_v30 }
 0xebf   : > { %v2064_v32 = vsub.f32 %v2058_v28, %v2063_v31 }
 0xec1   : > { %v2065_v33 = vmul.f32 %v2064_v32, %v2064_v32 }
 0xec3   : > { %v2066_v34 = vsel %vm785_vm1, %v2065_v33, 0.0 }
 0xec4   : > { %2067 = vadd.xlane.f32.xlu0 %v2066_v34  ;;  %v8244_v34 = vld [vmem:[%s10033_s27 + $0x50] sm:$0xff]  }
 0xf51   : > { %v2068_v41 = vpop.xlane.xlu0 %2067 }
 0xf52   : > { %v2069_v42 = vmul.f32 0.03125, %v2068_v41 }
 0xf54   : > { %v2070_v44 = vadd.f32 1e-06, %v2069_v42  ;;  %v6867_v42 = vld [vmem:[%s9976_s7 + $0x5] ss:$0 sm:$0xff] }
 0xf56   : > { %8344 = vrsqrt.f32 %v2070_v44 }
 0xf60   : > { %v8345_v45 = vpop.eup %8344 }
 0xf61   : > { %v2072_v47 = vmul.f32 %v8345_v45, %v2064_v32 }
 0xf63   : > { %v2080_v49 = vmul.f32 %v6822_v46, %v2072_v47 }
 0xf65   : > { %v8980_v50 = vadd.f32 %v6823_v48, %v2080_v49 }
 0xf67   : > { %v8984_v51 = vpack.c.bf16 %v8980_v50, %v8980_v50 }
 0xf69   : > { %7667 = vmatmul.mubr.msk.bf16.vlgmr.msra.gmra.mrb[40].mxu1 %vm785_vm1, %v8984_v51 }
 0xf6a   : > { %7682 = vmatprep.mubr.msk.bf16.mxu1 %vm8472_vm0, %v8471_v1  ;;  %7679 = vmatpush3.bf16.msra.mxu1 %v8242_v4 }
 0xf6b   : > { %7680 = vmatprep.subr.bf16.mxu1 %v8471_v1 }
 0xf6e   : > { %7681 = vmatpush3.bf16.msra.mxu1 %v8243_v5 }
 0xf6f   : > { %7692 = vmatprep.subr.bf16.mxu1 %v8471_v1 }
 0xf71   : > { %7683 = vmatmul.mubr.msk.bf16.vlgmr.msra.gmra.mrb[44].mxu1 %vm785_vm1, %v8959_v38 }
 0xf72   : > { %7694 = vmatprep.mubr.msk.bf16.mxu1 %vm8472_vm0, %v8471_v1 }
0x103c   : > { %v2152_v24 = vpop.f32.mrb[40].mxu1 }
0x103d   : > { %v2153_v61 = vadd.f32 %v6829_v60, %v2152_v24  ;;  %v7668_v62 = vpop.f32.mrb[41].mxu1 }
0x103e   : > { %v2155_v63 = vpop.f32.mrb[42].mxu1 }
0x103f   : > { %v2291_v43 = vpack.c.bf16 %v2153_v61, %v2153_v61  ;;  %v7669_v2 = vpop.f32.mrb[43].mxu1 }
0x1041   : > { %7689 = vmatmul.mubr.msk.bf16.vlgmr.msra.gmra.mrb[48].mxu0 %vm957_vm2, %v2291_v43 }
0x1042   : > { %7699 = vmatpush3.bf16.msra.mxu0 %v8240_v0  ;;  %7702 = vmatprep.mubr.msk.bf16.mxu0 %vm8472_vm0, %v8471_v1 }
0x1043   : > { %7700 = vmatprep.subr.bf16.mxu0 %v8471_v1 }
0x1044   : > { %v2285_v19 = vpop.f32.mrb[44].mxu1 }
0x1045   : > { %v2286_v20 = vadd.f32 %v6847_v18, %v2285_v19  ;;  %v7684_v21 = vpop.f32.mrb[45].mxu1 }
0x1046   : > { %7701 = vmatpush3.bf16.msra.mxu0 %v8241_v3  ;;  %v2288_v22 = vpop.f32.mrb[46].mxu1 }
0x1047   : > { %7714 = vmatprep.subr.bf16.mxu0 %v8471_v1  ;;  %v2351_v23 = vpack.c.bf16 %v2286_v20, %v2286_v20  ;;  %v7685_v25 = vpop.f32.mrb[47].mxu1 }
0x1049   : > { %7703 = vmatmul.mubr.msk.bf16.vlgmr.msra.gmra.mrb[52].mxu0 %vm785_vm1, %v8984_v51  ;;  %v2356_v56 = vsel %vm1020_vm3, %v2351_v23, 0  ;;  %v8250_v23 = vld [vmem:[%s10033_s27 + $0x60] sm:$0xff]  }
0x104a   : > { %7718 = vmatprep.mubr.msk.bf16.mxu0 %vm8472_vm0, %v8471_v1  ;;  %7693 = vmatpush3.bf16.msra.mxu1 %v2356_v56  ;;  %v8251_v56 = vld [vmem:[%s10033_s27 + $0x68] sm:$0xff]  }
0x104b   : > { %7706 = vmatprep.subr.bf16.mxu1 %v8471_v1  ;;  %7715 = vmatpush3.bf16.msra.mxu0 %v8248_v58 }
0x104c   : > { %7716 = vmatprep.subr.bf16.mxu0 %v8471_v1 }
0x104f   : > { %7717 = vmatpush3.bf16.msra.mxu0 %v8249_v59  ;;  %v6905_v59 = vld [vmem:[%s9978_s9 + $0x6] ss:$0 sm:$0xff] }
0x1050   : > { %7728 = vmatprep.subr.bf16.mxu0 %v8471_v1 }
0x1052   : > { %7719 = vmatmul.mubr.msk.bf16.vlgmr.msra.gmra.mrb[56].mxu0 %vm785_vm1, %v8959_v38 }
0x1053   : > { %7730 = vmatprep.mubr.msk.bf16.mxu0 %vm8472_vm0, %v8471_v1 }
0x1114   : > { %v2333_v8 = vpop.f32.mrb[48].mxu0 }
0x1115   : > { %v2334_v9 = vadd.f32 %v2333_v8, %v9032_v7  ;;  %v7690_v10 = vpop.f32.mrb[49].mxu0 }
0x1116   : > { %v2336_v11 = vpop.f32.mrb[50].mxu0 }
0x1117   : > { %v7691_v12 = vpop.f32.mrb[51].mxu0  ;;  %v2339_v13 = vsel %vm957_vm2, %v2334_v9, -inf }
0x1118   : > { %2340 = vmax.xlane.f32.xlu0 %v2339_v13 }
0x111c   : > { %v2457_v14 = vpop.f32.mrb[52].mxu0 }
0x111d   : > { %v7704_v15 = vpop.f32.mrb[53].mxu0  ;;  %v2458_v54 = vadd.f32 %v6858_v52, %v2457_v14 }
0x111e   : > { %v2460_v16 = vpop.f32.mrb[54].mxu0  ;;  %v6876_v15 = vld [vmem:[%s9978_s9 + $0x5] ss:$0 sm:$0xff] }
0x111f   : > { %v7705_v17 = vpop.f32.mrb[55].mxu0  ;;  %v2593_v55 = vpack.c.bf16 %v2458_v54, %v2458_v54 }
0x1125   : > { %v2587_v12 = vpop.f32.mrb[56].mxu0 }
0x1126   : > { %v7720_v13 = vpop.f32.mrb[57].mxu0  ;;  %v2588_v17 = vadd.f32 %v6876_v15, %v2587_v12  ;;  %v8256_v12 = vld [vmem:[%s10033_s27 + $0x70] sm:$0xff]  }
0x1127   : > { %v2590_v14 = vpop.f32.mrb[58].mxu0 }
0x1128   : > { %v7721_v16 = vpop.f32.mrb[59].mxu0  ;;  %v2653_v18 = vpack.c.bf16 %v2588_v17, %v2588_v17  ;;  %v8257_v14 = vld [vmem:[%s10033_s27 + $0x78] sm:$0xff]  }
0x112a   : > { %v2658_v19 = vsel %vm1020_vm3, %v2653_v18, 0 }
0x112b   : > { %7729 = vmatpush3.bf16.msra.mxu0 %v2658_v19  ;;  %v6925_v19 = vld [vmem:[%s9976_s7 + $0x7] ss:$0 sm:$0xff] }
0x112c   : > { %7742 = vmatprep.subr.bf16.mxu0 %v8471_v1 }
0x11a5   : > { %v2341_v26 = vpop.xlane.xlu0 %2340 }
0x11a6   : > { %v2342_v27 = vsub.f32 %v2334_v9, %v2341_v26 }
0x11a8   : > { %v2343_v28 = vmul.f32 1.442695, %v2342_v27 }
0x11aa   : > { %8346 = vpow2.f32 %v2343_v28 }
0x11b4   : > { %v8347_v29 = vpop.eup %8346 }
0x11b5   : > { %v2345_v30 = vsel %vm957_vm2, %v8347_v29, 0.0 }
0x11b6   : > { %2346 = vadd.xlane.f32.xlu0 %v2345_v30  ;;  %v6896_v30 = vld [vmem:[%s9976_s7 + $0x6] ss:$0 sm:$0xff] }
0x1243   : > { %v2347_v31 = vpop.xlane.xlu0 %2346 }
0x1244   : > { %8348 = vrcp.f32 %v2347_v31 }
0x124e   : > { %v8349_v32 = vpop.eup %8348 }
0x124f   : > { %v2349_v33 = vmul.f32 %v8349_v32, %v8347_v29 }
0x1251   : > { %3304 = vst.msk [vmem:[%s9047_s2] sm:$0xff] %vm957_vm2, %v2349_v33  ;;  %v2350_v35 = vpack.c.bf16 %v2349_v33, %v2349_v33 }
0x1253   : > { %7695 = vmatmul.mubr.msk.bf16.vlgmr.msra.gmra.mrb[48].mxu1 %vm957_vm2, %v2350_v35 }
0x1254   : > { %7707 = vmatpush3.bf16.msra.mxu1 %v8244_v34  ;;  %7710 = vmatprep.mubr.msk.bf16.mxu1 %vm8472_vm0, %v8471_v1 }
0x1255   : > { %7708 = vmatprep.subr.bf16.mxu1 %v8471_v1 }
0x1258   : > { %7709 = vmatpush3.bf16.msra.mxu1 %v8245_v36 }
0x1259   : > { %7722 = vmatprep.subr.bf16.mxu1 %v8471_v1 }
0x125b   : > { %7711 = vmatmul.mubr.msk.bf16.vlgmr.msra.gmra.mrb[52].mxu1 %vm785_vm1, %v8959_v38 }
0x125c   : > { %7724 = vmatprep.mubr.msk.bf16.mxu1 %vm8472_vm0, %v8471_v1 }
0x1326   : > { %v9066_v37 = vpop.f32.mrb[48].mxu1 }
0x1327   : > { %v7696_v39 = vpop.f32.mrb[49].mxu1 }
0x1328   : > { %v2395_v40 = vpop.f32.mrb[50].mxu1  ;;  %v6887_v39 = vld [vmem:[%s10037_s5 + $0x6] ss:$0 sm:$0xff] }
0x1329   : > { %v7697_v41 = vpop.f32.mrb[51].mxu1 }
0x132e   : > { %v2522_v44 = vpop.f32.mrb[52].mxu1 }
0x132f   : > { %v2523_v45 = vadd.f32 %v6867_v42, %v2522_v44  ;;  %v7712_v46 = vpop.f32.mrb[53].mxu1  ;;  %v8252_v42 = vld [vmem:[%s10035_s23 + $0x70] sm:$0xff]  }
0x1330   : > { %v2525_v47 = vpop.f32.mrb[54].mxu1  ;;  %v8254_v46 = vld [vmem:[%s9977_s8 + $0x60] sm:$0xff]  }
0x1331   : > { %v2594_v48 = vpack.c.bf16 %v2523_v45, %v2523_v45  ;;  %v7713_v49 = vpop.f32.mrb[55].mxu1  ;;  %v8253_v45 = vld [vmem:[%s10035_s23 + $0x78] sm:$0xff]   ;;  %v8255_v47 = vld [vmem:[%s9977_s8 + $0x68] sm:$0xff]  }
0x1333   : > { %v2599_v53 = vsel %vm957_vm2, %v2594_v48, 0 }
0x1334   : > { %7723 = vmatpush3.bf16.xpose.msra.mxu1 %v2599_v53 }
0x1335   : > { %7734 = vmatprep.subr.bf16.mxu1 %v8471_v1 }
0x133b   : > { %7725 = vmatmul.mubr.msk.bf16.vlgmr.msra.gmra.mrb[56].mxu1 %vm957_vm2, %v2593_v55 }
0x133c   : > { %7735 = vmatpush3.bf16.msra.mxu1 %v8246_v6  ;;  %7738 = vmatprep.mubr.msk.bf16.mxu1 %vm8472_vm0, %v8471_v1 }
0x133d   : > { %7736 = vmatprep.subr.bf16.mxu1 %v8471_v1 }
0x1340   : > { %7737 = vmatpush3.bf16.msra.mxu1 %v8247_v57 }
0x1341   : > { %7750 = vmatprep.subr.bf16.mxu1 %v8471_v1 }
0x1343   : > { %7739 = vmatmul.mubr.msk.bf16.vlgmr.msra.gmra.mrb[60].mxu1 %vm785_vm1, %v8984_v51 }
0x1344   : > { %7754 = vmatprep.mubr.msk.bf16.mxu1 %vm8472_vm0, %v8471_v1  ;;  %7751 = vmatpush3.bf16.msra.mxu1 %v8254_v46 }
0x1345   : > { %7752 = vmatprep.subr.bf16.mxu1 %v8471_v1 }
0x1348   : > { %7753 = vmatpush3.bf16.msra.mxu1 %v8255_v47 }
0x1349   : > { %7764 = vmatprep.subr.bf16.mxu1 %v8471_v1 }
0x134b   : > { %7755 = vmatmul.mubr.msk.bf16.vlgmr.msra.gmra.mrb[64].mxu1 %vm785_vm1, %v8959_v38 }
0x134c   : > { %7766 = vmatprep.mubr.msk.bf16.mxu1 %vm8472_vm0, %v8471_v1 }
0x140e   : > { %v2635_v60 = vpop.f32.mrb[56].mxu1 }
0x140f   : > { %v2636_v24 = vadd.f32 %v2635_v60, %v9032_v7  ;;  %v7726_v61 = vpop.f32.mrb[57].mxu1 }
0x1410   : > { %v2638_v62 = vpop.f32.mrb[58].mxu1 }
0x1411   : > { %v7727_v63 = vpop.f32.mrb[59].mxu1  ;;  %v2641_v0 = vsel %vm957_vm2, %v2636_v24, -inf }
0x1412   : > { %2642 = vmax.xlane.f32.xlu1 %v2641_v0 }
0x1416   : > { %v2759_v43 = vpop.f32.mrb[60].mxu1 }
0x1417   : > { %v7740_v2 = vpop.f32.mrb[61].mxu1  ;;  %v2760_v41 = vadd.f32 %v6887_v39, %v2759_v43 }
0x1418   : > { %v2762_v3 = vpop.f32.mrb[62].mxu1 }
0x1419   : > { %v7741_v4 = vpop.f32.mrb[63].mxu1  ;;  %v2895_v44 = vpack.c.bf16 %v2760_v41, %v2760_v41 }
0x141e   : > { %v2889_v60 = vpop.f32.mrb[64].mxu1 }
0x141f   : > { %v7756_v61 = vpop.f32.mrb[65].mxu1 }
0x1420   : > { %v2892_v62 = vpop.f32.mrb[66].mxu1 }
0x1421   : > { %v7757_v0 = vpop.f32.mrb[67].mxu1 }
0x149f   : > { %v2643_v5 = vpop.xlane.xlu1 %2642 }
0x14a0   : > { %v2644_v8 = vsub.f32 %v2636_v24, %v2643_v5  ;;  %v2890_v24 = vadd.f32 %v6905_v59, %v2889_v60  ;;  %v8261_v59 = vld [vmem:[%s9979_s10 + $0x18] sm:$0xff]  }
0x14a2   : > { %v2645_v9 = vmul.f32 1.442695, %v2644_v8  ;;  %v2955_v63 = vpack.c.bf16 %v2890_v24, %v2890_v24 }
0x14a4   : > { %8350 = vpow2.f32 %v2645_v9  ;;  %v2960_v43 = vsel %vm1020_vm3, %v2955_v63, 0 }
0x14a5   : > { %7765 = vmatpush3.bf16.msra.mxu1 %v2960_v43 }
0x14a6   : > { %7778 = vmatprep.subr.bf16.mxu1 %v8471_v1 }
0x14ae   : > { %v8351_v10 = vpop.eup %8350 }
0x14af   : > { %v2647_v11 = vsel %vm957_vm2, %v8351_v10, 0.0 }
0x14b0   : > { %2648 = vadd.xlane.f32.xlu0 %v2647_v11 }
0x153d   : > { %v2649_v20 = vpop.xlane.xlu0 %2648 }
0x153e   : > { %8352 = vrcp.f32 %v2649_v20 }
0x1548   : > { %v8353_v21 = vpop.eup %8352 }
0x1549   : > { %v2651_v22 = vmul.f32 %v8353_v21, %v8351_v10 }
0x154b   : > { %3305 = vst.msk [vmem:[%s9047_s2 + $0x8] sm:$0xff] %vm957_vm2, %v2651_v22  ;;  %v2652_v25 = vpack.c.bf16 %v2651_v22, %v2651_v22 }
0x154d   : > { %7731 = vmatmul.mubr.msk.bf16.vlgmr.msra.gmra.mrb[60].mxu0 %vm957_vm2, %v2652_v25 }
0x154e   : > { %7743 = vmatpush3.bf16.msra.mxu0 %v8250_v23  ;;  %7746 = vmatprep.mubr.msk.bf16.mxu0 %vm8472_vm0, %v8471_v1 }
0x154f   : > { %7744 = vmatprep.subr.bf16.mxu0 %v8471_v1 }
0x1552   : > { %7745 = vmatpush3.bf16.msra.mxu0 %v8251_v56 }
0x1553   : > { %7758 = vmatprep.subr.bf16.mxu0 %v8471_v1 }
0x1555   : > { %7747 = vmatmul.mubr.msk.bf16.vlgmr.msra.gmra.mrb[64].mxu0 %vm785_vm1, %v8959_v38 }
0x1556   : > { %7760 = vmatprep.mubr.msk.bf16.mxu0 %vm8472_vm0, %v8471_v1 }
0x1620   : > { %v9128_v26 = vpop.f32.mrb[60].mxu0 }
0x1621   : > { %v7732_v27 = vpop.f32.mrb[61].mxu0 }
0x1622   : > { %v2697_v28 = vpop.f32.mrb[62].mxu0  ;;  %v6916_v27 = vld [vmem:[%s10037_s5 + $0x7] ss:$0 sm:$0xff] }
0x1623   : > { %v7733_v29 = vpop.f32.mrb[63].mxu0 }
0x1628   : > { %v2824_v31 = vpop.f32.mrb[64].mxu0 }
0x1629   : > { %v2825_v32 = vadd.f32 %v6896_v30, %v2824_v31  ;;  %v7748_v33 = vpop.f32.mrb[65].mxu0  ;;  %v8258_v31 = vld [vmem:[%s9977_s8 + $0x70] sm:$0xff]  }
0x162a   : > { %v2827_v34 = vpop.f32.mrb[66].mxu0 }
0x162b   : > { %v2896_v35 = vpack.c.bf16 %v2825_v32, %v2825_v32  ;;  %v7749_v36 = vpop.f32.mrb[67].mxu0  ;;  %v8259_v32 = vld [vmem:[%s9977_s8 + $0x78] sm:$0xff]  }
0x162d   : > { %v2901_v40 = vsel %vm957_vm2, %v2896_v35, 0 }
0x162e   : > { %7759 = vmatpush3.bf16.xpose.msra.mxu0 %v2901_v40 }
0x162f   : > { %7770 = vmatprep.subr.bf16.mxu0 %v8471_v1 }
0x1635   : > { %7761 = vmatmul.mubr.msk.bf16.vlgmr.msra.gmra.mrb[68].mxu0 %vm957_vm2, %v2895_v44 }
0x1636   : > { %7771 = vmatpush3.bf16.msra.mxu0 %v8252_v42  ;;  %7774 = vmatprep.mubr.msk.bf16.mxu0 %vm8472_vm0, %v8471_v1 }
0x1637   : > { %7772 = vmatprep.subr.bf16.mxu0 %v8471_v1 }
0x163a   : > { %7773 = vmatpush3.bf16.msra.mxu0 %v8253_v45 }
0x163b   : > { %7786 = vmatprep.subr.bf16.mxu0 %v8471_v1 }
0x163d   : > { %7775 = vmatmul.mubr.msk.bf16.vlgmr.msra.gmra.mrb[72].mxu0 %vm785_vm1, %v8984_v51 }
0x163e   : > { %7790 = vmatprep.mubr.msk.bf16.mxu0 %vm8472_vm0, %v8471_v1  ;;  %7787 = vmatpush3.bf16.msra.mxu0 %v8258_v31 }
0x163f   : > { %7788 = vmatprep.subr.bf16.mxu0 %v8471_v1 }
0x1642   : > { %7789 = vmatpush3.bf16.msra.mxu0 %v8259_v32 }
0x1643   : > { %7800 = vmatprep.subr.bf16.mxu0 %v8471_v1 }
0x1645   : > { %7791 = vmatmul.mubr.msk.bf16.vlgmr.msra.gmra.mrb[76].mxu0 %vm785_vm1, %v8959_v38 }
0x1646   : > { %7802 = vmatprep.mubr.msk.bf16.mxu0 %vm8472_vm0, %v8471_v1 }
0x1708   : > { %v2937_v51 = vpop.f32.mrb[68].mxu0 }
0x1709   : > { %v2938_v48 = vadd.f32 %v2937_v51, %v9032_v7  ;;  %v7762_v49 = vpop.f32.mrb[69].mxu0 }
0x170a   : > { %v2940_v52 = vpop.f32.mrb[70].mxu0 }
0x170b   : > { %v7763_v53 = vpop.f32.mrb[71].mxu0  ;;  %v2943_v54 = vsel %vm957_vm2, %v2938_v48, -inf }
0x170c   : > { %2944 = vmax.xlane.f32.xlu1 %v2943_v54 }
0x1710   : > { %v3061_v6 = vpop.f32.mrb[72].mxu0 }
0x1711   : > { %v7776_v55 = vpop.f32.mrb[73].mxu0  ;;  %v3062_v29 = vadd.f32 %v6916_v27, %v3061_v6 }
0x1712   : > { %v3064_v57 = vpop.f32.mrb[74].mxu0 }
0x1713   : > { %v7777_v58 = vpop.f32.mrb[75].mxu0  ;;  %v3197_v30 = vpack.c.bf16 %v3062_v29, %v3062_v29 }
0x1714   : > { %v8260_v58 = vld [vmem:[%s9979_s10 + $0x10] sm:$0xff]  }
0x1718   : > { %v3191_v47 = vpop.f32.mrb[76].mxu0 }
0x1799   : > { %v2945_v2 = vpop.xlane.xlu1 %2944 }
0x179a   : > { %v2946_v3 = vsub.f32 %v2938_v48, %v2945_v2  ;;  %v6934_v48 = vld [vmem:[%s9978_s9 + $0x7] ss:$0 sm:$0xff] }
0x179b   : > { %v3192_v52 = vadd.f32 %v6934_v48, %v3191_v47  ;;  %v6957_v47 = vld [vmem:[%s9986_s17] ss:$0 sm:$0xff] }
0x179c   : > { %v2947_v4 = vmul.f32 1.442695, %v2946_v3 }
0x179e   : > { %8354 = vpow2.f32 %v2947_v4 }
0x17a8   : > { %v8355_v5 = vpop.eup %8354 }
0x17a9   : > { %v2949_v8 = vsel %vm957_vm2, %v8355_v5, 0.0 }
0x17aa   : > { %2950 = vadd.xlane.f32.xlu0 %v2949_v8  ;;  %v6945_v8 = vld [vmem:[%s9980_s11 + $0x1] ss:$0 sm:$0xff] }
0x1837   : > { %v2951_v9 = vpop.xlane.xlu0 %2950 }
0x1838   : > { %8356 = vrcp.f32 %v2951_v9 }
0x1842   : > { %v8357_v10 = vpop.eup %8356 }
0x1843   : > { %v2953_v11 = vmul.f32 %v8357_v10, %v8355_v5 }
0x1845   : > { %3306 = vst.msk [vmem:[%s9047_s2 + $0x10] sm:$0xff] %vm957_vm2, %v2953_v11  ;;  %v2954_v13 = vpack.c.bf16 %v2953_v11, %v2953_v11 }
0x1847   : > { %7767 = vmatmul.mubr.msk.bf16.vlgmr.msra.gmra.mrb[68].mxu1 %vm957_vm2, %v2954_v13 }
0x1848   : > { %7779 = vmatpush3.bf16.msra.mxu1 %v8256_v12  ;;  %7782 = vmatprep.mubr.msk.bf16.mxu1 %vm8472_vm0, %v8471_v1 }
0x1849   : > { %7780 = vmatprep.subr.bf16.mxu1 %v8471_v1 }
0x184c   : > { %7781 = vmatpush3.bf16.msra.mxu1 %v8257_v14 }
0x184d   : > { %7794 = vmatprep.subr.bf16.mxu1 %v8471_v1 }
0x184f   : > { %7783 = vmatmul.mubr.msk.bf16.vlgmr.msra.gmra.mrb[72].mxu1 %vm785_vm1, %v8959_v38 }
0x1850   : > { %7796 = vmatprep.mubr.msk.bf16.mxu1 %vm8472_vm0, %v8471_v1 }
0x191a   : > { %v2996_v15 = vpop.f32.mrb[68].mxu1 }
0x191b   : > { %v7768_v16 = vpop.f32.mrb[69].mxu1 }
0x191c   : > { %v2999_v17 = vpop.f32.mrb[70].mxu1 }
0x191d   : > { %v7769_v18 = vpop.f32.mrb[71].mxu1 }
0x1922   : > { %v3126_v20 = vpop.f32.mrb[72].mxu1 }
0x1923   : > { %v3127_v21 = vadd.f32 %v6925_v19, %v3126_v20  ;;  %v7784_v22 = vpop.f32.mrb[73].mxu1  ;;  %v8262_v20 = vld [vmem:[%s9983_s14] sm:$0xff]  }
0x1924   : > { %v3129_v23 = vpop.f32.mrb[74].mxu1  ;;  %v8265_v22 = vld [vmem:[%s9985_s16 + $0x8] sm:$0xff]  }
0x1925   : > { %v3198_v25 = vpack.c.bf16 %v3127_v21, %v3127_v21  ;;  %v7785_v56 = vpop.f32.mrb[75].mxu1  ;;  %v8264_v21 = vld [vmem:[%s9985_s16] sm:$0xff]  }
0x1927   : > { %v3203_v28 = vsel %vm957_vm2, %v3198_v25, 0 }
0x1928   : > { %7795 = vmatpush3.bf16.xpose.msra.mxu1 %v3203_v28  ;;  %v6950_v28 = vld [vmem:[%s9981_s12 + $0x1] ss:$0 sm:$0xff] }
0x1929   : > { %7806 = vmatprep.subr.bf16.mxu1 %v8471_v1 }
0x192f   : > { %7797 = vmatmul.mubr.msk.bf16.vlgmr.msra.gmra.mrb[76].mxu1 %vm957_vm2, %v3197_v30  ;;  %v6952_v30 = vld [vmem:[%s9982_s13 + $0x1] ss:$0 sm:$0xff] }
0x1930   : > { %7810 = vmatprep.mubr.msk.bf16.mxu1 %vm8472_vm0, %v8471_v1  ;;  %7807 = vmatpush3.bf16.msra.mxu1 %v8260_v58 }
0x1931   : > { %7808 = vmatprep.subr.bf16.mxu1 %v8471_v1 }
0x1934   : > { %7809 = vmatpush3.bf16.msra.mxu1 %v8261_v59  ;;  %v8268_v59 = vld [vmem:[%s10035_s23 + $0x80] sm:$0xff]  }
0x1935   : > { %7822 = vmatprep.subr.bf16.mxu1 %v8471_v1 }
0x1a02   : > { %v3239_v33 = vpop.f32.mrb[76].mxu1 }
0x1a03   : > { %v3240_v34 = vadd.f32 %v3239_v33, %v9032_v7  ;;  %v7798_v35 = vpop.f32.mrb[77].mxu1  ;;  %v7792_v7 = vpop.f32.mrb[77].mxu0 }
0x1a04   : > { %v3242_v36 = vpop.f32.mrb[78].mxu1  ;;  %v3194_v51 = vpop.f32.mrb[78].mxu0  ;;  %v8267_v35 = vld [vmem:[%s9985_s16 + $0x18] sm:$0xff]  }
0x1a05   : > { %v7799_v39 = vpop.f32.mrb[79].mxu1  ;;  %v3245_v40 = vsel %vm957_vm2, %v3240_v34, -inf  ;;  %v7793_v49 = vpop.f32.mrb[79].mxu0  ;;  %v6953_v36 = vld [vmem:[%s9984_s15] ss:$0 sm:$0xff] }
0x1a06   : > { %3246 = vmax.xlane.f32.xlu1 %v3245_v40 }
0x1a17   : > { %3309 = vrot.lane.b32.xlu1 %v9128_v26, %s10044_s19  ;;  %v3257_v26 = vpack.c.bf16 %v3192_v52, %v3192_v52 }
0x1a19   : > { %v3262_v53 = vsel %vm1020_vm3, %v3257_v26, 0 }
0x1a1a   : > { %7801 = vmatpush3.bf16.msra.mxu0 %v3262_v53 }
0x1a1b   : > { %7814 = vmatprep.subr.bf16.mxu0 %v8471_v1 }
0x1a93   : > { %v3247_v41 = vpop.xlane.xlu1 %3246 }
0x1a94   : > { %v3248_v42 = vsub.f32 %v3240_v34, %v3247_v41  ;;  %v8266_v34 = vld [vmem:[%s9985_s16 + $0x10] sm:$0xff]  }
0x1a96   : > { %v3249_v44 = vmul.f32 1.442695, %v3248_v42 }
0x1a97   : > { %v3310_v63 = vpop.permute.xlu1 %3309 }
0x1a98   : > { %8358 = vpow2.f32 %v3249_v44  ;;  %v3320_v43 = vsel %vm957_vm2, %v9066_v37, %v3310_v63 }
0x1aa2   : > { %v8359_v45 = vpop.eup %8358 }
0x1aa3   : > { %v3251_v46 = vsel %vm957_vm2, %v8359_v45, 0.0 }
0x1aa4   : > { %3252 = vadd.xlane.f32.xlu0 %v3251_v46 }
0x1aba   : > { %3313 = vrot.lane.b32.xlu0 %v2996_v15, %s10045_s3 }
0x1b31   : > { %v3253_v54 = vpop.xlane.xlu0 %3252 }
0x1b32   : > { %8360 = vrcp.f32 %v3253_v54 }
0x1b35   : > { %v3314_v0 = vpop.permute.xlu0 %3313 }
0x1b36   : > { %v3321_v2 = vsel %vm1987_vm4, %v3320_v43, %v3314_v0 }
0x1b3c   : > { %v8361_v6 = vpop.eup %8360 }
0x1b3d   : > { %v3255_v55 = vmul.f32 %v8361_v6, %v8359_v45 }
0x1b3f   : > { %3307 = vst.msk [vmem:[%s9047_s2 + $0x18] sm:$0xff] %vm957_vm2, %v3255_v55  ;;  %v3256_v57 = vpack.c.bf16 %v3255_v55, %v3255_v55 }
0x1b41   : > { %7803 = vmatmul.mubr.msk.bf16.vlgmr.msra.gmra.mrb[80].mxu0 %vm957_vm2, %v3256_v57 }
0x1b42   : > { %7818 = vmatprep.mubr.msk.bf16.mxu0 %vm8472_vm0, %v8471_v1  ;;  %7815 = vmatpush3.bf16.msra.mxu0 %v8262_v20 }
0x1b43   : > { %7816 = vmatprep.subr.bf16.mxu0 %v8471_v1 }
0x1c14   : > { %v3298_v60 = vpop.f32.mrb[80].mxu0 }
0x1c15   : > { %3317 = vrot.lane.b32.xlu1 %v3298_v60, %s10046_s6  ;;  %v7804_v24 = vpop.f32.mrb[81].mxu0  ;;  %v8269_v60 = vld [vmem:[%s9977_s8 + $0x80] sm:$0xff]  }
0x1c16   : > { %v3301_v61 = vpop.f32.mrb[82].mxu0  ;;  %v8270_v24 = vld [vmem:[%s10035_s23 + $0x88] sm:$0xff]  }
0x1c17   : > { %v7805_v62 = vpop.f32.mrb[83].mxu0  ;;  %v8271_v61 = vld [vmem:[%s9977_s8 + $0x88] sm:$0xff]  }
0x1c87   : > { %v3318_v3 = vpop.permute.xlu1 %3317 }
0x1c88   : > { %v3322_v4 = vsel %vm1989_vm5, %v3321_v2, %v3318_v3  ;;  %v6964_v2 = vld [vmem:[%s9981_s12 + $0x2] ss:$0 sm:$0xff] }
0x1c89   : > { %v3323_v5 = vpack.c.bf16 %v3322_v4, %v3322_v4  ;;  %v6966_v4 = vld [vmem:[%s9982_s13 + $0x2] ss:$0 sm:$0xff] }
0x1c8b   : > { %7811 = vmatmul.mubr.msk.bf16.vlgmr.msra.gmra.mrb[80].mxu1 %vm785_vm1, %v3323_v5 }
0x1c8c   : > { %7830 = vmatprep.mubr.msk.bf16.mxu1 %vm8472_vm0, %v8471_v1  ;;  %7823 = vmatpush3.bf16.msra.mxu1 %v8264_v21 }
0x1c8d   : > { %7824 = vmatprep.subr.bf16.mxu1 %v8471_v1 }
0x1c90   : > { %7825 = vmatpush3.bf16.msra.mxu1 %v8265_v22  ;;  %v6981_v22 = vld [vmem:[%s9976_s7 + $0x8] ss:$0 sm:$0xff] }
0x1c91   : > { %7826 = vmatprep.subr.bf16.mxu1 %v8471_v1 }
0x1c94   : > { %7827 = vmatpush3.bf16.msra.mxu1 %v8266_v34 }
0x1c95   : > { %7828 = vmatprep.subr.bf16.mxu1 %v8471_v1 }
0x1c98   : > { %7829 = vmatpush3.bf16.msra.mxu1 %v8267_v35  ;;  %v8275_v35 = vld [vmem:[%s10035_s23 + $0x98] sm:$0xff]  }
0x1c99   : > { %7850 = vmatprep.subr.bf16.mxu1 %v8471_v1 }
0x1d5e   : > { %v3386_v9 = vpop.f32.mrb[80].mxu1 }
0x1d5f   : > { %v3387_v10 = vadd.f32 %v6945_v8, %v3386_v9  ;;  %v7812_v11 = vpop.f32.mrb[81].mxu1  ;;  %v8272_v9 = vld [vmem:[%s10033_s27 + $0x80] sm:$0xff]  }
0x1d60   : > { %v3389_v12 = vpop.f32.mrb[82].mxu1  ;;  %v8273_v11 = vld [vmem:[%s10033_s27 + $0x88] sm:$0xff]  }
0x1d61   : > { %v7813_v37 = vpop.f32.mrb[83].mxu1  ;;  %v3392_v13 = vadd.f32 %v3387_v10, %v8980_v50  ;;  %v8263_v50 = vld [vmem:[%s9983_s14 + $0x8] sm:$0xff]  }
0x1d62   : > { %7817 = vmatpush3.bf16.msra.mxu0 %v8263_v50  ;;  %v6990_v12 = vld [vmem:[%s9978_s9 + $0x8] ss:$0 sm:$0xff] }
0x1d63   : > { %v3393_v14 = vsel %vm785_vm1, %v3392_v13, 0.0  ;;  %7834 = vmatprep.subr.bf16.mxu0 %v8471_v1 }
0x1d64   : > { %3394 = vadd.xlane.f32.xlu1 %v3393_v14 }
0x1df1   : > { %v3395_v15 = vpop.xlane.xlu1 %3394 }
0x1df2   : > { %v3396_v16 = vmul.f32 0.03125, %v3395_v15 }
0x1df4   : > { %v3397_v17 = vsub.f32 %v3392_v13, %v3396_v16 }
0x1df6   : > { %v3398_v18 = vmul.f32 %v3397_v17, %v3397_v17 }
0x1df8   : > { %v3399_v19 = vsel %vm785_vm1, %v3398_v18, 0.0 }
0x1df9   : > { %3400 = vadd.xlane.f32.xlu0 %v3399_v19 }
0x1e86   : > { %v3401_v23 = vpop.xlane.xlu0 %3400 }
0x1e87   : > { %v3402_v25 = vmul.f32 0.03125, %v3401_v23 }
0x1e89   : > { %v3403_v56 = vadd.f32 1e-06, %v3402_v25 }
0x1e8b   : > { %8362 = vrsqrt.f32 %v3403_v56 }
0x1e95   : > { %v8363_v27 = vpop.eup %8362 }
0x1e96   : > { %v3405_v29 = vmul.f32 %v8363_v27, %v3397_v17 }
0x1e98   : > { %v3414_v31 = vmul.f32 %v6950_v28, %v3405_v29 }
0x1e9a   : > { %v3423_v32 = vadd.f32 %v6952_v30, %v3414_v31  ;;  %v6972_v30 = vld [vmem:[%s10037_s5 + $0x8] ss:$0 sm:$0xff] }
0x1e9c   : > { %v3424_v33 = vpack.c.bf16 %v3423_v32, %v3423_v32 }
0x1e9e   : > { %7819 = vmatmul.mubr.msk.bf16.vlgmr.msra.gmra.mrb[84].mxu0 %vm785_vm1, %v3424_v33  ;;  %v8274_v33 = vld [vmem:[%s10035_s23 + $0x90] sm:$0xff]  }
0x1e9f   : > { %7838 = vmatprep.mubr.msk.bf16.mxu0 %vm8472_vm0, %v8471_v1  ;;  %7835 = vmatpush3.bf16.msra.mxu0 %v8268_v59 }
0x1ea0   : > { %7836 = vmatprep.subr.bf16.mxu0 %v8471_v1 }
0x1ea3   : > { %7837 = vmatpush3.bf16.msra.mxu0 %v8270_v24 }
0x1ea4   : > { %7842 = vmatprep.subr.bf16.mxu0 %v8471_v1 }
0x1f71   : > { %v3485_v39 = vpop.f32.mrb[84].mxu0 }
0x1f72   : > { %v3486_v40 = vadd.f32 %v6953_v36, %v3485_v39  ;;  %v7820_v41 = vpop.f32.mrb[85].mxu0  ;;  %v8276_v36 = vld [vmem:[%s9977_s8 + $0x90] sm:$0xff]   ;;  %v8277_v39 = vld [vmem:[%s9977_s8 + $0x98] sm:$0xff]  }
0x1f73   : > { %v3488_v42 = vpop.f32.mrb[86].mxu0  ;;  %v9384_v41 = vld [vmem:[%s8713_s0] sm:$0xff]  ;;  %s10048_s0 = sld [smem:[#allocation20_spill]] }
0x1f74   : > { %v3491_v44 = vmax.f32 %v3486_v40, 0.0  ;;  %v7821_v45 = vpop.f32.mrb[87].mxu0 }
0x1f76   : > { %v3492_v46 = vpack.c.bf16 %v3491_v44, %v3491_v44 }
0x1f78   : > { %7831 = vmatmul.mubr.msk.bf16.vlgmr.msra.gmra.mrb[84].mxu1 %vm3532_vm6, %v3492_v46 }
0x1f79   : > { %7854 = vmatprep.mubr.msk.bf16.mxu1 %vm8472_vm0, %v8471_v1  ;;  %7851 = vmatpush3.bf16.msra.mxu1 %v8269_v60 }
0x1f7a   : > { %7852 = vmatprep.subr.bf16.mxu1 %v8471_v1 }
0x1f7d   : > { %7853 = vmatpush3.bf16.msra.mxu1 %v8271_v61 }
0x1f7e   : > { %7864 = vmatprep.subr.bf16.mxu1 %v8471_v1 }
0x204b   : > { %v3570_v7 = vpop.f32.mrb[84].mxu1 }
0x204c   : > { %v3571_v51 = vadd.f32 %v6957_v47, %v3570_v7  ;;  %v7832_v48 = vpop.f32.mrb[85].mxu1 }
0x204d   : > { %v3573_v49 = vpop.f32.mrb[86].mxu1 }
0x204e   : > { %v7833_v52 = vpop.f32.mrb[87].mxu1  ;;  %v3576_v26 = vadd.f32 %v3571_v51, %v3423_v32 }
0x204f   : > { %v7019_v52 = vld [vmem:[%s9978_s9 + $0x9] ss:$0 sm:$0xff] }
0x2050   : > { %v3577_v53 = vsel %vm785_vm1, %v3576_v26, 0.0 }
0x2051   : > { %3578 = vadd.xlane.f32.xlu0 %v3577_v53 }
0x20de   : > { %v3579_v54 = vpop.xlane.xlu0 %3578 }
0x20df   : > { %v3580_v6 = vmul.f32 0.03125, %v3579_v54 }
0x20e1   : > { %v3581_v55 = vsub.f32 %v3576_v26, %v3580_v6 }
0x20e3   : > { %v3582_v57 = vmul.f32 %v3581_v55, %v3581_v55 }
0x20e5   : > { %v3583_v58 = vsel %vm785_vm1, %v3582_v57, 0.0 }
0x20e6   : > { %3584 = vadd.xlane.f32.xlu1 %v3583_v58 }
0x2173   : > { %v3585_v62 = vpop.xlane.xlu1 %3584 }
0x2174   : > { %v3586_v63 = vmul.f32 0.03125, %v3585_v62 }
0x2176   : > { %v3587_v0 = vadd.f32 1e-06, %v3586_v63 }
0x2178   : > { %8364 = vrsqrt.f32 %v3587_v0 }
0x2182   : > { %v8365_v43 = vpop.eup %8364 }
0x2183   : > { %v3589_v3 = vmul.f32 %v8365_v43, %v3581_v55 }
0x2185   : > { %v3598_v5 = vmul.f32 %v6964_v2, %v3589_v3  ;;  %v8278_v2 = vld [vmem:[%s10033_s27 + $0x90] sm:$0xff]  }
0x2187   : > { %v9317_v8 = vadd.f32 %v6966_v4, %v3598_v5  ;;  %v8279_v4 = vld [vmem:[%s10033_s27 + $0x98] sm:$0xff]  }
0x2189   : > { %v9324_v10 = vpack.c.bf16 %v9317_v8, %v9317_v8 }
0x218b   : > { %7839 = vmatmul.mubr.msk.bf16.vlgmr.msra.gmra.mrb[88].mxu0 %vm785_vm1, %v9324_v10  ;;  %7855 = vmatmul.mubr.msk.bf16.vlgmr.msra.gmra.mrb[88].mxu1 %vm785_vm1, %v9324_v10 }
0x218c   : > { %7843 = vmatpush3.bf16.msra.mxu0 %v8272_v9  ;;  %7846 = vmatprep.mubr.msk.bf16.mxu0 %vm8472_vm0, %v8471_v1 }
0x218d   : > { %7844 = vmatprep.subr.bf16.mxu0 %v8471_v1  ;;  %7866 = vmatprep.mubr.msk.bf16.mxu1 %vm8472_vm0, %v8471_v1 }
0x2190   : > { %7845 = vmatpush3.bf16.msra.mxu0 %v8273_v11 }
0x2191   : > { %7858 = vmatprep.subr.bf16.mxu0 %v8471_v1 }
0x2193   : > { %7847 = vmatmul.mubr.msk.bf16.vlgmr.msra.gmra.mrb[92].mxu0 %vm785_vm1, %v9324_v10 }
0x2194   : > { %7860 = vmatprep.mubr.msk.bf16.mxu0 %vm8472_vm0, %v8471_v1 }
0x225e   : > { %v3671_v37 = vpop.f32.mrb[88].mxu0  ;;  %v3801_v13 = vpop.f32.mrb[88].mxu1 }
0x225f   : > { %v3802_v14 = vadd.f32 %v6990_v12, %v3801_v13  ;;  %v7840_v15 = vpop.f32.mrb[89].mxu0  ;;  %v7856_v16 = vpop.f32.mrb[89].mxu1  ;;  %v3672_v32 = vadd.f32 %v6972_v30, %v3671_v37  ;;  %v7010_v37 = vld [vmem:[%s9976_s7 + $0x9] ss:$0 sm:$0xff] }
0x2260   : > { %v3674_v17 = vpop.f32.mrb[90].mxu0  ;;  %v3804_v18 = vpop.f32.mrb[90].mxu1 }
0x2261   : > { %v3867_v19 = vpack.c.bf16 %v3802_v14, %v3802_v14  ;;  %v7841_v20 = vpop.f32.mrb[91].mxu0  ;;  %v7857_v50 = vpop.f32.mrb[91].mxu1  ;;  %v3807_v34 = vpack.c.bf16 %v3672_v32, %v3672_v32 }
0x2263   : > { %v3872_v21 = vsel %vm1020_vm3, %v3867_v19, 0  ;;  %v7001_v19 = vld [vmem:[%s10037_s5 + $0x9] ss:$0 sm:$0xff] }
0x2264   : > { %7865 = vmatpush3.bf16.msra.mxu1 %v3872_v21  ;;  %v8280_v21 = vld [vmem:[%s10035_s23 + $0xa0] sm:$0xff]  }
0x2265   : > { %7878 = vmatprep.subr.bf16.mxu1 %v8471_v1 }
0x2266   : > { %v3736_v23 = vpop.f32.mrb[92].mxu0 }
0x2267   : > { %v3737_v25 = vadd.f32 %v6981_v22, %v3736_v23  ;;  %v7848_v56 = vpop.f32.mrb[93].mxu0  ;;  %v8281_v23 = vld [vmem:[%s10035_s23 + $0xa8] sm:$0xff]  }
0x2268   : > { %v3739_v27 = vpop.f32.mrb[94].mxu0  ;;  %v8283_v56 = vld [vmem:[%s9977_s8 + $0xa8] sm:$0xff]  }
0x2269   : > { %v3808_v28 = vpack.c.bf16 %v3737_v25, %v3737_v25  ;;  %v7849_v29 = vpop.f32.mrb[95].mxu0  ;;  %v8282_v25 = vld [vmem:[%s9977_s8 + $0xa0] sm:$0xff]  }
0x226b   : > { %v3813_v31 = vsel %vm957_vm2, %v3808_v28, 0 }
0x226c   : > { %7859 = vmatpush3.bf16.xpose.msra.mxu0 %v3813_v31 }
0x226d   : > { %7870 = vmatprep.subr.bf16.mxu0 %v8471_v1 }
0x2273   : > { %7861 = vmatmul.mubr.msk.bf16.vlgmr.msra.gmra.mrb[96].mxu0 %vm957_vm2, %v3807_v34 }
0x2274   : > { %7871 = vmatpush3.bf16.msra.mxu0 %v8274_v33  ;;  %7874 = vmatprep.mubr.msk.bf16.mxu0 %vm8472_vm0, %v8471_v1 }
0x2275   : > { %7872 = vmatprep.subr.bf16.mxu0 %v8471_v1 }
0x2278   : > { %7873 = vmatpush3.bf16.msra.mxu0 %v8275_v35 }
0x2279   : > { %7886 = vmatprep.subr.bf16.mxu0 %v8471_v1 }
0x227b   : > { %7875 = vmatmul.mubr.msk.bf16.vlgmr.msra.gmra.mrb[100].mxu0 %vm785_vm1, %v9324_v10 }
0x227c   : > { %7887 = vmatpush3.bf16.msra.mxu0 %v8276_v36  ;;  %7890 = vmatprep.mubr.msk.bf16.mxu0 %vm8472_vm0, %v8471_v1 }
0x227d   : > { %7888 = vmatprep.subr.bf16.mxu0 %v8471_v1 }
0x2280   : > { %7889 = vmatpush3.bf16.msra.mxu0 %v8277_v39  ;;  %v7048_v39 = vld [vmem:[%s9978_s9 + $0xa] ss:$0 sm:$0xff] }
0x2281   : > { %7900 = vmatprep.subr.bf16.mxu0 %v8471_v1 }
0x2283   : > { %7891 = vmatmul.mubr.msk.bf16.vlgmr.msra.gmra.mrb[104].mxu0 %vm785_vm1, %v9324_v10 }
0x2284   : > { %7902 = vmatprep.mubr.msk.bf16.mxu0 %vm8472_vm0, %v8471_v1 }
0x2346   : > { %v3849_v40 = vpop.f32.mrb[96].mxu0 }
0x2347   : > { %v3850_v42 = vadd.f32 %v9384_v41, %v3849_v40  ;;  %v7862_v44 = vpop.f32.mrb[97].mxu0 }
0x2348   : > { %v3852_v45 = vpop.f32.mrb[98].mxu0 }
0x2349   : > { %v7863_v46 = vpop.f32.mrb[99].mxu0  ;;  %v3855_v47 = vsel %vm957_vm2, %v3850_v42, -inf }
0x234a   : > { %3856 = vmax.xlane.f32.xlu0 %v3855_v47 }
0x234e   : > { %v3973_v7 = vpop.f32.mrb[100].mxu0 }
0x234f   : > { %v7876_v51 = vpop.f32.mrb[101].mxu0  ;;  %v3974_v50 = vadd.f32 %v7001_v19, %v3973_v7 }
0x2350   : > { %v3976_v48 = vpop.f32.mrb[102].mxu0 }
0x2351   : > { %v7877_v49 = vpop.f32.mrb[103].mxu0  ;;  %v4109_v22 = vpack.c.bf16 %v3974_v50, %v3974_v50 }
0x2356   : > { %v4103_v26 = vpop.f32.mrb[104].mxu0 }
0x2357   : > { %v4104_v53 = vadd.f32 %v7019_v52, %v4103_v26  ;;  %v7892_v54 = vpop.f32.mrb[105].mxu0 }
0x2358   : > { %v4106_v6 = vpop.f32.mrb[106].mxu0 }
0x2359   : > { %v4169_v55 = vpack.c.bf16 %v4104_v53, %v4104_v53  ;;  %v7893_v57 = vpop.f32.mrb[107].mxu0 }
0x235b   : > { %v4174_v58 = vsel %vm1020_vm3, %v4169_v55, 0  ;;  %v8284_v55 = vld [vmem:[%s10033_s27 + $0xa0] sm:$0xff]  }
0x235c   : > { %7901 = vmatpush3.bf16.msra.mxu0 %v4174_v58  ;;  %v8285_v58 = vld [vmem:[%s10033_s27 + $0xa8] sm:$0xff]  }
0x235d   : > { %7914 = vmatprep.subr.bf16.mxu0 %v8471_v1 }
0x23d7   : > { %v3857_v59 = vpop.xlane.xlu0 %3856 }
0x23d8   : > { %v3858_v60 = vsub.f32 %v3850_v42, %v3857_v59 }
0x23da   : > { %v3859_v24 = vmul.f32 1.442695, %v3858_v60 }
0x23dc   : > { %8366 = vpow2.f32 %v3859_v24 }
0x23e6   : > { %v8367_v61 = vpop.eup %8366 }
0x23e7   : > { %v3861_v62 = vsel %vm957_vm2, %v8367_v61, 0.0 }
0x23e8   : > { %3862 = vadd.xlane.f32.xlu1 %v3861_v62  ;;  %v7039_v62 = vld [vmem:[%s9976_s7 + $0xa] ss:$0 sm:$0xff] }
0x2475   : > { %v3863_v63 = vpop.xlane.xlu1 %3862 }
0x2476   : > { %8368 = vrcp.f32 %v3863_v63 }
0x2480   : > { %v8369_v0 = vpop.eup %8368 }
0x2481   : > { %v3865_v43 = vmul.f32 %v8369_v0, %v8367_v61 }
0x2483   : > { %7083 = vst.msk [vmem:[%s8744_s20 + $0x20] sm:$0xff] %vm957_vm2, %v3865_v43  ;;  %v3866_v3 = vpack.c.bf16 %v3865_v43, %v3865_v43 }
0x2485   : > { %7867 = vmatmul.mubr.msk.bf16.vlgmr.msra.gmra.mrb[92].mxu1 %vm957_vm2, %v3866_v3 }
0x2486   : > { %7879 = vmatpush3.bf16.msra.mxu1 %v8278_v2  ;;  %7882 = vmatprep.mubr.msk.bf16.mxu1 %vm8472_vm0, %v8471_v1 }
0x2487   : > { %7880 = vmatprep.subr.bf16.mxu1 %v8471_v1 }
0x248a   : > { %7881 = vmatpush3.bf16.msra.mxu1 %v8279_v4 }
0x248b   : > { %7894 = vmatprep.subr.bf16.mxu1 %v8471_v1 }
0x248d   : > { %7883 = vmatmul.mubr.msk.bf16.vlgmr.msra.gmra.mrb[96].mxu1 %vm785_vm1, %v9324_v10 }
0x248e   : > { %7896 = vmatprep.mubr.msk.bf16.mxu1 %vm8472_vm0, %v8471_v1 }
0x2558   : > { %v9411_v5 = vpop.f32.mrb[92].mxu1 }
0x2559   : > { %v7868_v9 = vpop.f32.mrb[93].mxu1 }
0x255a   : > { %v3911_v11 = vpop.f32.mrb[94].mxu1  ;;  %v7030_v9 = vld [vmem:[%s10037_s5 + $0xa] ss:$0 sm:$0xff] }
0x255b   : > { %v7869_v12 = vpop.f32.mrb[95].mxu1 }
0x2560   : > { %v4038_v13 = vpop.f32.mrb[96].mxu1 }
0x2561   : > { %v4039_v14 = vadd.f32 %v7010_v37, %v4038_v13  ;;  %v7884_v15 = vpop.f32.mrb[97].mxu1  ;;  %v8286_v37 = vld [vmem:[%s10035_s23 + $0xb0] sm:$0xff]  }
0x2562   : > { %v4041_v16 = vpop.f32.mrb[98].mxu1  ;;  %v8288_v15 = vld [vmem:[%s9977_s8 + $0xb0] sm:$0xff]  }
0x2563   : > { %v4110_v17 = vpack.c.bf16 %v4039_v14, %v4039_v14  ;;  %v7885_v18 = vpop.f32.mrb[99].mxu1  ;;  %v8287_v14 = vld [vmem:[%s10035_s23 + $0xb8] sm:$0xff]  }
0x2564   : > { %v8289_v16 = vld [vmem:[%s9977_s8 + $0xb8] sm:$0xff]  }
0x2565   : > { %v4115_v20 = vsel %vm957_vm2, %v4110_v17, 0 }
0x2566   : > { %7895 = vmatpush3.bf16.xpose.msra.mxu1 %v4115_v20 }
0x2567   : > { %7906 = vmatprep.subr.bf16.mxu1 %v8471_v1 }
0x256d   : > { %7897 = vmatmul.mubr.msk.bf16.vlgmr.msra.gmra.mrb[100].mxu1 %vm957_vm2, %v4109_v22 }
0x256e   : > { %7907 = vmatpush3.bf16.msra.mxu1 %v8280_v21  ;;  %7910 = vmatprep.mubr.msk.bf16.mxu1 %vm8472_vm0, %v8471_v1 }
0x256f   : > { %7908 = vmatprep.subr.bf16.mxu1 %v8471_v1 }
0x2572   : > { %7909 = vmatpush3.bf16.msra.mxu1 %v8281_v23 }
0x2573   : > { %7922 = vmatprep.subr.bf16.mxu1 %v8471_v1 }
0x2575   : > { %7911 = vmatmul.mubr.msk.bf16.vlgmr.msra.gmra.mrb[104].mxu1 %vm785_vm1, %v9324_v10 }
0x2576   : > { %7923 = vmatpush3.bf16.msra.mxu1 %v8282_v25  ;;  %7926 = vmatprep.mubr.msk.bf16.mxu1 %vm8472_vm0, %v8471_v1 }
0x2577   : > { %7924 = vmatprep.subr.bf16.mxu1 %v8471_v1 }
0x257a   : > { %7925 = vmatpush3.bf16.msra.mxu1 %v8283_v56 }
0x257b   : > { %7936 = vmatprep.subr.bf16.mxu1 %v8471_v1 }
0x257d   : > { %7927 = vmatmul.mubr.msk.bf16.vlgmr.msra.gmra.mrb[108].mxu1 %vm785_vm1, %v9324_v10 }
0x257e   : > { %7938 = vmatprep.mubr.msk.bf16.mxu1 %vm8472_vm0, %v8471_v1 }
0x2640   : > { %v4151_v27 = vpop.f32.mrb[100].mxu1 }
0x2641   : > { %v4152_v28 = vadd.f32 %v9384_v41, %v4151_v27  ;;  %v7898_v29 = vpop.f32.mrb[101].mxu1  ;;  %v7077_v27 = vld [vmem:[%s9978_s9 + $0xb] ss:$0 sm:$0xff] }
0x2642   : > { %v4154_v30 = vpop.f32.mrb[102].mxu1 }
0x2643   : > { %v7899_v31 = vpop.f32.mrb[103].mxu1  ;;  %v4157_v32 = vsel %vm957_vm2, %v4152_v28, -inf }
0x2644   : > { %4158 = vmax.xlane.f32.xlu0 %v4157_v32 }
0x2648   : > { %v4275_v33 = vpop.f32.mrb[104].mxu1 }
0x2649   : > { %v7912_v34 = vpop.f32.mrb[105].mxu1  ;;  %v4276_v12 = vadd.f32 %v7030_v9, %v4275_v33 }
0x264a   : > { %v4278_v35 = vpop.f32.mrb[106].mxu1 }
0x264b   : > { %v7913_v36 = vpop.f32.mrb[107].mxu1  ;;  %v4411_v13 = vpack.c.bf16 %v4276_v12, %v4276_v12 }
0x2650   : > { %v4405_v40 = vpop.f32.mrb[108].mxu1 }
0x2651   : > { %v4406_v42 = vadd.f32 %v7048_v39, %v4405_v40  ;;  %v7928_v44 = vpop.f32.mrb[109].mxu1 }
0x2652   : > { %v4408_v45 = vpop.f32.mrb[110].mxu1 }
0x2653   : > { %v4471_v46 = vpack.c.bf16 %v4406_v42, %v4406_v42  ;;  %v7929_v47 = vpop.f32.mrb[111].mxu1 }
0x2654   : > { %v8290_v47 = vld [vmem:[%s10033_s27 + $0xb0] sm:$0xff]  }
0x2655   : > { %v4476_v7 = vsel %vm1020_vm3, %v4471_v46, 0 }
0x2656   : > { %7937 = vmatpush3.bf16.msra.mxu1 %v4476_v7 }
0x2657   : > { %7950 = vmatprep.subr.bf16.mxu1 %v8471_v1 }
0x26d1   : > { %v4159_v51 = vpop.xlane.xlu0 %4158 }
0x26d2   : > { %v4160_v48 = vsub.f32 %v4152_v28, %v4159_v51  ;;  %v8291_v51 = vld [vmem:[%s10033_s27 + $0xb8] sm:$0xff]  }
0x26d4   : > { %v4161_v49 = vmul.f32 1.442695, %v4160_v48 }
0x26d6   : > { %8370 = vpow2.f32 %v4161_v49 }
0x26e0   : > { %v8371_v52 = vpop.eup %8370 }
0x26e1   : > { %v4163_v26 = vsel %vm957_vm2, %v8371_v52, 0.0 }
0x26e2   : > { %4164 = vadd.xlane.f32.xlu1 %v4163_v26 }
0x276f   : > { %v4165_v53 = vpop.xlane.xlu1 %4164 }
0x2770   : > { %8372 = vrcp.f32 %v4165_v53  ;;  %v7068_v53 = vld [vmem:[%s9976_s7 + $0xb] ss:$0 sm:$0xff] }
0x277a   : > { %v8373_v54 = vpop.eup %8372 }
0x277b   : > { %v4167_v6 = vmul.f32 %v8373_v54, %v8371_v52 }
0x277d   : > { %7084 = vst.msk [vmem:[%s8744_s20 + $0x28] sm:$0xff] %vm957_vm2, %v4167_v6  ;;  %v4168_v57 = vpack.c.bf16 %v4167_v6, %v4167_v6 }
0x277f   : > { %7903 = vmatmul.mubr.msk.bf16.vlgmr.msra.gmra.mrb[108].mxu0 %vm957_vm2, %v4168_v57 }
0x2780   : > { %7915 = vmatpush3.bf16.msra.mxu0 %v8284_v55  ;;  %7918 = vmatprep.mubr.msk.bf16.mxu0 %vm8472_vm0, %v8471_v1 }
0x2781   : > { %7916 = vmatprep.subr.bf16.mxu0 %v8471_v1 }
0x2784   : > { %7917 = vmatpush3.bf16.msra.mxu0 %v8285_v58 }
0x2785   : > { %7930 = vmatprep.subr.bf16.mxu0 %v8471_v1 }
0x2787   : > { %7919 = vmatmul.mubr.msk.bf16.vlgmr.msra.gmra.mrb[112].mxu0 %vm785_vm1, %v9324_v10 }
0x2788   : > { %7932 = vmatprep.mubr.msk.bf16.mxu0 %vm8472_vm0, %v8471_v1 }
0x2852   : > { %v9473_v59 = vpop.f32.mrb[108].mxu0 }
0x2853   : > { %v7904_v60 = vpop.f32.mrb[109].mxu0 }
0x2854   : > { %v4213_v24 = vpop.f32.mrb[110].mxu0 }
0x2855   : > { %v7905_v61 = vpop.f32.mrb[111].mxu0 }
0x285a   : > { %v4340_v63 = vpop.f32.mrb[112].mxu0 }
0x285b   : > { %v4341_v0 = vadd.f32 %v7039_v62, %v4340_v63  ;;  %v7920_v43 = vpop.f32.mrb[113].mxu0 }
0x285c   : > { %v4343_v2 = vpop.f32.mrb[114].mxu0 }
0x285d   : > { %v4412_v3 = vpack.c.bf16 %v4341_v0, %v4341_v0  ;;  %v7921_v4 = vpop.f32.mrb[115].mxu0 }
0x285f   : > { %v4417_v11 = vsel %vm957_vm2, %v4412_v3, 0 }
0x2860   : > { %7931 = vmatpush3.bf16.xpose.msra.mxu0 %v4417_v11 }
0x2861   : > { %7942 = vmatprep.subr.bf16.mxu0 %v8471_v1 }
0x2867   : > { %7933 = vmatmul.mubr.msk.bf16.vlgmr.msra.gmra.mrb[116].mxu0 %vm957_vm2, %v4411_v13 }
0x2868   : > { %7943 = vmatpush3.bf16.msra.mxu0 %v8286_v37  ;;  %7946 = vmatprep.mubr.msk.bf16.mxu0 %vm8472_vm0, %v8471_v1 }
0x2869   : > { %7944 = vmatprep.subr.bf16.mxu0 %v8471_v1 }
0x286c   : > { %7945 = vmatpush3.bf16.msra.mxu0 %v8287_v14 }
0x286d   : > { %7958 = vmatprep.subr.bf16.mxu0 %v8471_v1 }
0x286f   : > { %7947 = vmatmul.mubr.msk.bf16.vlgmr.msra.gmra.mrb[120].mxu0 %vm785_vm1, %v9324_v10 }
0x2870   : > { %7959 = vmatpush3.bf16.msra.mxu0 %v8288_v15  ;;  %7962 = vmatprep.mubr.msk.bf16.mxu0 %vm8472_vm0, %v8471_v1 }
0x2871   : > { %7960 = vmatprep.subr.bf16.mxu0 %v8471_v1 }
0x2874   : > { %7961 = vmatpush3.bf16.msra.mxu0 %v8289_v16 }
0x2875   : > { %7972 = vmatprep.subr.bf16.mxu0 %v8471_v1 }
0x2877   : > { %7963 = vmatmul.mubr.msk.bf16.vlgmr.msra.gmra.mrb[124].mxu0 %vm785_vm1, %v9324_v10 }
0x2878   : > { %7974 = vmatprep.mubr.msk.bf16.mxu0 %vm8472_vm0, %v8471_v1 }
0x293a   : > { %v4453_v17 = vpop.f32.mrb[116].mxu0 }
0x293b   : > { %v4454_v18 = vadd.f32 %v9384_v41, %v4453_v17  ;;  %v7934_v19 = vpop.f32.mrb[117].mxu0  ;;  %v8293_v17 = vld [vmem:[%s9979_s10 + $0x28] sm:$0xff]  }
0x293c   : > { %v4456_v20 = vpop.f32.mrb[118].mxu0 }
0x293d   : > { %v7935_v50 = vpop.f32.mrb[119].mxu0  ;;  %v4459_v21 = vsel %vm957_vm2, %v4454_v18, -inf }
0x293e   : > { %4460 = vmax.xlane.f32.xlu0 %v4459_v21 }
0x2942   : > { %v4577_v22 = vpop.f32.mrb[120].mxu0 }
0x2943   : > { %v7948_v23 = vpop.f32.mrb[121].mxu0 }
0x2944   : > { %v4580_v25 = vpop.f32.mrb[122].mxu0 }
0x2945   : > { %v7949_v56 = vpop.f32.mrb[123].mxu0 }
0x294a   : > { %v4707_v28 = vpop.f32.mrb[124].mxu0 }
0x294b   : > { %v4708_v29 = vadd.f32 %v7077_v27, %v4707_v28  ;;  %v7964_v30 = vpop.f32.mrb[125].mxu0 }
0x294c   : > { %v4710_v31 = vpop.f32.mrb[126].mxu0 }
0x294d   : > { %v4773_v32 = vpack.c.bf16 %v4708_v29, %v4708_v29  ;;  %v7965_v33 = vpop.f32.mrb[127].mxu0  ;;  %v7092_v29 = vld [vmem:[%s9980_s11 + $0x2] ss:$0 sm:$0xff] }
0x294f   : > { %v4778_v34 = vsel %vm1020_vm3, %v4773_v32, 0 }
0x2950   : > { %7973 = vmatpush3.bf16.msra.mxu0 %v4778_v34 }
0x2951   : > { %7986 = vmatprep.subr.bf16.mxu0 %v8471_v1 }
0x29cb   : > { %v4461_v35 = vpop.xlane.xlu0 %4460 }
0x29cc   : > { %v4462_v36 = vsub.f32 %v4454_v18, %v4461_v35 }
0x29ce   : > { %v4463_v39 = vmul.f32 1.442695, %v4462_v36 }
0x29d0   : > { %8374 = vpow2.f32 %v4463_v39 }
0x29da   : > { %v8375_v40 = vpop.eup %8374 }
0x29db   : > { %v4465_v42 = vsel %vm957_vm2, %v8375_v40, 0.0 }
0x29dc   : > { %4466 = vadd.xlane.f32.xlu1 %v4465_v42 }
0x2a69   : > { %v4467_v44 = vpop.xlane.xlu1 %4466 }
0x2a6a   : > { %8376 = vrcp.f32 %v4467_v44 }
0x2a74   : > { %v8377_v45 = vpop.eup %8376 }
0x2a75   : > { %v4469_v46 = vmul.f32 %v8377_v45, %v8375_v40  ;;  %v8294_v45 = vld [vmem:[%s10033_s27 + $0xc0] sm:$0xff]  }
0x2a77   : > { %7085 = vst.msk [vmem:[%s8744_s20 + $0x30] sm:$0xff] %vm957_vm2, %v4469_v46  ;;  %v4470_v7 = vpack.c.bf16 %v4469_v46, %v4469_v46  ;;  %v8296_v46 = vld [vmem:[%s10035_s23 + $0xc0] sm:$0xff]  }
0x2a79   : > { %7939 = vmatmul.mubr.msk.bf16.vlgmr.msra.gmra.mrb[112].mxu1 %vm957_vm2, %v4470_v7 }
0x2a7a   : > { %7951 = vmatpush3.bf16.msra.mxu1 %v8290_v47  ;;  %7954 = vmatprep.mubr.msk.bf16.mxu1 %vm8472_vm0, %v8471_v1  ;;  %v8297_v47 = vld [vmem:[%s10035_s23 + $0xc8] sm:$0xff]  }
0x2a7b   : > { %7952 = vmatprep.subr.bf16.mxu1 %v8471_v1 }
0x2a7e   : > { %7953 = vmatpush3.bf16.msra.mxu1 %v8291_v51 }
0x2a7f   : > { %7966 = vmatprep.subr.bf16.mxu1 %v8471_v1 }
0x2a81   : > { %7955 = vmatmul.mubr.msk.bf16.vlgmr.msra.gmra.mrb[116].mxu1 %vm785_vm1, %v9324_v10  ;;  %v7059_v10 = vld [vmem:[%s10037_s5 + $0xb] ss:$0 sm:$0xff] }
0x2a82   : > { %7968 = vmatprep.mubr.msk.bf16.mxu1 %vm8472_vm0, %v8471_v1  ;;  %v4578_v61 = vadd.f32 %v7059_v10, %v4577_v22 }
0x2a84   : > { %v4713_v62 = vpack.c.bf16 %v4578_v61, %v4578_v61 }
0x2b4c   : > { %v4512_v48 = vpop.f32.mrb[112].mxu1 }
0x2b4d   : > { %v7940_v49 = vpop.f32.mrb[113].mxu1 }
0x2b4e   : > { %v4515_v52 = vpop.f32.mrb[114].mxu1 }
0x2b4f   : > { %v7941_v26 = vpop.f32.mrb[115].mxu1  ;;  %v7097_v52 = vld [vmem:[%s9981_s12 + $0x3] ss:$0 sm:$0xff] }
0x2b54   : > { %v4642_v54 = vpop.f32.mrb[116].mxu1 }
0x2b55   : > { %v4643_v6 = vadd.f32 %v7068_v53, %v4642_v54  ;;  %v7956_v55 = vpop.f32.mrb[117].mxu1  ;;  %v7099_v53 = vld [vmem:[%s9982_s13 + $0x3] ss:$0 sm:$0xff] }
0x2b56   : > { %v4645_v57 = vpop.f32.mrb[118].mxu1 }
0x2b57   : > { %v4714_v58 = vpack.c.bf16 %v4643_v6, %v4643_v6  ;;  %v7957_v60 = vpop.f32.mrb[119].mxu1  ;;  %v7114_v57 = vld [vmem:[%s9976_s7 + $0xc] ss:$0 sm:$0xff] }
0x2b59   : > { %v4719_v24 = vsel %vm957_vm2, %v4714_v58, 0 }
0x2b5a   : > { %7967 = vmatpush3.bf16.xpose.msra.mxu1 %v4719_v24 }
0x2b5b   : > { %7978 = vmatprep.subr.bf16.mxu1 %v8471_v1 }
0x2b61   : > { %7969 = vmatmul.mubr.msk.bf16.vlgmr.msra.gmra.mrb[120].mxu1 %vm957_vm2, %v4713_v62 }
0x2b62   : > { %7982 = vmatprep.mubr.msk.bf16.mxu1 %vm8472_vm0, %v8471_v1 }
0x2c34   : > { %v4755_v63 = vpop.f32.mrb[120].mxu1 }
0x2c35   : > { %v4756_v0 = vadd.f32 %v9384_v41, %v4755_v63  ;;  %v7970_v43 = vpop.f32.mrb[121].mxu1 }
0x2c36   : > { %v4758_v2 = vpop.f32.mrb[122].mxu1 }
0x2c37   : > { %v7971_v3 = vpop.f32.mrb[123].mxu1  ;;  %v4761_v4 = vsel %vm957_vm2, %v4756_v0, -inf }
0x2c38   : > { %4762 = vmax.xlane.f32.xlu0 %v4761_v4 }
0x2c4e   : > { %4826 = vrot.lane.b32.xlu0 %v9473_v59, %s10044_s19  ;;  %v8292_v59 = vld [vmem:[%s9979_s10 + $0x20] sm:$0xff]  }
0x2c4f   : > { %7979 = vmatpush3.bf16.msra.mxu1 %v8292_v59 }
0x2c50   : > { %7980 = vmatprep.subr.bf16.mxu1 %v8471_v1 }
0x2c53   : > { %7981 = vmatpush3.bf16.msra.mxu1 %v8293_v17 }
0x2c54   : > { %7994 = vmatprep.subr.bf16.mxu1 %v8471_v1 }
0x2cc5   : > { %v4763_v9 = vpop.xlane.xlu0 %4762 }
0x2cc6   : > { %v4764_v11 = vsub.f32 %v4756_v0, %v4763_v9  ;;  %v7105_v0 = vld [vmem:[%s10037_s5 + $0xc] ss:$0 sm:$0xff]  ;;  %v8298_v9 = vld [vmem:[%s10035_s23 + $0xd0] sm:$0xff]  }
0x2cc8   : > { %v4765_v12 = vmul.f32 1.442695, %v4764_v11 }
0x2cc9   : > { %v4827_v21 = vpop.permute.xlu0 %4826 }
0x2cca   : > { %8378 = vpow2.f32 %v4765_v12  ;;  %v4837_v23 = vsel %vm957_vm2, %v9411_v5, %v4827_v21 }
0x2cd4   : > { %v8379_v37 = vpop.eup %8378 }
0x2cd5   : > { %v4767_v13 = vsel %vm957_vm2, %v8379_v37, 0.0 }
0x2cd6   : > { %4768 = vadd.xlane.f32.xlu1 %v4767_v13  ;;  %v8300_v13 = vld [vmem:[%s9977_s8 + $0xc0] sm:$0xff]  }
0x2ce7   : > { %4830 = vrot.lane.b32.xlu1 %v4512_v48, %s10045_s3 }
0x2d63   : > { %v4769_v41 = vpop.xlane.xlu1 %4768 }
0x2d64   : > { %8380 = vrcp.f32 %v4769_v41  ;;  %v8301_v41 = vld [vmem:[%s9977_s8 + $0xc8] sm:$0xff]  }
0x2d67   : > { %v4831_v22 = vpop.permute.xlu1 %4830 }
0x2d68   : > { %v4838_v25 = vsel %vm1987_vm4, %v4837_v23, %v4831_v22 }
0x2d6e   : > { %v8381_v14 = vpop.eup %8380 }
0x2d6f   : > { %v4771_v15 = vmul.f32 %v8381_v14, %v8379_v37  ;;  %v8299_v37 = vld [vmem:[%s10035_s23 + $0xd8] sm:$0xff]  }
0x2d71   : > { %7086 = vst.msk [vmem:[%s8744_s20 + $0x38] sm:$0xff] %vm957_vm2, %v4771_v15  ;;  %v4772_v16 = vpack.c.bf16 %v4771_v15, %v4771_v15  ;;  %v9651_v15 = vld [vmem:[%s9029_s25] sm:$0xff]  ;;  %s8476_s25 = smov [#allocation2]  }
0x2d72   : > { %s8411_s1 = sshll.u32 %s8476_s25, 4  ;;  %s8412_s1 = int_to_ptr.vmem [resolvable:$false] %s8411_s1 }
0x2d73   : > { %7975 = vmatmul.mubr.msk.bf16.vlgmr.msra.gmra.mrb[128].mxu0 %vm957_vm2, %v4772_v16 }
0x2d74   : > { %7990 = vmatprep.mubr.msk.bf16.mxu0 %vm8472_vm0, %v8471_v1  ;;  %7987 = vmatpush3.bf16.msra.mxu0 %v8296_v46 }
0x2d75   : > { %7988 = vmatprep.subr.bf16.mxu0 %v8471_v1 }
0x2d78   : > { %7989 = vmatpush3.bf16.msra.mxu0 %v8297_v47 }
0x2d79   : > { %8002 = vmatprep.subr.bf16.mxu0 %v8471_v1 }
0x2e46   : > { %v4814_v18 = vpop.f32.mrb[128].mxu0 }
0x2e47   : > { %4834 = vrot.lane.b32.xlu1 %v4814_v18, %s10046_s6  ;;  %v7976_v19 = vpop.f32.mrb[129].mxu0 }
0x2e48   : > { %v4817_v20 = vpop.f32.mrb[130].mxu0 }
0x2e49   : > { %v7977_v50 = vpop.f32.mrb[131].mxu0 }
0x2eb9   : > { %v4835_v56 = vpop.permute.xlu1 %4834 }
0x2eba   : > { %v4839_v27 = vsel %vm1989_vm5, %v4838_v25, %v4835_v56 }
0x2ebb   : > { %v4840_v28 = vpack.c.bf16 %v4839_v27, %v4839_v27 }
0x2ebd   : > { %7983 = vmatmul.mubr.msk.bf16.vlgmr.msra.gmra.mrb[124].mxu1 %vm785_vm1, %v4840_v28 }
0x2ebe   : > { %7998 = vmatprep.mubr.msk.bf16.mxu1 %vm8472_vm0, %v8471_v1  ;;  %7995 = vmatpush3.bf16.msra.mxu1 %v8294_v45  ;;  %v8303_v45 = vld [vmem:[%s10033_s27 + $0xd8] sm:$0xff]  }
0x2ebf   : > { %7996 = vmatprep.subr.bf16.mxu1 %v8471_v1 }
0x2f90   : > { %v4903_v30 = vpop.f32.mrb[124].mxu1 }
0x2f91   : > { %v4904_v31 = vadd.f32 %v7092_v29, %v4903_v30  ;;  %v7984_v32 = vpop.f32.mrb[125].mxu1 }
0x2f92   : > { %v4906_v33 = vpop.f32.mrb[126].mxu1  ;;  %v7123_v32 = vld [vmem:[%s9978_s9 + $0xc] ss:$0 sm:$0xff] }
0x2f93   : > { %v7985_v5 = vpop.f32.mrb[127].mxu1  ;;  %v4909_v34 = vadd.f32 %v4904_v31, %v9317_v8  ;;  %v8295_v8 = vld [vmem:[%s10033_s27 + $0xc8] sm:$0xff]  }
0x2f94   : > { %7997 = vmatpush3.bf16.msra.mxu1 %v8295_v8 }
0x2f95   : > { %v4910_v35 = vsel %vm785_vm1, %v4909_v34, 0.0  ;;  %8010 = vmatprep.subr.bf16.mxu1 %v8471_v1 }
0x2f96   : > { %4911 = vadd.xlane.f32.xlu1 %v4910_v35 }
0x2f97   : > { %7999 = vmatmul.mubr.msk.bf16.vlgmr.msra.gmra.mrb[128].mxu1 %vm785_vm1, %v8959_v38 }
0x2f98   : > { %8012 = vmatprep.mubr.msk.bf16.mxu1 %vm8472_vm0, %v8471_v1 }
0x3023   : > { %v4912_v36 = vpop.xlane.xlu1 %4911 }
0x3024   : > { %v4913_v39 = vmul.f32 0.03125, %v4912_v36 }
0x3026   : > { %v4914_v40 = vsub.f32 %v4909_v34, %v4913_v39 }
0x3028   : > { %v4915_v42 = vmul.f32 %v4914_v40, %v4914_v40 }
0x302a   : > { %v4916_v44 = vsel %vm785_vm1, %v4915_v42, 0.0  ;;  %v8302_v42 = vld [vmem:[%s10033_s27 + $0xd0] sm:$0xff]  }
0x302b   : > { %4917 = vadd.xlane.f32.xlu0 %v4916_v44 }
0x306a   : > { %v5069_v58 = vpop.f32.mrb[128].mxu1 }
0x306b   : > { %v5070_v60 = vadd.f32 %v7114_v57, %v5069_v58  ;;  %v8000_v10 = vpop.f32.mrb[129].mxu1  ;;  %v7134_v57 = vld [vmem:[%s10037_s5 + $0xd] ss:$0 sm:$0xff] }
0x306c   : > { %v5072_v24 = vpop.f32.mrb[130].mxu1  ;;  %v8304_v10 = vld [vmem:[%s10035_s23 + $0xe0] sm:$0xff]  }
0x306d   : > { %v5141_v61 = vpack.c.bf16 %v5070_v60, %v5070_v60  ;;  %v8001_v62 = vpop.f32.mrb[131].mxu1 }
0x306e   : > { %v8306_v62 = vld [vmem:[%s9977_s8 + $0xd0] sm:$0xff]  }
0x306f   : > { %v5146_v63 = vsel %vm957_vm2, %v5141_v61, 0  ;;  %v8305_v61 = vld [vmem:[%s10035_s23 + $0xe8] sm:$0xff]  }
0x3070   : > { %8011 = vmatpush3.bf16.xpose.msra.mxu1 %v5146_v63  ;;  %v8307_v63 = vld [vmem:[%s9977_s8 + $0xd8] sm:$0xff]  }
0x3071   : > { %8022 = vmatprep.subr.bf16.mxu1 %v8471_v1 }
0x30b8   : > { %v4918_v7 = vpop.xlane.xlu0 %4917 }
0x30b9   : > { %v4919_v51 = vmul.f32 0.03125, %v4918_v7 }
0x30bb   : > { %v4920_v48 = vadd.f32 1e-06, %v4919_v51  ;;  %v7143_v51 = vld [vmem:[%s9976_s7 + $0xd] ss:$0 sm:$0xff] }
0x30bd   : > { %8382 = vrsqrt.f32 %v4920_v48 }
0x30c7   : > { %v8383_v49 = vpop.eup %8382 }
0x30c8   : > { %v4922_v26 = vmul.f32 %v8383_v49, %v4914_v40 }
0x30ca   : > { %v4931_v54 = vmul.f32 %v7097_v52, %v4922_v26 }
0x30cc   : > { %v9605_v6 = vadd.f32 %v7099_v53, %v4931_v54 }
0x30ce   : > { %v9609_v55 = vpack.c.bf16 %v9605_v6, %v9605_v6 }
0x30d0   : > { %7991 = vmatmul.mubr.msk.bf16.vlgmr.msra.gmra.mrb[132].mxu0 %vm785_vm1, %v9609_v55 }
0x30d1   : > { %8006 = vmatprep.mubr.msk.bf16.mxu0 %vm8472_vm0, %v8471_v1  ;;  %8003 = vmatpush3.bf16.msra.mxu0 %v8300_v13 }
0x30d2   : > { %8004 = vmatprep.subr.bf16.mxu0 %v8471_v1 }
0x30d5   : > { %8005 = vmatpush3.bf16.msra.mxu0 %v8301_v41  ;;  %v7152_v41 = vld [vmem:[%s9978_s9 + $0xd] ss:$0 sm:$0xff] }
0x30d6   : > { %8016 = vmatprep.subr.bf16.mxu0 %v8471_v1 }
0x30d8   : > { %8007 = vmatmul.mubr.msk.bf16.vlgmr.msra.gmra.mrb[136].mxu0 %vm785_vm1, %v8959_v38 }
0x30d9   : > { %8018 = vmatprep.mubr.msk.bf16.mxu0 %vm8472_vm0, %v8471_v1 }
0x31a3   : > { %v5004_v43 = vpop.f32.mrb[132].mxu0 }
0x31a4   : > { %v5005_v2 = vadd.f32 %v7105_v0, %v5004_v43  ;;  %v7992_v3 = vpop.f32.mrb[133].mxu0 }
0x31a5   : > { %v5007_v4 = vpop.f32.mrb[134].mxu0 }
0x31a6   : > { %v5140_v11 = vpack.c.bf16 %v5005_v2, %v5005_v2  ;;  %v7993_v12 = vpop.f32.mrb[135].mxu0 }
0x31a8   : > { %8013 = vmatmul.mubr.msk.bf16.vlgmr.msra.gmra.mrb[132].mxu1 %vm957_vm2, %v5140_v11 }
0x31a9   : > { %8023 = vmatpush3.bf16.msra.mxu1 %v8298_v9  ;;  %8026 = vmatprep.mubr.msk.bf16.mxu1 %vm8472_vm0, %v8471_v1 }
0x31aa   : > { %8024 = vmatprep.subr.bf16.mxu1 %v8471_v1 }
0x31ab   : > { %v5134_v29 = vpop.f32.mrb[136].mxu0 }
0x31ac   : > { %v8008_v30 = vpop.f32.mrb[137].mxu0  ;;  %v5135_v5 = vadd.f32 %v7123_v32, %v5134_v29  ;;  %v8308_v29 = vld [vmem:[%s10033_s27 + $0xe0] sm:$0xff]  }
0x31ad   : > { %8025 = vmatpush3.bf16.msra.mxu1 %v8299_v37  ;;  %v5137_v31 = vpop.f32.mrb[138].mxu0 }
0x31ae   : > { %8038 = vmatprep.subr.bf16.mxu1 %v8471_v1  ;;  %v8009_v33 = vpop.f32.mrb[139].mxu0  ;;  %v5200_v34 = vpack.c.bf16 %v5135_v5, %v5135_v5  ;;  %v8309_v31 = vld [vmem:[%s10033_s27 + $0xe8] sm:$0xff]  }
0x31b0   : > { %8027 = vmatmul.mubr.msk.bf16.vlgmr.msra.gmra.mrb[136].mxu1 %vm785_vm1, %v9609_v55  ;;  %v5205_v35 = vsel %vm1020_vm3, %v5200_v34, 0 }
0x31b1   : > { %8042 = vmatprep.mubr.msk.bf16.mxu1 %vm8472_vm0, %v8471_v1  ;;  %8017 = vmatpush3.bf16.msra.mxu0 %v5205_v35  ;;  %v7172_v35 = vld [vmem:[%s9976_s7 + $0xe] ss:$0 sm:$0xff] }
0x31b2   : > { %8030 = vmatprep.subr.bf16.mxu0 %v8471_v1  ;;  %8039 = vmatpush3.bf16.msra.mxu1 %v8306_v62 }
0x31b3   : > { %8040 = vmatprep.subr.bf16.mxu1 %v8471_v1 }
0x31b6   : > { %8041 = vmatpush3.bf16.msra.mxu1 %v8307_v63 }
0x31b7   : > { %8052 = vmatprep.subr.bf16.mxu1 %v8471_v1 }
0x31b9   : > { %8043 = vmatmul.mubr.msk.bf16.vlgmr.msra.gmra.mrb[140].mxu1 %vm785_vm1, %v8959_v38 }
0x31ba   : > { %8054 = vmatprep.mubr.msk.bf16.mxu1 %vm8472_vm0, %v8471_v1 }
0x327b   : > { %v5182_v14 = vpop.f32.mrb[132].mxu1 }
0x327c   : > { %v5183_v16 = vadd.f32 %v9651_v15, %v5182_v14  ;;  %v8014_v59 = vpop.f32.mrb[133].mxu1 }
0x327d   : > { %v5185_v17 = vpop.f32.mrb[134].mxu1 }
0x327e   : > { %v8015_v18 = vpop.f32.mrb[135].mxu1  ;;  %v5188_v19 = vsel %vm957_vm2, %v5183_v16, -inf }
0x327f   : > { %5189 = vmax.xlane.f32.xlu0 %v5188_v19 }
0x3283   : > { %v5306_v20 = vpop.f32.mrb[136].mxu1 }
0x3284   : > { %v8028_v50 = vpop.f32.mrb[137].mxu1  ;;  %v5307_v60 = vadd.f32 %v7134_v57, %v5306_v20 }
0x3285   : > { %v5309_v21 = vpop.f32.mrb[138].mxu1 }
0x3286   : > { %v8029_v22 = vpop.f32.mrb[139].mxu1  ;;  %v5442_v24 = vpack.c.bf16 %v5307_v60, %v5307_v60 }
0x328c   : > { %v5436_v14 = vpop.f32.mrb[140].mxu1 }
0x328d   : > { %v8044_v59 = vpop.f32.mrb[141].mxu1 }
0x328e   : > { %v5439_v17 = vpop.f32.mrb[142].mxu1 }
0x328f   : > { %v8045_v19 = vpop.f32.mrb[143].mxu1 }
0x330c   : > { %v5190_v23 = vpop.xlane.xlu0 %5189 }
0x330d   : > { %v5191_v25 = vsub.f32 %v5183_v16, %v5190_v23  ;;  %v5437_v16 = vadd.f32 %v7152_v41, %v5436_v14 }
0x330f   : > { %v5192_v56 = vmul.f32 1.442695, %v5191_v25  ;;  %v5502_v18 = vpack.c.bf16 %v5437_v16, %v5437_v16 }
0x3311   : > { %8384 = vpow2.f32 %v5192_v56  ;;  %v5507_v20 = vsel %vm1020_vm3, %v5502_v18, 0  ;;  %v8314_v18 = vld [vmem:[%s10033_s27 + $0xf0] sm:$0xff]  }
0x3312   : > { %8053 = vmatpush3.bf16.msra.mxu1 %v5507_v20  ;;  %v8315_v20 = vld [vmem:[%s10033_s27 + $0xf8] sm:$0xff]  }
0x3313   : > { %8066 = vmatprep.subr.bf16.mxu1 %v8471_v1 }
0x331b   : > { %v8385_v27 = vpop.eup %8384 }
0x331c   : > { %v5194_v28 = vsel %vm957_vm2, %v8385_v27, 0.0 }
0x331d   : > { %5195 = vadd.xlane.f32.xlu0 %v5194_v28 }
0x33aa   : > { %v5196_v36 = vpop.xlane.xlu0 %5195 }
0x33ab   : > { %8386 = vrcp.f32 %v5196_v36 }
0x33b5   : > { %v8387_v39 = vpop.eup %8386 }
0x33b6   : > { %v5198_v40 = vmul.f32 %v8387_v39, %v8385_v27 }
0x33b8   : > { %7216 = vst.msk [vmem:[%s9047_s2 + $0x20] sm:$0xff] %vm957_vm2, %v5198_v40  ;;  %v5199_v44 = vpack.c.bf16 %v5198_v40, %v5198_v40 }
0x33ba   : > { %8019 = vmatmul.mubr.msk.bf16.vlgmr.msra.gmra.mrb[140].mxu0 %vm957_vm2, %v5199_v44 }
0x33bb   : > { %8031 = vmatpush3.bf16.msra.mxu0 %v8302_v42  ;;  %8034 = vmatprep.mubr.msk.bf16.mxu0 %vm8472_vm0, %v8471_v1 }
0x33bc   : > { %8032 = vmatprep.subr.bf16.mxu0 %v8471_v1 }
0x33bf   : > { %8033 = vmatpush3.bf16.msra.mxu0 %v8303_v45 }
0x33c0   : > { %8046 = vmatprep.subr.bf16.mxu0 %v8471_v1 }
0x33c2   : > { %8035 = vmatmul.mubr.msk.bf16.vlgmr.msra.gmra.mrb[144].mxu0 %vm785_vm1, %v8959_v38 }
0x33c3   : > { %8048 = vmatprep.mubr.msk.bf16.mxu0 %vm8472_vm0, %v8471_v1 }
0x348d   : > { %v9678_v8 = vpop.f32.mrb[140].mxu0 }
0x348e   : > { %v8020_v46 = vpop.f32.mrb[141].mxu0 }
0x348f   : > { %v5244_v47 = vpop.f32.mrb[142].mxu0  ;;  %v7163_v46 = vld [vmem:[%s10037_s5 + $0xe] ss:$0 sm:$0xff] }
0x3490   : > { %v8021_v7 = vpop.f32.mrb[143].mxu0 }
0x3495   : > { %v5371_v48 = vpop.f32.mrb[144].mxu0 }
0x3496   : > { %v5372_v49 = vadd.f32 %v7143_v51, %v5371_v48  ;;  %v8036_v52 = vpop.f32.mrb[145].mxu0  ;;  %v8310_v51 = vld [vmem:[%s10035_s23 + $0xf0] sm:$0xff]  }
0x3497   : > { %v5374_v26 = vpop.f32.mrb[146].mxu0  ;;  %v8312_v52 = vld [vmem:[%s9977_s8 + $0xe0] sm:$0xff]  }
0x3498   : > { %v5443_v53 = vpack.c.bf16 %v5372_v49, %v5372_v49  ;;  %v8037_v54 = vpop.f32.mrb[147].mxu0  ;;  %v8311_v49 = vld [vmem:[%s10035_s23 + $0xf8] sm:$0xff]   ;;  %v8313_v26 = vld [vmem:[%s9977_s8 + $0xe8] sm:$0xff]  }
0x349a   : > { %v5448_v58 = vsel %vm957_vm2, %v5443_v53, 0 }
0x349b   : > { %8047 = vmatpush3.bf16.xpose.msra.mxu0 %v5448_v58 }
0x349c   : > { %8058 = vmatprep.subr.bf16.mxu0 %v8471_v1 }
0x34a2   : > { %8049 = vmatmul.mubr.msk.bf16.vlgmr.msra.gmra.mrb[148].mxu0 %vm957_vm2, %v5442_v24 }
0x34a3   : > { %8059 = vmatpush3.bf16.msra.mxu0 %v8304_v10  ;;  %8062 = vmatprep.mubr.msk.bf16.mxu0 %vm8472_vm0, %v8471_v1 }
0x34a4   : > { %8060 = vmatprep.subr.bf16.mxu0 %v8471_v1 }
0x34a7   : > { %8061 = vmatpush3.bf16.msra.mxu0 %v8305_v61 }
0x34a8   : > { %8074 = vmatprep.subr.bf16.mxu0 %v8471_v1 }
0x34aa   : > { %8063 = vmatmul.mubr.msk.bf16.vlgmr.msra.gmra.mrb[152].mxu0 %vm785_vm1, %v9609_v55 }
0x34ab   : > { %8078 = vmatprep.mubr.msk.bf16.mxu0 %vm8472_vm0, %v8471_v1  ;;  %8075 = vmatpush3.bf16.msra.mxu0 %v8312_v52 }
0x34ac   : > { %8076 = vmatprep.subr.bf16.mxu0 %v8471_v1 }
0x34af   : > { %8077 = vmatpush3.bf16.msra.mxu0 %v8313_v26 }
0x34b0   : > { %8088 = vmatprep.subr.bf16.mxu0 %v8471_v1 }
0x34b2   : > { %8079 = vmatmul.mubr.msk.bf16.vlgmr.msra.gmra.mrb[156].mxu0 %vm785_vm1, %v8959_v38 }
0x34b3   : > { %8090 = vmatprep.mubr.msk.bf16.mxu0 %vm8472_vm0, %v8471_v1 }
0x3575   : > { %v5484_v0 = vpop.f32.mrb[148].mxu0 }
0x3576   : > { %v5485_v43 = vadd.f32 %v9651_v15, %v5484_v0  ;;  %v8050_v2 = vpop.f32.mrb[149].mxu0 }
0x3577   : > { %v5487_v3 = vpop.f32.mrb[150].mxu0 }
0x3578   : > { %v8051_v4 = vpop.f32.mrb[151].mxu0  ;;  %v5490_v9 = vsel %vm957_vm2, %v5485_v43, -inf }
0x3579   : > { %5491 = vmax.xlane.f32.xlu1 %v5490_v9 }
0x357d   : > { %v5608_v11 = vpop.f32.mrb[152].mxu0 }
0x357e   : > { %v8064_v12 = vpop.f32.mrb[153].mxu0  ;;  %v5609_v7 = vadd.f32 %v7163_v46, %v5608_v11 }
0x357f   : > { %v5611_v37 = vpop.f32.mrb[154].mxu0  ;;  %v7181_v12 = vld [vmem:[%s9978_s9 + $0xe] ss:$0 sm:$0xff] }
0x3580   : > { %v8065_v13 = vpop.f32.mrb[155].mxu0  ;;  %v5744_v48 = vpack.c.bf16 %v5609_v7, %v5609_v7  ;;  %v7210_v7 = vld [vmem:[%s9978_s9 + $0xf] ss:$0 sm:$0xff] }
0x3585   : > { %v5738_v4 = vpop.f32.mrb[156].mxu0 }
0x3586   : > { %v8080_v9 = vpop.f32.mrb[157].mxu0  ;;  %v5739_v13 = vadd.f32 %v7181_v12, %v5738_v4 }
0x3587   : > { %v5741_v11 = vpop.f32.mrb[158].mxu0 }
0x3588   : > { %v8081_v37 = vpop.f32.mrb[159].mxu0  ;;  %v5804_v41 = vpack.c.bf16 %v5739_v13, %v5739_v13 }
0x358a   : > { %v5809_v14 = vsel %vm1020_vm3, %v5804_v41, 0  ;;  %v7225_v41 = vld [vmem:[%s9980_s11 + $0x3] ss:$0 sm:$0xff] }
0x358b   : > { %8089 = vmatpush3.bf16.msra.mxu0 %v5809_v14 }
0x358c   : > { %8102 = vmatprep.subr.bf16.mxu0 %v8471_v1 }
0x3606   : > { %v5492_v50 = vpop.xlane.xlu1 %5491 }
0x3607   : > { %v5493_v21 = vsub.f32 %v5485_v43, %v5492_v50 }
0x3609   : > { %v5494_v22 = vmul.f32 1.442695, %v5493_v21 }
0x360b   : > { %8388 = vpow2.f32 %v5494_v22 }
0x3615   : > { %v8389_v23 = vpop.eup %8388 }
0x3616   : > { %v5496_v25 = vsel %vm957_vm2, %v8389_v23, 0.0 }
0x3617   : > { %5497 = vadd.xlane.f32.xlu0 %v5496_v25  ;;  %v7201_v25 = vld [vmem:[%s9976_s7 + $0xf] ss:$0 sm:$0xff] }
0x36a4   : > { %v5498_v56 = vpop.xlane.xlu0 %5497 }
0x36a5   : > { %8390 = vrcp.f32 %v5498_v56 }
0x36af   : > { %v8391_v27 = vpop.eup %8390 }
0x36b0   : > { %v5500_v28 = vmul.f32 %v8391_v27, %v8389_v23 }
0x36b2   : > { %7217 = vst.msk [vmem:[%s9047_s2 + $0x28] sm:$0xff] %vm957_vm2, %v5500_v28  ;;  %v5501_v30 = vpack.c.bf16 %v5500_v28, %v5500_v28 }
0x36b4   : > { %8055 = vmatmul.mubr.msk.bf16.vlgmr.msra.gmra.mrb[144].mxu1 %vm957_vm2, %v5501_v30 }
0x36b5   : > { %8067 = vmatpush3.bf16.msra.mxu1 %v8308_v29  ;;  %8070 = vmatprep.mubr.msk.bf16.mxu1 %vm8472_vm0, %v8471_v1 }
0x36b6   : > { %8068 = vmatprep.subr.bf16.mxu1 %v8471_v1 }
0x36b9   : > { %8069 = vmatpush3.bf16.msra.mxu1 %v8309_v31 }
0x36ba   : > { %8082 = vmatprep.subr.bf16.mxu1 %v8471_v1 }
0x36bc   : > { %8071 = vmatmul.mubr.msk.bf16.vlgmr.msra.gmra.mrb[148].mxu1 %vm785_vm1, %v8959_v38 }
0x36bd   : > { %8084 = vmatprep.mubr.msk.bf16.mxu1 %vm8472_vm0, %v8471_v1 }
0x3787   : > { %v9740_v32 = vpop.f32.mrb[144].mxu1 }
0x3788   : > { %v8056_v33 = vpop.f32.mrb[145].mxu1 }
0x3789   : > { %v5546_v5 = vpop.f32.mrb[146].mxu1  ;;  %v7192_v33 = vld [vmem:[%s10037_s5 + $0xf] ss:$0 sm:$0xff] }
0x378a   : > { %v8057_v34 = vpop.f32.mrb[147].mxu1 }
0x378f   : > { %v5673_v36 = vpop.f32.mrb[148].mxu1 }
0x3790   : > { %v5674_v39 = vadd.f32 %v7172_v35, %v5673_v36  ;;  %v8072_v40 = vpop.f32.mrb[149].mxu1  ;;  %v8316_v36 = vld [vmem:[%s9977_s8 + $0xf0] sm:$0xff]  }
0x3791   : > { %v5676_v42 = vpop.f32.mrb[150].mxu1 }
0x3792   : > { %v5745_v44 = vpack.c.bf16 %v5674_v39, %v5674_v39  ;;  %v8073_v45 = vpop.f32.mrb[151].mxu1  ;;  %v8317_v39 = vld [vmem:[%s9977_s8 + $0xf8] sm:$0xff]  }
0x3794   : > { %v5750_v47 = vsel %vm957_vm2, %v5745_v44, 0 }
0x3795   : > { %8083 = vmatpush3.bf16.xpose.msra.mxu1 %v5750_v47 }
0x3796   : > { %8094 = vmatprep.subr.bf16.mxu1 %v8471_v1 }
0x379c   : > { %8085 = vmatmul.mubr.msk.bf16.vlgmr.msra.gmra.mrb[152].mxu1 %vm957_vm2, %v5744_v48 }
0x379d   : > { %8095 = vmatpush3.bf16.msra.mxu1 %v8310_v51  ;;  %8098 = vmatprep.mubr.msk.bf16.mxu1 %vm8472_vm0, %v8471_v1 }
0x379e   : > { %8096 = vmatprep.subr.bf16.mxu1 %v8471_v1 }
0x37a1   : > { %8097 = vmatpush3.bf16.msra.mxu1 %v8311_v49 }
0x37a2   : > { %8110 = vmatprep.subr.bf16.mxu1 %v8471_v1 }
0x37a4   : > { %8099 = vmatmul.mubr.msk.bf16.vlgmr.msra.gmra.mrb[156].mxu1 %vm785_vm1, %v9609_v55 }
0x37a5   : > { %8114 = vmatprep.mubr.msk.bf16.mxu1 %vm8472_vm0, %v8471_v1  ;;  %8111 = vmatpush3.bf16.msra.mxu1 %v8316_v36 }
0x37a6   : > { %8112 = vmatprep.subr.bf16.mxu1 %v8471_v1 }
0x37a9   : > { %8113 = vmatpush3.bf16.msra.mxu1 %v8317_v39 }
0x37aa   : > { %8124 = vmatprep.subr.bf16.mxu1 %v8471_v1 }
0x37ac   : > { %8115 = vmatmul.mubr.msk.bf16.vlgmr.msra.gmra.mrb[160].mxu1 %vm785_vm1, %v8959_v38 }
0x37ad   : > { %8126 = vmatprep.mubr.msk.bf16.mxu1 %vm8472_vm0, %v8471_v1 }
0x386f   : > { %v5786_v55 = vpop.f32.mrb[152].mxu1 }
0x3870   : > { %v5787_v53 = vadd.f32 %v9651_v15, %v5786_v55  ;;  %v8086_v54 = vpop.f32.mrb[153].mxu1 }
0x3871   : > { %v5789_v57 = vpop.f32.mrb[154].mxu1 }
0x3872   : > { %v8087_v58 = vpop.f32.mrb[155].mxu1  ;;  %v5792_v60 = vsel %vm957_vm2, %v5787_v53, -inf }
0x3873   : > { %5793 = vmax.xlane.f32.xlu1 %v5792_v60 }
0x3877   : > { %v5910_v10 = vpop.f32.mrb[156].mxu1 }
0x3878   : > { %v8100_v24 = vpop.f32.mrb[157].mxu1  ;;  %v5911_v34 = vadd.f32 %v7192_v33, %v5910_v10  ;;  %v7230_v33 = vld [vmem:[%s9981_s12 + $0x4] ss:$0 sm:$0xff] }
0x3879   : > { %v5913_v61 = vpop.f32.mrb[158].mxu1 }
0x387a   : > { %v8101_v62 = vpop.f32.mrb[159].mxu1  ;;  %v6046_v35 = vpack.c.bf16 %v5911_v34, %v5911_v34  ;;  %v8318_v61 = vld [vmem:[%s9979_s10 + $0x30] sm:$0xff]   ;;  %v7232_v34 = vld [vmem:[%s9982_s13 + $0x4] ss:$0 sm:$0xff] }
0x387b   : > { %v8319_v62 = vld [vmem:[%s9979_s10 + $0x38] sm:$0xff]  }
0x3900   : > { %v5794_v63 = vpop.xlane.xlu1 %5793 }
0x3901   : > { %v5795_v0 = vsub.f32 %v5787_v53, %v5794_v63 }
0x3903   : > { %v5796_v43 = vmul.f32 1.442695, %v5795_v0 }
0x3905   : > { %8392 = vpow2.f32 %v5796_v43 }
0x390f   : > { %v8393_v2 = vpop.eup %8392 }
0x3910   : > { %v5798_v3 = vsel %vm957_vm2, %v8393_v2, 0.0 }
0x3911   : > { %5799 = vadd.xlane.f32.xlu0 %v5798_v3 }
0x399e   : > { %v5800_v16 = vpop.xlane.xlu0 %5799 }
0x399f   : > { %8394 = vrcp.f32 %v5800_v16 }
0x39a9   : > { %v8395_v59 = vpop.eup %8394 }
0x39aa   : > { %v5802_v17 = vmul.f32 %v8395_v59, %v8393_v2 }
0x39ac   : > { %7218 = vst.msk [vmem:[%s9047_s2 + $0x30] sm:$0xff] %vm957_vm2, %v5802_v17  ;;  %v5803_v19 = vpack.c.bf16 %v5802_v17, %v5802_v17 }
0x39ae   : > { %8091 = vmatmul.mubr.msk.bf16.vlgmr.msra.gmra.mrb[160].mxu0 %vm957_vm2, %v5803_v19 }
0x39af   : > { %8103 = vmatpush3.bf16.msra.mxu0 %v8314_v18  ;;  %8106 = vmatprep.mubr.msk.bf16.mxu0 %vm8472_vm0, %v8471_v1 }
0x39b0   : > { %8104 = vmatprep.subr.bf16.mxu0 %v8471_v1 }
0x39b3   : > { %8105 = vmatpush3.bf16.msra.mxu0 %v8315_v20 }
0x39b4   : > { %8118 = vmatprep.subr.bf16.mxu0 %v8471_v1 }
0x39b6   : > { %8107 = vmatmul.mubr.msk.bf16.vlgmr.msra.gmra.mrb[164].mxu0 %vm785_vm1, %v8959_v38  ;;  %v6040_v38 = vpop.f32.mrb[160].mxu1 }
0x39b7   : > { %8120 = vmatprep.mubr.msk.bf16.mxu0 %vm8472_vm0, %v8471_v1  ;;  %v6041_v51 = vadd.f32 %v7210_v7, %v6040_v38  ;;  %v8116_v48 = vpop.f32.mrb[161].mxu1 }
0x39b8   : > { %v6043_v49 = vpop.f32.mrb[162].mxu1 }
0x39b9   : > { %v6106_v52 = vpack.c.bf16 %v6041_v51, %v6041_v51  ;;  %v8117_v26 = vpop.f32.mrb[163].mxu1  ;;  %v7251_v49 = vld [vmem:[%s9986_s17 + $0x1] ss:$0 sm:$0xff] }
0x3a81   : > { %v5845_v50 = vpop.f32.mrb[160].mxu0 }
0x3a82   : > { %v8092_v21 = vpop.f32.mrb[161].mxu0 }
0x3a83   : > { %v5848_v22 = vpop.f32.mrb[162].mxu0 }
0x3a84   : > { %v8093_v23 = vpop.f32.mrb[163].mxu0 }
0x3a89   : > { %v5975_v56 = vpop.f32.mrb[164].mxu0 }
0x3a8a   : > { %v5976_v27 = vadd.f32 %v7201_v25, %v5975_v56  ;;  %v8108_v28 = vpop.f32.mrb[165].mxu0  ;;  %v8320_v25 = vld [vmem:[%s9983_s14 + $0x10] sm:$0xff]   ;;  %v8322_v56 = vld [vmem:[%s9985_s16 + $0x20] sm:$0xff]  }
0x3a8b   : > { %v5978_v29 = vpop.f32.mrb[166].mxu0 }
0x3a8c   : > { %v6047_v30 = vpack.c.bf16 %v5976_v27, %v5976_v27  ;;  %v8109_v31 = vpop.f32.mrb[167].mxu0  ;;  %v8323_v27 = vld [vmem:[%s9985_s16 + $0x28] sm:$0xff]  }
0x3a8e   : > { %v6052_v5 = vsel %vm957_vm2, %v6047_v30, 0 }
0x3a8f   : > { %8119 = vmatpush3.bf16.xpose.msra.mxu0 %v6052_v5 }
0x3a90   : > { %8130 = vmatprep.subr.bf16.mxu0 %v8471_v1 }
0x3a96   : > { %8121 = vmatmul.mubr.msk.bf16.vlgmr.msra.gmra.mrb[168].mxu0 %vm957_vm2, %v6046_v35 }
0x3a97   : > { %8134 = vmatprep.mubr.msk.bf16.mxu0 %vm8472_vm0, %v8471_v1  ;;  %8131 = vmatpush3.bf16.msra.mxu0 %v8318_v61  ;;  %v8326_v61 = vld [vmem:[%s9987_s18] sm:$0xff]  }
0x3a98   : > { %8132 = vmatprep.subr.bf16.mxu0 %v8471_v1 }
0x3a9b   : > { %8133 = vmatpush3.bf16.msra.mxu0 %v8319_v62  ;;  %v8327_v62 = vld [vmem:[%s9987_s18 + $0x8] sm:$0xff]  }
0x3a9c   : > { %8146 = vmatprep.subr.bf16.mxu0 %v8471_v1 }
0x3b69   : > { %v6088_v40 = vpop.f32.mrb[168].mxu0 }
0x3b6a   : > { %v6089_v42 = vadd.f32 %v9651_v15, %v6088_v40  ;;  %v8122_v44 = vpop.f32.mrb[169].mxu0  ;;  %v6111_v15 = vsel %vm1020_vm3, %v6106_v52, 0  ;;  %v8324_v40 = vld [vmem:[%s9985_s16 + $0x30] sm:$0xff]  }
0x3b6b   : > { %v6091_v45 = vpop.f32.mrb[170].mxu0  ;;  %8125 = vmatpush3.bf16.msra.mxu1 %v6111_v15  ;;  %v7238_v44 = vld [vmem:[%s9984_s15 + $0x1] ss:$0 sm:$0xff] }
0x3b6c   : > { %v8123_v46 = vpop.f32.mrb[171].mxu0  ;;  %v6094_v47 = vsel %vm957_vm2, %v6089_v42, -inf  ;;  %8138 = vmatprep.subr.bf16.mxu1 %v8471_v1 }
0x3b6d   : > { %6095 = vmax.xlane.f32.xlu1 %v6094_v47 }
0x3b7e   : > { %6159 = vrot.lane.b32.xlu1 %v9740_v32, %s10044_s19  ;;  %s10047_s19 = sld [smem:[#allocation8_spill]] }
0x3b84   : > { %s7266_s4 = sshll.u32 %s10047_s19, 7 }
0x3bfa   : > { %v6096_v55 = vpop.xlane.xlu1 %6095 }
0x3bfb   : > { %v6097_v53 = vsub.f32 %v6089_v42, %v6096_v55  ;;  %v8325_v42 = vld [vmem:[%s9985_s16 + $0x38] sm:$0xff]  }
0x3bfd   : > { %v6098_v54 = vmul.f32 1.442695, %v6097_v53 }
0x3bfe   : > { %v6160_v3 = vpop.permute.xlu1 %6159 }
0x3bff   : > { %8396 = vpow2.f32 %v6098_v54  ;;  %v6170_v9 = vsel %vm957_vm2, %v9678_v8, %v6160_v3  ;;  %v7258_v3 = vld [vmem:[%s9981_s12 + $0x5] ss:$0 sm:$0xff] }
0x3c09   : > { %v8397_v32 = vpop.eup %8396 }
0x3c0a   : > { %v6100_v57 = vsel %vm957_vm2, %v8397_v32, 0.0 }
0x3c0b   : > { %6101 = vadd.xlane.f32.xlu0 %v6100_v57 }
0x3c21   : > { %6163 = vrot.lane.b32.xlu0 %v5845_v50, %s10045_s3  ;;  %s10050_s3 = sld [smem:[#allocation21_spill]] }
0x3c27   : > { %s9926_s30 = scalar_lea.hbm %s10050_s3, %s7266_s4 }
0x3c98   : > { %v6102_v58 = vpop.xlane.xlu0 %6101 }
0x3c99   : > { %8398 = vrcp.f32 %v6102_v58 }
0x3c9c   : > { %v6164_v4 = vpop.permute.xlu0 %6163 }
0x3c9d   : > { %v6171_v11 = vsel %vm1987_vm4, %v6170_v9, %v6164_v4 }
0x3ca3   : > { %v8399_v60 = vpop.eup %8398 }
0x3ca4   : > { %v6104_v10 = vmul.f32 %v8399_v60, %v8397_v32 }
0x3ca6   : > { %7219 = vst.msk [vmem:[%s9047_s2 + $0x38] sm:$0xff] %vm957_vm2, %v6104_v10  ;;  %v6105_v24 = vpack.c.bf16 %v6104_v10, %v6104_v10  ;;  %s10051_s2 = smov %s10050_s3 }
0x3ca8   : > { %8127 = vmatmul.mubr.msk.bf16.vlgmr.msra.gmra.mrb[164].mxu1 %vm957_vm2, %v6105_v24 }
0x3ca9   : > { %8142 = vmatprep.mubr.msk.bf16.mxu1 %vm8472_vm0, %v8471_v1  ;;  %8139 = vmatpush3.bf16.msra.mxu1 %v8320_v25 }
0x3caa   : > { %8140 = vmatprep.subr.bf16.mxu1 %v8471_v1 }
0x3d7b   : > { %v6147_v63 = vpop.f32.mrb[164].mxu1 }
0x3d7c   : > { %6167 = vrot.lane.b32.xlu1 %v6147_v63, %s10046_s6  ;;  %v8128_v0 = vpop.f32.mrb[165].mxu1  ;;  %s712_s6 = sand.u32 1, %s8461_s28  }
0x3d7d   : > { %v6150_v43 = vpop.f32.mrb[166].mxu1  ;;  %s6708_s21 = sshll.u32 %s712_s6, 3  ;;  %s6530_s19 = scalar_lea.sflag [#allocation3], %s712_s6 }
0x3d7e   : > { %v8129_v2 = vpop.f32.mrb[167].mxu1  ;;  %s714_s20 = scalar_lea.vmem [#allocation2], %s6708_s21 }
0x3d7f   : > { %s6553_s24 = sshll.u32 %s714_s20, 4  ;;  %s9928_s24 = int_to_ptr.vmem [resolvable:$true] %s6553_s24 }
0x3d80   : > { %s8407_s21 = scalar_lea.vmem %s9928_s24, 128  ;;  %p8414_p0 = scmp.lt.s32.totalorder %s9928_s24, %s8412_s1 }
0x3d81   : > { %p8408_p11 = scmp.ne.s32.totalorder %s9928_s24, %s8407_s21 }
0x3d83   : > { %p8409_p12 = pnand %p8408_p11, %p8630_p5 }
0x3d85   : > { %p8410_p13 = pneg %p8409_p12 }
0x3dee   : > { %v6168_v12 = vpop.permute.xlu1 %6167 }
0x3def   : > { %v6172_v37 = vsel %vm1989_vm5, %v6171_v11, %v6168_v12 }
0x3df0   : > { %v6173_v13 = vpack.c.bf16 %v6172_v37, %v6172_v37  ;;  %v7261_v37 = vld [vmem:[%s10048_s0] ss:$0 sm:$0xff]  ;;  %s8413_s0 = scalar_lea.vmem %s8412_s1, 256 }
0x3df1   : > { %p8415_p1 = scmp.lt.s32.totalorder %s8413_s0, %s8407_s21 }
0x3df2   : > { %8135 = vmatmul.mubr.msk.bf16.vlgmr.msra.gmra.mrb[172].mxu0 %vm785_vm1, %v6173_v13 }
0x3df3   : > { %8154 = vmatprep.mubr.msk.bf16.mxu0 %vm8472_vm0, %v8471_v1  ;;  %8147 = vmatpush3.bf16.msra.mxu0 %v8322_v56  ;;  %p8416_p2 = por %p8415_p1, %p8414_p0 }
0x3df4   : > { %8148 = vmatprep.subr.bf16.mxu0 %v8471_v1 }
0x3df5   : > { %p8417_p3 = pnand %p8416_p2, %p8410_p13 }
0x3df7   : > { %8149 = vmatpush3.bf16.msra.mxu0 %v8323_v27 }
0x3df8   : > { %8150 = vmatprep.subr.bf16.mxu0 %v8471_v1 }
0x3dfb   : > { %8151 = vmatpush3.bf16.msra.mxu0 %v8324_v40 }
0x3dfc   : > { %8152 = vmatprep.subr.bf16.mxu0 %v8471_v1 }
0x3dff   : > { %8153 = vmatpush3.bf16.msra.mxu0 %v8325_v42 }
0x3ec5   : > { %v6236_v14 = vpop.f32.mrb[172].mxu0 }
0x3ec6   : > { %v6237_v16 = vadd.f32 %v7225_v41, %v6236_v14  ;;  %v8136_v59 = vpop.f32.mrb[173].mxu0 }
0x3ec7   : > { %v6239_v17 = vpop.f32.mrb[174].mxu0 }
0x3ec8   : > { %v8137_v8 = vpop.f32.mrb[175].mxu0  ;;  %v6242_v18 = vadd.f32 %v6237_v16, %v9605_v6  ;;  %v8321_v6 = vld [vmem:[%s9983_s14 + $0x18] sm:$0xff]  }
0x3ec9   : > { %8141 = vmatpush3.bf16.msra.mxu1 %v8321_v6 }
0x3eca   : > { %v6243_v19 = vsel %vm785_vm1, %v6242_v18, 0.0  ;;  %8158 = vmatprep.subr.bf16.mxu1 %v8471_v1 }
0x3ecb   : > { %6244 = vadd.xlane.f32.xlu1 %v6243_v19 }
0x3f58   : > { %v6245_v20 = vpop.xlane.xlu1 %6244 }
0x3f59   : > { %v6246_v50 = vmul.f32 0.03125, %v6245_v20 }
0x3f5b   : > { %v6247_v21 = vsub.f32 %v6242_v18, %v6246_v50 }
0x3f5d   : > { %v6248_v22 = vmul.f32 %v6247_v21, %v6247_v21 }
0x3f5f   : > { %v6249_v23 = vsel %vm785_vm1, %v6248_v22, 0.0 }
0x3f60   : > { %6250 = vadd.xlane.f32.xlu0 %v6249_v23 }
0x3fed   : > { %v6251_v28 = vpop.xlane.xlu0 %6250 }
0x3fee   : > { %v6252_v29 = vmul.f32 0.03125, %v6251_v28 }
0x3ff0   : > { %v6253_v30 = vadd.f32 1e-06, %v6252_v29 }
0x3ff2   : > { %8400 = vrsqrt.f32 %v6253_v30 }
0x3ffc   : > { %v8401_v31 = vpop.eup %8400 }
0x3ffd   : > { %v6255_v5 = vmul.f32 %v8401_v31, %v6247_v21 }
0x3fff   : > { %v6264_v35 = vmul.f32 %v7230_v33, %v6255_v5 }
0x4001   : > { %v6273_v36 = vadd.f32 %v7232_v34, %v6264_v35 }
0x4003   : > { %v6274_v39 = vpack.c.bf16 %v6273_v36, %v6273_v36 }
0x4005   : > { %8143 = vmatmul.mubr.msk.bf16.vlgmr.msra.gmra.mrb[168].mxu1 %vm785_vm1, %v6274_v39 }
0x4006   : > { %8162 = vmatprep.mubr.msk.bf16.mxu1 %vm8472_vm0, %v8471_v1  ;;  %8159 = vmatpush3.bf16.msra.mxu1 %v8326_v61 }
0x4007   : > { %8160 = vmatprep.subr.bf16.mxu1 %v8471_v1  ;;  %v7260_v1 = vld [vmem:[%s9982_s13 + $0x5] ss:$0 sm:$0xff] }
0x400a   : > { %8161 = vmatpush3.bf16.msra.mxu1 %v8327_v62 }
0x40d8   : > { %v6337_v45 = vpop.f32.mrb[168].mxu1 }
0x40d9   : > { %v6338_v46 = vadd.f32 %v7238_v44, %v6337_v45  ;;  %v8144_v47 = vpop.f32.mrb[169].mxu1 }
0x40da   : > { %v6340_v7 = vpop.f32.mrb[170].mxu1 }
0x40db   : > { %v6343_v38 = vmax.f32 %v6338_v46, 0.0  ;;  %v8145_v51 = vpop.f32.mrb[171].mxu1 }
0x40dd   : > { %v6344_v48 = vpack.c.bf16 %v6343_v38, %v6343_v38 }
0x40df   : > { %8155 = vmatmul.mubr.msk.bf16.vlgmr.msra.gmra.mrb[176].mxu0 %vm3532_vm6, %v6344_v48 }
0x41b2   : > { %v6423_v52 = vpop.f32.mrb[176].mxu0 }
0x41b3   : > { %v6424_v26 = vadd.f32 %v7251_v49, %v6423_v52  ;;  %v8156_v15 = vpop.f32.mrb[177].mxu0 }
0x41b4   : > { %v6426_v55 = vpop.f32.mrb[178].mxu0 }
0x41b5   : > { %v8157_v53 = vpop.f32.mrb[179].mxu0  ;;  %v6429_v54 = vadd.f32 %v6424_v26, %v6273_v36 }
0x41b7   : > { %v6430_v32 = vsel %vm785_vm1, %v6429_v54, 0.0 }
0x41b8   : > { %6431 = vadd.xlane.f32.xlu0 %v6430_v32 }
0x4245   : > { %v6432_v57 = vpop.xlane.xlu0 %6431 }
0x4246   : > { %v6433_v58 = vmul.f32 0.03125, %v6432_v57 }
0x4248   : > { %v6434_v60 = vsub.f32 %v6429_v54, %v6433_v58 }
0x424a   : > { %v6435_v10 = vmul.f32 %v6434_v60, %v6434_v60 }
0x424c   : > { %v6436_v24 = vsel %vm785_vm1, %v6435_v10, 0.0 }
0x424d   : > { %6437 = vadd.xlane.f32.xlu1 %v6436_v24 }
0x42da   : > { %v6438_v63 = vpop.xlane.xlu1 %6437 }
0x42db   : > { %v6439_v0 = vmul.f32 0.03125, %v6438_v63 }
0x42dd   : > { %v6440_v43 = vadd.f32 1e-06, %v6439_v0 }
0x42df   : > { %8402 = vrsqrt.f32 %v6440_v43 }
0x42e9   : > { %v8403_v2 = vpop.eup %8402 }
0x42ea   : > { %v6442_v4 = vmul.f32 %v8403_v2, %v6434_v60 }
0x42ec   : > { %v6451_v9 = vmul.f32 %v7258_v3, %v6442_v4 }
0x42ee   : > { %v6460_v11 = vadd.f32 %v7260_v1, %v6451_v9 }
0x42f0   : > { %v6461_v12 = vpack.c.bf16 %v6460_v11, %v6460_v11 }
0x42f2   : > { %8163 = vmatmul.mubr.msk.bf16.vlgmr.msra.gmra.mrb[172].mxu1 %vm785_vm1, %v6461_v12 }
0x43c5   : > { %v6522_v13 = vpop.f32.mrb[172].mxu1 }
0x43c6   : > { %v6523_v41 = vadd.f32 %v7261_v37, %v6522_v13  ;;  %v8164_v14 = vpop.f32.mrb[173].mxu1 }
0x43c7   : > { %v6525_v16 = vpop.f32.mrb[174].mxu1 }
0x43c8   : > { %v8165_v59 = vpop.f32.mrb[175].mxu1  ;;  %6528 = vst.msk [vmem:[%s714_s20] sm:$0xff] %vm785_vm1, %v6523_v41 }
0x43c9   : > { %8420 = shalt.err (!%p8417_p3)
}
0x43ca   : > { %s8421_s6 = scalar_lea.hbm %s9926_s30, 128  ;;  %s8425_s26 = scalar_lea.hbm %s10051_s2, 256 }
0x43cb   : > { %p8422_p4 = scmp.ne.s32.totalorder %s9926_s30, %s8421_s6  ;;  %p8426_p9 = scmp.lt.u32.totalorder %s9926_s30, %s10051_s2 }
0x43cc   : > { %p8427_p10 = scmp.lt.u32.totalorder %s8425_s26, %s8421_s6  ;;  %p8429_p12 = scmp.lt.u32.totalorder %s8421_s6, %s9926_s30 }
0x43cd   : > { %p8423_p7 = pnand %p8422_p4, %p8630_p5 }
0x43ce   : > { %p8428_p11 = por %p8427_p10, %p8426_p9 }
0x43cf   : > { %p8424_p8 = pneg %p8423_p7 }
0x43d0   : > { %p8430_p13 = por %p8429_p12, %p8428_p11 }
0x43d2   : > { %p8431_p0 = pnand %p8430_p13, %p8424_p8 }
0x43d4   : > { %8434 = shalt.err (!%p8431_p0)
}
0x43d5   : > { %8166 = dma.vmem_to_hbm [thread:$0]  (%p8630_p5), %s9928_s24, 128, %s9926_s30, %s6530_s19  }
0x43d6 PF: > { %s10052_s21 = sld [smem:[#allocation7_spill]]  ;;  %s10053_s25 = sld [smem:[#allocation5_spill]] }
0x43dc   : > { %p8172_p1 = scmp.ge.s32.totalorder %s10052_s21, 2  ;;  %s6571_s0 = sand.u32 1, %s10053_s25  }
0x43dd   : > { %s6572_s4 = scalar_lea.sflag [#allocation3], %s6571_s0 }
0x43de   : > { %p8169_p2 = pnand %p8172_p1, %p8634_p6 }
0x43e0   : > { %8452 = dma.done.wait (!%p8169_p2), %s6572_s4, 128  }
0x43e1   : > { %8454 = vsyncadd (!%p8169_p2), %s6572_s4, 4294967168  ;;  %s10055_s30 = sld [smem:[#allocation9_spill]]  ;;  %s10056_s6 = sld [smem:[#allocation6_spill]] }
0x43e2   : > { %s10057_s29 = sld [smem:[#allocation10_spill]]  ;;  %s10058_s3 = smov %s8461_s28 }
0x43e7   : > { %p33_p3 = scmp.ge.s32.totalorder %s10055_s30, 4   ;;  %s10059_s28 = smov %s10056_s6 }
0x43e9   :  { %35 = sbr.rel (!%p33_p3) target bundleno = 15 (0xf), region = 280 }
0x43f0   :  { %6593 = vsyncpa [#allocation3], 1 }
0x43f1   :  { %6595 = vsyncpa [#allocation3 + $0x1], 1 }

</bundles_post_ra>
